<compile_context>
chip_gen: v6e
topology: v6e:2x2x1
jax: 0.10.0
libtpu: 0.0.40
codegen_flags: <defaults>
</compile_context>

<pallas_src>
import functools

import numpy as np
import jax
import jax.numpy as jnp
from jax.experimental import pallas as pl
from jax.experimental.pallas import tpu as pltpu


# ----------------------------------------------------------------------------
# RegNet config machinery (numpy port of the PyTorch helper functions)
# ----------------------------------------------------------------------------
def adjust_width_groups_comp(widths, groups):
    groups = [min(g, w_bot) for g, w_bot in zip(groups, widths)]
    widths = [int(round(w / g) * g) for w, g in zip(widths, groups)]
    return widths, groups


def generate_width_depth(wa, w0, wm, depth, q=8):
    assert wa > 0 and w0 > 0 and wm > 1 and (w0 % q == 0)
    widths_cont = np.arange(depth) * wa + w0
    width_exps = np.round(np.log(widths_cont / w0) / np.log(wm))
    widths_j = w0 * np.power(wm, width_exps)
    widths_j = np.round(np.divide(widths_j, q)) * q
    num_stages, max_stage = len(np.unique(widths_j)), width_exps.max() + 1
    assert num_stages == int(max_stage)
    assert num_stages == 4
    widths = widths_j.astype(int).tolist()
    return widths, num_stages


def build_stage_info(cfg):
    wa, w0, wm, d = cfg["wa"], cfg["w0"], cfg["wm"], cfg["depth"]
    widths, num_stages = generate_width_depth(wa, w0, wm, d)
    stage_widths, stage_depths = np.unique(widths, return_counts=True)
    stage_groups = [cfg["group_w"] for _ in range(num_stages)]
    stage_widths, stage_groups = adjust_width_groups_comp(list(stage_widths), stage_groups)
    info = []
    for i in range(num_stages):
        info.append(dict(out_c=int(stage_widths[i]), depth=int(stage_depths[i]),
                         group_width=int(stage_groups[i]), se_ratio=cfg["se_ratio"]))
    return info


# ----------------------------------------------------------------------------
# Pallas kernels
# ----------------------------------------------------------------------------
def _round_up(x, m):
    return ((x + m - 1) // m) * m


def _choose_bm(m):
    """Adaptive row-block: the full dim when small (always legal), else the
    largest divisor of M among {128,64,32,16,8}."""
    if m <= 128:
        return m
    for cand in (128, 64, 32, 16, 8):
        if m % cand == 0:
            return cand
    return m


def _mm_kernel(a_ref, w_ref, scale_ref, bias_ref, o_ref, *, act):
    """o = act((a @ w) * scale + bias); scale/bias broadcast over rows.
    a/w are bf16, accumulation f32, output dtype = o_ref.dtype."""
    y = jnp.dot(a_ref[...], w_ref[...], preferred_element_type=jnp.float32)
    y = y * scale_ref[...] + bias_ref[...]
    if act == "relu":
        y = jnp.maximum(y, 0.0)
    elif act == "sigmoid":
        y = jax.nn.sigmoid(y)
    o_ref[...] = y.astype(o_ref.dtype)


def matmul_bias_act(a, w, scale, bias, act="none", out_dtype=jnp.bfloat16):
    """Fused (a @ w) * scale + bias + activation via a single Pallas call.

    K and N use full-dim blocks (no padding ever materialized); the row axis is
    tiled adaptively and marked parallel."""
    M, K = a.shape
    Kw, N = w.shape
    assert K == Kw
    bm = _choose_bm(M)
    return pl.pallas_call(
        functools.partial(_mm_kernel, act=act),
        out_shape=jax.ShapeDtypeStruct((M, N), out_dtype),
        grid=(M // bm,),
        in_specs=[
            pl.BlockSpec((bm, K), lambda i: (i, 0)),
            pl.BlockSpec((K, N), lambda i: (0, 0)),
            pl.BlockSpec((1, N), lambda i: (0, 0)),
            pl.BlockSpec((1, N), lambda i: (0, 0)),
        ],
        out_specs=pl.BlockSpec((bm, N), lambda i: (i, 0)),
        compiler_params=pltpu.CompilerParams(dimension_semantics=("parallel",)),
    )(a, w, scale, bias)


def _conv3_tail_kernel(x_ref, s_ref, w_ref, scale_ref, bias_ref, sc_ref, o_ref):
    """Fused: SE channel gate * conv2-output  ->  1x1 conv3  ->  folded BN
    -> + residual shortcut -> ReLU.  One HBM round-trip for the whole tail."""
    # x_ref: (1, bm, K) bf16, s_ref: (1, 1, K) bf16 (broadcast in-kernel)
    a = (x_ref[0].astype(jnp.float32) * s_ref[0].astype(jnp.float32)).astype(jnp.bfloat16)
    y = jnp.dot(a, w_ref[...], preferred_element_type=jnp.float32)
    y = y * scale_ref[...] + bias_ref[...]
    y = y + sc_ref[0].astype(jnp.float32)
    o_ref[0] = jnp.maximum(y, 0.0).astype(o_ref.dtype)


def conv3_se_residual(x2, s, p3, shortcut):
    """x2: (B, HW, K) conv2 output; s: (B, 1, K) SE gate; shortcut: (B, HW, N)."""
    B, HW, K = x2.shape
    N = p3["wmat"].shape[1]
    bm = _choose_bm(HW)
    return pl.pallas_call(
        _conv3_tail_kernel,
        out_shape=jax.ShapeDtypeStruct((B, HW, N), jnp.bfloat16),
        grid=(B, HW // bm),
        in_specs=[
            pl.BlockSpec((1, bm, K), lambda b, i: (b, i, 0)),
            pl.BlockSpec((1, 1, K), lambda b, i: (b, 0, 0)),
            pl.BlockSpec((K, N), lambda b, i: (0, 0)),
            pl.BlockSpec((1, N), lambda b, i: (0, 0)),
            pl.BlockSpec((1, N), lambda b, i: (0, 0)),
            pl.BlockSpec((1, bm, N), lambda b, i: (b, i, 0)),
        ],
        out_specs=pl.BlockSpec((1, bm, N), lambda b, i: (b, i, 0)),
        compiler_params=pltpu.CompilerParams(
            dimension_semantics=("parallel", "parallel")),
    )(x2, s, p3["wmat"], p3["scale"], p3["bias"], shortcut)


# ----------------------------------------------------------------------------
# Conv / SE / Bottleneck built on top of the kernels (im2col is JAX glue)
# ----------------------------------------------------------------------------
def im2col(x, kh, kw, stride, pad):
    """x: (B, H, W, C) -> (B*Ho*Wo, kh*kw*C), feature order (kh, kw, C)."""
    if pad > 0:
        x = jnp.pad(x, ((0, 0), (pad, pad), (pad, pad), (0, 0)))
    B, H, W, C = x.shape
    Ho = (H - kh) // stride + 1
    Wo = (W - kw) // stride + 1
    if kh == 1 and kw == 1:
        patches = x[:, ::stride, ::stride, :]
        return patches.reshape(B * Ho * Wo, C), Ho, Wo
    cols = []
    for i in range(kh):
        for j in range(kw):
            cols.append(x[:, i:i + stride * Ho:stride, j:j + stride * Wo:stride, :])
    patches = jnp.concatenate(cols, axis=-1)
    return patches.reshape(B * Ho * Wo, kh * kw * C), Ho, Wo


def conv_bn_act(x, p, stride, padding, act):
    B = x.shape[0]
    cols, Ho, Wo = im2col(x, p["kh"], p["kw"], stride, padding)
    y = matmul_bias_act(cols, p["wmat"], p["scale"], p["bias"], act=act,
                        out_dtype=jnp.bfloat16)
    return y.reshape(B, Ho, Wo, -1)


def se_gate(y, se):
    """Two tiny FC layers producing the per-(batch, channel) sigmoid gate."""
    B, H, W, C = y.shape
    pooled = y.astype(jnp.float32).mean(axis=(1, 2)).astype(jnp.bfloat16)   # (B, C)
    h = matmul_bias_act(pooled, se["w1"], se["scale1"], se["b1"], act="relu")
    s = matmul_bias_act(h, se["w2"], se["scale2"], se["b2"], act="sigmoid")
    return s.reshape(B, 1, C)


def bottleneck_forward(x, p):
    stride = p["stride"]
    y = conv_bn_act(x, p["conv1"], stride=1, padding=0, act="relu")
    y = conv_bn_act(y, p["conv2"], stride=stride, padding=1, act="relu")
    B, H, W, C2 = y.shape
    if p["se"] is not None:
        s = se_gate(y, p["se"])
    else:
        s = jnp.ones((B, 1, C2), jnp.bfloat16)
    if p["downsample"] is not None:
        shortcut = conv_bn_act(x, p["downsample"], stride=stride, padding=0, act="none")
    else:
        shortcut = x
    C3 = p["conv3"]["wmat"].shape[1]
    out = conv3_se_residual(y.reshape(B, H * W, C2), s, p["conv3"],
                            shortcut.reshape(B, H * W, C3))
    return out.reshape(B, H, W, C3)


def regnet_forward(x_nchw, params):
    x = jnp.transpose(x_nchw, (0, 2, 3, 1)).astype(jnp.bfloat16)   # NCHW -> NHWC bf16
    x = conv_bn_act(x, params["stem"], stride=2, padding=1, act="relu")
    for blocks in params["stages"]:
        for bp in blocks:
            x = bottleneck_forward(x, bp)
    pooled = x.astype(jnp.float32).mean(axis=(1, 2)).astype(jnp.bfloat16)
    # Dropout = identity (inference)
    logits = matmul_bias_act(pooled, params["head"]["w"], params["head"]["scale"],
                             params["head"]["b"], act="none", out_dtype=jnp.float32)
    return logits


# ----------------------------------------------------------------------------
# Deterministic synthetic parameter construction (weights pre-baked for kernels)
# ----------------------------------------------------------------------------
def _expand_grouped_weight(w, groups, in_c):
    """(O, I/g, kh, kw) torch-layout -> (kh*kw*in_c, O) matmul weight (exact
    block-diagonal expansion for grouped convs)."""
    O, Ipg, kh, kw = w.shape
    if groups == 1:
        full = w
    else:
        full = jnp.zeros((O, in_c, kh, kw), w.dtype)
        opg = O // groups
        for g in range(groups):
            full = full.at[g * opg:(g + 1) * opg, g * Ipg:(g + 1) * Ipg].set(
                w[g * opg:(g + 1) * opg])
    return jnp.transpose(full, (2, 3, 1, 0)).reshape(kh * kw * in_c, O)


def init_conv_bn(key, in_c, out_c, k, groups):
    w = jax.random.normal(key, (out_c, in_c // groups, k, k), jnp.float32)
    w = w * np.sqrt(2.0 / (out_c * k * k))
    eps = 1e-5
    gamma = jnp.ones((out_c,), jnp.float32)
    beta = jnp.zeros((out_c,), jnp.float32)
    running_mean = jnp.zeros((out_c,), jnp.float32)
    running_var = jnp.ones((out_c,), jnp.float32)
    scale = gamma / jnp.sqrt(running_var + eps)
    bias = beta - running_mean * scale
    return dict(wmat=_expand_grouped_weight(w, groups, in_c).astype(jnp.bfloat16),
                scale=scale.reshape(1, out_c).astype(jnp.float32),
                bias=bias.reshape(1, out_c).astype(jnp.float32),
                kh=k, kw=k)


def init_se(key, input_c, expand_c, se_ratio):
    sq = int(input_c * se_ratio)
    sqp = max(8, _round_up(sq, 8))        # exact zero-padding of the squeeze dim
    k1, k2, k3, k4 = jax.random.split(key, 4)
    w1 = jax.random.normal(k1, (expand_c, sq), jnp.float32) * np.sqrt(2.0 / expand_c)
    b1 = jax.random.normal(k3, (sq,), jnp.float32) * 0.01
    w2 = jax.random.normal(k2, (sq, expand_c), jnp.float32) * np.sqrt(2.0 / sq)
    b2 = jax.random.normal(k4, (expand_c,), jnp.float32) * 0.01
    w1 = jnp.pad(w1, ((0, 0), (0, sqp - sq)))
    b1 = jnp.pad(b1, ((0, sqp - sq),))
    w2 = jnp.pad(w2, ((0, sqp - sq), (0, 0)))
    return dict(w1=w1.astype(jnp.bfloat16),
                b1=b1.reshape(1, sqp).astype(jnp.float32),
                scale1=jnp.ones((1, sqp), jnp.float32),
                w2=w2.astype(jnp.bfloat16),
                b2=b2.reshape(1, expand_c).astype(jnp.float32),
                scale2=jnp.ones((1, expand_c), jnp.float32))


def build_regnet_params(cfg, in_c=3, num_classes=10, key=None):
    keys = iter(jax.random.split(key, 512))
    params = {}
    stem_c = cfg["stem_width"]
    params["stem"] = init_conv_bn(next(keys), in_c, stem_c, 3, 1)

    stage_info = build_stage_info(cfg)
    input_channels = stem_c
    stages = []
    for sa in stage_info:
        blocks = []
        for bi in range(sa["depth"]):
            stride = 2 if bi == 0 else 1
            bin_c = input_channels if bi == 0 else sa["out_c"]
            out_c = sa["out_c"]
            gw = sa["group_width"]
            bp = dict(stride=stride)
            bp["conv1"] = init_conv_bn(next(keys), bin_c, out_c, 1, 1)
            bp["conv2"] = init_conv_bn(next(keys), out_c, out_c, 3, out_c // gw)
            bp["se"] = init_se(next(keys), bin_c, out_c, sa["se_ratio"]) if sa["se_ratio"] > 0 else None
            bp["conv3"] = init_conv_bn(next(keys), out_c, out_c, 1, 1)
            if bin_c != out_c or stride != 1:
                bp["downsample"] = init_conv_bn(next(keys), bin_c, out_c, 1, 1)
            else:
                bp["downsample"] = None
            blocks.append(bp)
        stages.append(blocks)
        input_channels = sa["out_c"]
    params["stages"] = stages

    kw = next(keys)
    params["head"] = dict(
        w=(jax.random.normal(kw, (input_channels, num_classes), jnp.float32) * 0.01
           ).astype(jnp.bfloat16),
        b=jnp.zeros((1, num_classes), jnp.float32),
        scale=jnp.ones((1, num_classes), jnp.float32),
    )
    return params


# ----------------------------------------------------------------------------
# Main
# ----------------------------------------------------------------------------
if __name__ == "__main__":
    # Small RegNet config (4 stages, widths [8, 16, 32, 64], depths [1, 1, 3, 3])
    cfg = dict(stem_width=16, wa=8.0, w0=8, wm=2.0, depth=8, group_w=8, se_ratio=0.25)

    key = jax.random.PRNGKey(0)
    k_params, k_input = jax.random.split(key)
    params = build_regnet_params(cfg, in_c=3, num_classes=10, key=k_params)

    # Input in PyTorch NCHW layout.
    x = jax.random.normal(k_input, (2, 3, 32, 32), jnp.float32)

    fwd = jax.jit(lambda inp: regnet_forward(inp, params))
    logits = fwd(x)
    jax.block_until_ready(logits)

    assert logits.shape == (2, 10), logits.shape
    assert bool(jnp.all(jnp.isfinite(logits)))
    print("KERNEL_OK")
</pallas_src>

<mosaic_0001>
module attributes {stable_mosaic.version = 11 : i64} {
  func.func @_mm_kernel(%arg0: i32, %arg1: memref<128x27xbf16, #tpu.memory_space<vmem>>, %arg2: memref<27x16xbf16, #tpu.memory_space<vmem>>, %arg3: memref<1x16xf32, #tpu.memory_space<vmem>>, %arg4: memref<1x16xf32, #tpu.memory_space<vmem>>, %arg5: memref<128x16xbf16, #tpu.memory_space<vmem>>) attributes {dimension_semantics = [#tpu.dimension_semantics<parallel>], iteration_bounds = array<i64: 4>, scalar_prefetch = 0 : i64, scratch_operands = 0 : i64, tpu.core_type = #tpu.core_type<tc>, window_params = [{transform_indices = @transform_0, window_bounds = array<i64: 128, 27>}, {pipeline_mode = #tpu.pipeline_mode<synchronous>, transform_indices = @transform_1, window_bounds = array<i64: 27, 16>}, {pipeline_mode = #tpu.pipeline_mode<synchronous>, transform_indices = @transform_2, window_bounds = array<i64: 1, 16>}, {pipeline_mode = #tpu.pipeline_mode<synchronous>, transform_indices = @transform_3, window_bounds = array<i64: 1, 16>}, {transform_indices = @transform_4, window_bounds = array<i64: 128, 16>}]} {
    %c0 = arith.constant 0 : index
    %c0_0 = arith.constant 0 : index
    %0 = vector.load %arg1[%c0, %c0_0] : memref<128x27xbf16, #tpu.memory_space<vmem>>, vector<128x27xbf16>
    %c0_1 = arith.constant 0 : index
    %c0_2 = arith.constant 0 : index
    %1 = vector.load %arg2[%c0_1, %c0_2] : memref<27x16xbf16, #tpu.memory_space<vmem>>, vector<27x16xbf16>
    %cst = arith.constant dense<0.000000e+00> : vector<128x16xf32>
    %2 = tpu.matmul %0, %1, %cst {dimension_numbers = #tpu.dot_dimension_numbers<[1], [0], [0], [1], [0, 0, 1, 1], [], []>} : vector<128x27xbf16>, vector<27x16xbf16>, vector<128x16xf32> -> vector<128x16xf32>
    %c0_3 = arith.constant 0 : index
    %c0_4 = arith.constant 0 : index
    %3 = vector.load %arg3[%c0_3, %c0_4] : memref<1x16xf32, #tpu.memory_space<vmem>>, vector<1x16xf32>
    %4 = vector.broadcast %3 : vector<1x16xf32> to vector<128x16xf32>
    %5 = arith.mulf %2, %4 : vector<128x16xf32>
    %c0_5 = arith.constant 0 : index
    %c0_6 = arith.constant 0 : index
    %6 = vector.load %arg4[%c0_5, %c0_6] : memref<1x16xf32, #tpu.memory_space<vmem>>, vector<1x16xf32>
    %7 = vector.broadcast %6 : vector<1x16xf32> to vector<128x16xf32>
    %8 = arith.addf %5, %7 : vector<128x16xf32>
    %cst_7 = arith.constant 0.000000e+00 : f32
    %9 = vector.broadcast %cst_7 : f32 to vector<128x16xf32>
    %10 = arith.maximumf %8, %9 : vector<128x16xf32>
    %11 = arith.truncf %10 : vector<128x16xf32> to vector<128x16xbf16>
    %c0_8 = arith.constant 0 : index
    %c0_9 = arith.constant 0 : index
    %12 = vector.load %arg5[%c0_8, %c0_9] : memref<128x16xbf16, #tpu.memory_space<vmem>>, vector<128x16xbf16>
    tpu.vector_store %arg5[%c0_8, %c0_9], %11 {strides = array<i32>} : memref<128x16xbf16, #tpu.memory_space<vmem>>, vector<128x16xbf16>,
    return
  }
  func.func @transform_0(%arg0: i32) -> (i32, i32) {
    %c0_i32 = arith.constant 0 : i32
    %c0_i32_0 = arith.constant 0 : i32
    return %arg0, %c0_i32 : i32, i32
  }
  func.func @transform_1(%arg0: i32) -> (i32, i32) {
    %c0_i32 = arith.constant 0 : i32
    %c0_i32_0 = arith.constant 0 : i32
    %c0_i32_1 = arith.constant 0 : i32
    return %c0_i32, %c0_i32_0 : i32, i32
  }
  func.func @transform_2(%arg0: i32) -> (i32, i32) {
    %c0_i32 = arith.constant 0 : i32
    %c0_i32_0 = arith.constant 0 : i32
    %c0_i32_1 = arith.constant 0 : i32
    return %c0_i32, %c0_i32_0 : i32, i32
  }
  func.func @transform_3(%arg0: i32) -> (i32, i32) {
    %c0_i32 = arith.constant 0 : i32
    %c0_i32_0 = arith.constant 0 : i32
    %c0_i32_1 = arith.constant 0 : i32
    return %c0_i32, %c0_i32_0 : i32, i32
  }
  func.func @transform_4(%arg0: i32) -> (i32, i32) {
    %c0_i32 = arith.constant 0 : i32
    %c0_i32_0 = arith.constant 0 : i32
    return %arg0, %c0_i32 : i32, i32
  }
}

module attributes {stable_mosaic.version = 11 : i64} {
  func.func @_mm_kernel(%arg0: i32, %arg1: memref<128x16xbf16, #tpu.memory_space<vmem>>, %arg2: memref<16x8xbf16, #tpu.memory_space<vmem>>, %arg3: memref<1x8xf32, #tpu.memory_space<vmem>>, %arg4: memref<1x8xf32, #tpu.memory_space<vmem>>, %arg5: memref<128x8xbf16, #tpu.memory_space<vmem>>) attributes {dimension_semantics = [#tpu.dimension_semantics<parallel>], iteration_bounds = array<i64: 1>, scalar_prefetch = 0 : i64, scratch_operands = 0 : i64, tpu.core_type = #tpu.core_type<tc>, window_params = [{transform_indices = @transform_0, window_bounds = array<i64: 128, 16>}, {pipeline_mode = #tpu.pipeline_mode<synchronous>, transform_indices = @transform_1, window_bounds = array<i64: 16, 8>}, {pipeline_mode = #tpu.pipeline_mode<synchronous>, transform_indices = @transform_2, window_bounds = array<i64: 1, 8>}, {pipeline_mode = #tpu.pipeline_mode<synchronous>, transform_indices = @transform_3, window_bounds = array<i64: 1, 8>}, {transform_indices = @transform_4, window_bounds = array<i64: 128, 8>}]} {
    %c0 = arith.constant 0 : index
    %c0_0 = arith.constant 0 : index
    %0 = vector.load %arg1[%c0, %c0_0] : memref<128x16xbf16, #tpu.memory_space<vmem>>, vector<128x16xbf16>
    %c0_1 = arith.constant 0 : index
    %c0_2 = arith.constant 0 : index
    %1 = vector.load %arg2[%c0_1, %c0_2] : memref<16x8xbf16, #tpu.memory_space<vmem>>, vector<16x8xbf16>
    %cst = arith.constant dense<0.000000e+00> : vector<128x8xf32>
    %2 = tpu.matmul %0, %1, %cst {dimension_numbers = #tpu.dot_dimension_numbers<[1], [0], [0], [1], [0, 0, 1, 1], [], []>} : vector<128x16xbf16>, vector<16x8xbf16>, vector<128x8xf32> -> vector<128x8xf32>
    %c0_3 = arith.constant 0 : index
    %c0_4 = arith.constant 0 : index
    %3 = vector.load %arg3[%c0_3, %c0_4] : memref<1x8xf32, #tpu.memory_space<vmem>>, vector<1x8xf32>
    %4 = vector.broadcast %3 : vector<1x8xf32> to vector<128x8xf32>
    %5 = arith.mulf %2, %4 : vector<128x8xf32>
    %c0_5 = arith.constant 0 : index
    %c0_6 = arith.constant 0 : index
    %6 = vector.load %arg4[%c0_5, %c0_6] : memref<1x8xf32, #tpu.memory_space<vmem>>, vector<1x8xf32>
    %7 = vector.broadcast %6 : vector<1x8xf32> to vector<128x8xf32>
    %8 = arith.addf %5, %7 : vector<128x8xf32>
    %9 = arith.truncf %8 : vector<128x8xf32> to vector<128x8xbf16>
    %c0_7 = arith.constant 0 : index
    %c0_8 = arith.constant 0 : index
    %10 = vector.load %arg5[%c0_7, %c0_8] : memref<128x8xbf16, #tpu.memory_space<vmem>>, vector<128x8xbf16>
    tpu.vector_store %arg5[%c0_7, %c0_8], %9 {strides = array<i32>} : memref<128x8xbf16, #tpu.memory_space<vmem>>, vector<128x8xbf16>,
    return
  }
  func.func @transform_0(%arg0: i32) -> (i32, i32) {
    %c0_i32 = arith.constant 0 : i32
    %c0_i32_0 = arith.constant 0 : i32
    return %arg0, %c0_i32 : i32, i32
  }
  func.func @transform_1(%arg0: i32) -> (i32, i32) {
    %c0_i32 = arith.constant 0 : i32
    %c0_i32_0 = arith.constant 0 : i32
    %c0_i32_1 = arith.constant 0 : i32
    return %c0_i32, %c0_i32_0 : i32, i32
  }
  func.func @transform_2(%arg0: i32) -> (i32, i32) {
    %c0_i32 = arith.constant 0 : i32
    %c0_i32_0 = arith.constant 0 : i32
    %c0_i32_1 = arith.constant 0 : i32
    return %c0_i32, %c0_i32_0 : i32, i32
  }
  func.func @transform_3(%arg0: i32) -> (i32, i32) {
    %c0_i32 = arith.constant 0 : i32
    %c0_i32_0 = arith.constant 0 : i32
    %c0_i32_1 = arith.constant 0 : i32
    return %c0_i32, %c0_i32_0 : i32, i32
  }
  func.func @transform_4(%arg0: i32) -> (i32, i32) {
    %c0_i32 = arith.constant 0 : i32
    %c0_i32_0 = arith.constant 0 : i32
    return %arg0, %c0_i32 : i32, i32
  }
}

module attributes {stable_mosaic.version = 11 : i64} {
  func.func @_mm_kernel(%arg0: i32, %arg1: memref<128x16xbf16, #tpu.memory_space<vmem>>, %arg2: memref<16x8xbf16, #tpu.memory_space<vmem>>, %arg3: memref<1x8xf32, #tpu.memory_space<vmem>>, %arg4: memref<1x8xf32, #tpu.memory_space<vmem>>, %arg5: memref<128x8xbf16, #tpu.memory_space<vmem>>) attributes {dimension_semantics = [#tpu.dimension_semantics<parallel>], iteration_bounds = array<i64: 4>, scalar_prefetch = 0 : i64, scratch_operands = 0 : i64, tpu.core_type = #tpu.core_type<tc>, window_params = [{transform_indices = @transform_0, window_bounds = array<i64: 128, 16>}, {pipeline_mode = #tpu.pipeline_mode<synchronous>, transform_indices = @transform_1, window_bounds = array<i64: 16, 8>}, {pipeline_mode = #tpu.pipeline_mode<synchronous>, transform_indices = @transform_2, window_bounds = array<i64: 1, 8>}, {pipeline_mode = #tpu.pipeline_mode<synchronous>, transform_indices = @transform_3, window_bounds = array<i64: 1, 8>}, {transform_indices = @transform_4, window_bounds = array<i64: 128, 8>}]} {
    %c0 = arith.constant 0 : index
    %c0_0 = arith.constant 0 : index
    %0 = vector.load %arg1[%c0, %c0_0] : memref<128x16xbf16, #tpu.memory_space<vmem>>, vector<128x16xbf16>
    %c0_1 = arith.constant 0 : index
    %c0_2 = arith.constant 0 : index
    %1 = vector.load %arg2[%c0_1, %c0_2] : memref<16x8xbf16, #tpu.memory_space<vmem>>, vector<16x8xbf16>
    %cst = arith.constant dense<0.000000e+00> : vector<128x8xf32>
    %2 = tpu.matmul %0, %1, %cst {dimension_numbers = #tpu.dot_dimension_numbers<[1], [0], [0], [1], [0, 0, 1, 1], [], []>} : vector<128x16xbf16>, vector<16x8xbf16>, vector<128x8xf32> -> vector<128x8xf32>
    %c0_3 = arith.constant 0 : index
    %c0_4 = arith.constant 0 : index
    %3 = vector.load %arg3[%c0_3, %c0_4] : memref<1x8xf32, #tpu.memory_space<vmem>>, vector<1x8xf32>
    %4 = vector.broadcast %3 : vector<1x8xf32> to vector<128x8xf32>
    %5 = arith.mulf %2, %4 : vector<128x8xf32>
    %c0_5 = arith.constant 0 : index
    %c0_6 = arith.constant 0 : index
    %6 = vector.load %arg4[%c0_5, %c0_6] : memref<1x8xf32, #tpu.memory_space<vmem>>, vector<1x8xf32>
    %7 = vector.broadcast %6 : vector<1x8xf32> to vector<128x8xf32>
    %8 = arith.addf %5, %7 : vector<128x8xf32>
    %cst_7 = arith.constant 0.000000e+00 : f32
    %9 = vector.broadcast %cst_7 : f32 to vector<128x8xf32>
    %10 = arith.maximumf %8, %9 : vector<128x8xf32>
    %11 = arith.truncf %10 : vector<128x8xf32> to vector<128x8xbf16>
    %c0_8 = arith.constant 0 : index
    %c0_9 = arith.constant 0 : index
    %12 = vector.load %arg5[%c0_8, %c0_9] : memref<128x8xbf16, #tpu.memory_space<vmem>>, vector<128x8xbf16>
    tpu.vector_store %arg5[%c0_8, %c0_9], %11 {strides = array<i32>} : memref<128x8xbf16, #tpu.memory_space<vmem>>, vector<128x8xbf16>,
    return
  }
  func.func @transform_0(%arg0: i32) -> (i32, i32) {
    %c0_i32 = arith.constant 0 : i32
    %c0_i32_0 = arith.constant 0 : i32
    return %arg0, %c0_i32 : i32, i32
  }
  func.func @transform_1(%arg0: i32) -> (i32, i32) {
    %c0_i32 = arith.constant 0 : i32
    %c0_i32_0 = arith.constant 0 : i32
    %c0_i32_1 = arith.constant 0 : i32
    return %c0_i32, %c0_i32_0 : i32, i32
  }
  func.func @transform_2(%arg0: i32) -> (i32, i32) {
    %c0_i32 = arith.constant 0 : i32
    %c0_i32_0 = arith.constant 0 : i32
    %c0_i32_1 = arith.constant 0 : i32
    return %c0_i32, %c0_i32_0 : i32, i32
  }
  func.func @transform_3(%arg0: i32) -> (i32, i32) {
    %c0_i32 = arith.constant 0 : i32
    %c0_i32_0 = arith.constant 0 : i32
    %c0_i32_1 = arith.constant 0 : i32
    return %c0_i32, %c0_i32_0 : i32, i32
  }
  func.func @transform_4(%arg0: i32) -> (i32, i32) {
    %c0_i32 = arith.constant 0 : i32
    %c0_i32_0 = arith.constant 0 : i32
    return %arg0, %c0_i32 : i32, i32
  }
}

module attributes {stable_mosaic.version = 11 : i64} {
  func.func @_mm_kernel(%arg0: i32, %arg1: memref<2x8xbf16, #tpu.memory_space<vmem>>, %arg2: memref<8x8xbf16, #tpu.memory_space<vmem>>, %arg3: memref<1x8xf32, #tpu.memory_space<vmem>>, %arg4: memref<1x8xf32, #tpu.memory_space<vmem>>, %arg5: memref<2x8xbf16, #tpu.memory_space<vmem>>) attributes {dimension_semantics = [#tpu.dimension_semantics<parallel>], iteration_bounds = array<i64: 1>, scalar_prefetch = 0 : i64, scratch_operands = 0 : i64, tpu.core_type = #tpu.core_type<tc>, window_params = [{transform_indices = @transform_0, window_bounds = array<i64: 2, 8>}, {pipeline_mode = #tpu.pipeline_mode<synchronous>, transform_indices = @transform_1, window_bounds = array<i64: 8, 8>}, {pipeline_mode = #tpu.pipeline_mode<synchronous>, transform_indices = @transform_2, window_bounds = array<i64: 1, 8>}, {pipeline_mode = #tpu.pipeline_mode<synchronous>, transform_indices = @transform_3, window_bounds = array<i64: 1, 8>}, {transform_indices = @transform_4, window_bounds = array<i64: 2, 8>}]} {
    %c0 = arith.constant 0 : index
    %c0_0 = arith.constant 0 : index
    %0 = vector.load %arg1[%c0, %c0_0] : memref<2x8xbf16, #tpu.memory_space<vmem>>, vector<2x8xbf16>
    %c0_1 = arith.constant 0 : index
    %c0_2 = arith.constant 0 : index
    %1 = vector.load %arg2[%c0_1, %c0_2] : memref<8x8xbf16, #tpu.memory_space<vmem>>, vector<8x8xbf16>
    %cst = arith.constant dense<0.000000e+00> : vector<2x8xf32>
    %2 = tpu.matmul %0, %1, %cst {dimension_numbers = #tpu.dot_dimension_numbers<[1], [0], [0], [1], [0, 0, 1, 1], [], []>} : vector<2x8xbf16>, vector<8x8xbf16>, vector<2x8xf32> -> vector<2x8xf32>
    %c0_3 = arith.constant 0 : index
    %c0_4 = arith.constant 0 : index
    %3 = vector.load %arg3[%c0_3, %c0_4] : memref<1x8xf32, #tpu.memory_space<vmem>>, vector<1x8xf32>
    %4 = vector.broadcast %3 : vector<1x8xf32> to vector<2x8xf32>
    %5 = arith.mulf %2, %4 : vector<2x8xf32>
    %c0_5 = arith.constant 0 : index
    %c0_6 = arith.constant 0 : index
    %6 = vector.load %arg4[%c0_5, %c0_6] : memref<1x8xf32, #tpu.memory_space<vmem>>, vector<1x8xf32>
    %7 = vector.broadcast %6 : vector<1x8xf32> to vector<2x8xf32>
    %8 = arith.addf %5, %7 : vector<2x8xf32>
    %9 = arith.negf %8 : vector<2x8xf32>
    %10 = math.exp %9 : vector<2x8xf32>
    %cst_7 = arith.constant 1.000000e+00 : f32
    %11 = vector.broadcast %cst_7 : f32 to vector<2x8xf32>
    %12 = arith.addf %11, %10 : vector<2x8xf32>
    %13 = arith.divf %11, %12 : vector<2x8xf32>
    %14 = arith.truncf %13 : vector<2x8xf32> to vector<2x8xbf16>
    %c0_8 = arith.constant 0 : index
    %c0_9 = arith.constant 0 : index
    %15 = vector.load %arg5[%c0_8, %c0_9] : memref<2x8xbf16, #tpu.memory_space<vmem>>, vector<2x8xbf16>
    tpu.vector_store %arg5[%c0_8, %c0_9], %14 {strides = array<i32>} : memref<2x8xbf16, #tpu.memory_space<vmem>>, vector<2x8xbf16>,
    return
  }
  func.func @transform_0(%arg0: i32) -> (i32, i32) {
    %c0_i32 = arith.constant 0 : i32
    %c0_i32_0 = arith.constant 0 : i32
    return %arg0, %c0_i32 : i32, i32
  }
  func.func @transform_1(%arg0: i32) -> (i32, i32) {
    %c0_i32 = arith.constant 0 : i32
    %c0_i32_0 = arith.constant 0 : i32
    %c0_i32_1 = arith.constant 0 : i32
    return %c0_i32, %c0_i32_0 : i32, i32
  }
  func.func @transform_2(%arg0: i32) -> (i32, i32) {
    %c0_i32 = arith.constant 0 : i32
    %c0_i32_0 = arith.constant 0 : i32
    %c0_i32_1 = arith.constant 0 : i32
    return %c0_i32, %c0_i32_0 : i32, i32
  }
  func.func @transform_3(%arg0: i32) -> (i32, i32) {
    %c0_i32 = arith.constant 0 : i32
    %c0_i32_0 = arith.constant 0 : i32
    %c0_i32_1 = arith.constant 0 : i32
    return %c0_i32, %c0_i32_0 : i32, i32
  }
  func.func @transform_4(%arg0: i32) -> (i32, i32) {
    %c0_i32 = arith.constant 0 : i32
    %c0_i32_0 = arith.constant 0 : i32
    return %arg0, %c0_i32 : i32, i32
  }
}

module attributes {stable_mosaic.version = 11 : i64} {
  func.func @_mm_kernel(%arg0: i32, %arg1: memref<2x8xbf16, #tpu.memory_space<vmem>>, %arg2: memref<8x8xbf16, #tpu.memory_space<vmem>>, %arg3: memref<1x8xf32, #tpu.memory_space<vmem>>, %arg4: memref<1x8xf32, #tpu.memory_space<vmem>>, %arg5: memref<2x8xbf16, #tpu.memory_space<vmem>>) attributes {dimension_semantics = [#tpu.dimension_semantics<parallel>], iteration_bounds = array<i64: 1>, scalar_prefetch = 0 : i64, scratch_operands = 0 : i64, tpu.core_type = #tpu.core_type<tc>, window_params = [{transform_indices = @transform_0, window_bounds = array<i64: 2, 8>}, {pipeline_mode = #tpu.pipeline_mode<synchronous>, transform_indices = @transform_1, window_bounds = array<i64: 8, 8>}, {pipeline_mode = #tpu.pipeline_mode<synchronous>, transform_indices = @transform_2, window_bounds = array<i64: 1, 8>}, {pipeline_mode = #tpu.pipeline_mode<synchronous>, transform_indices = @transform_3, window_bounds = array<i64: 1, 8>}, {transform_indices = @transform_4, window_bounds = array<i64: 2, 8>}]} {
    %c0 = arith.constant 0 : index
    %c0_0 = arith.constant 0 : index
    %0 = vector.load %arg1[%c0, %c0_0] : memref<2x8xbf16, #tpu.memory_space<vmem>>, vector<2x8xbf16>
    %c0_1 = arith.constant 0 : index
    %c0_2 = arith.constant 0 : index
    %1 = vector.load %arg2[%c0_1, %c0_2] : memref<8x8xbf16, #tpu.memory_space<vmem>>, vector<8x8xbf16>
    %cst = arith.constant dense<0.000000e+00> : vector<2x8xf32>
    %2 = tpu.matmul %0, %1, %cst {dimension_numbers = #tpu.dot_dimension_numbers<[1], [0], [0], [1], [0, 0, 1, 1], [], []>} : vector<2x8xbf16>, vector<8x8xbf16>, vector<2x8xf32> -> vector<2x8xf32>
    %c0_3 = arith.constant 0 : index
    %c0_4 = arith.constant 0 : index
    %3 = vector.load %arg3[%c0_3, %c0_4] : memref<1x8xf32, #tpu.memory_space<vmem>>, vector<1x8xf32>
    %4 = vector.broadcast %3 : vector<1x8xf32> to vector<2x8xf32>
    %5 = arith.mulf %2, %4 : vector<2x8xf32>
    %c0_5 = arith.constant 0 : index
    %c0_6 = arith.constant 0 : index
    %6 = vector.load %arg4[%c0_5, %c0_6] : memref<1x8xf32, #tpu.memory_space<vmem>>, vector<1x8xf32>
    %7 = vector.broadcast %6 : vector<1x8xf32> to vector<2x8xf32>
    %8 = arith.addf %5, %7 : vector<2x8xf32>
    %cst_7 = arith.constant 0.000000e+00 : f32
    %9 = vector.broadcast %cst_7 : f32 to vector<2x8xf32>
    %10 = arith.maximumf %8, %9 : vector<2x8xf32>
    %11 = arith.truncf %10 : vector<2x8xf32> to vector<2x8xbf16>
    %c0_8 = arith.constant 0 : index
    %c0_9 = arith.constant 0 : index
    %12 = vector.load %arg5[%c0_8, %c0_9] : memref<2x8xbf16, #tpu.memory_space<vmem>>, vector<2x8xbf16>
    tpu.vector_store %arg5[%c0_8, %c0_9], %11 {strides = array<i32>} : memref<2x8xbf16, #tpu.memory_space<vmem>>, vector<2x8xbf16>,
    return
  }
  func.func @transform_0(%arg0: i32) -> (i32, i32) {
    %c0_i32 = arith.constant 0 : i32
    %c0_i32_0 = arith.constant 0 : i32
    return %arg0, %c0_i32 : i32, i32
  }
  func.func @transform_1(%arg0: i32) -> (i32, i32) {
    %c0_i32 = arith.constant 0 : i32
    %c0_i32_0 = arith.constant 0 : i32
    %c0_i32_1 = arith.constant 0 : i32
    return %c0_i32, %c0_i32_0 : i32, i32
  }
  func.func @transform_2(%arg0: i32) -> (i32, i32) {
    %c0_i32 = arith.constant 0 : i32
    %c0_i32_0 = arith.constant 0 : i32
    %c0_i32_1 = arith.constant 0 : i32
    return %c0_i32, %c0_i32_0 : i32, i32
  }
  func.func @transform_3(%arg0: i32) -> (i32, i32) {
    %c0_i32 = arith.constant 0 : i32
    %c0_i32_0 = arith.constant 0 : i32
    %c0_i32_1 = arith.constant 0 : i32
    return %c0_i32, %c0_i32_0 : i32, i32
  }
  func.func @transform_4(%arg0: i32) -> (i32, i32) {
    %c0_i32 = arith.constant 0 : i32
    %c0_i32_0 = arith.constant 0 : i32
    return %arg0, %c0_i32 : i32, i32
  }
}

module attributes {stable_mosaic.version = 11 : i64} {
  func.func @_mm_kernel(%arg0: i32, %arg1: memref<128x72xbf16, #tpu.memory_space<vmem>>, %arg2: memref<72x8xbf16, #tpu.memory_space<vmem>>, %arg3: memref<1x8xf32, #tpu.memory_space<vmem>>, %arg4: memref<1x8xf32, #tpu.memory_space<vmem>>, %arg5: memref<128x8xbf16, #tpu.memory_space<vmem>>) attributes {dimension_semantics = [#tpu.dimension_semantics<parallel>], iteration_bounds = array<i64: 1>, scalar_prefetch = 0 : i64, scratch_operands = 0 : i64, tpu.core_type = #tpu.core_type<tc>, window_params = [{transform_indices = @transform_0, window_bounds = array<i64: 128, 72>}, {pipeline_mode = #tpu.pipeline_mode<synchronous>, transform_indices = @transform_1, window_bounds = array<i64: 72, 8>}, {pipeline_mode = #tpu.pipeline_mode<synchronous>, transform_indices = @transform_2, window_bounds = array<i64: 1, 8>}, {pipeline_mode = #tpu.pipeline_mode<synchronous>, transform_indices = @transform_3, window_bounds = array<i64: 1, 8>}, {transform_indices = @transform_4, window_bounds = array<i64: 128, 8>}]} {
    %c0 = arith.constant 0 : index
    %c0_0 = arith.constant 0 : index
    %0 = vector.load %arg1[%c0, %c0_0] : memref<128x72xbf16, #tpu.memory_space<vmem>>, vector<128x72xbf16>
    %c0_1 = arith.constant 0 : index
    %c0_2 = arith.constant 0 : index
    %1 = vector.load %arg2[%c0_1, %c0_2] : memref<72x8xbf16, #tpu.memory_space<vmem>>, vector<72x8xbf16>
    %cst = arith.constant dense<0.000000e+00> : vector<128x8xf32>
    %2 = tpu.matmul %0, %1, %cst {dimension_numbers = #tpu.dot_dimension_numbers<[1], [0], [0], [1], [0, 0, 1, 1], [], []>} : vector<128x72xbf16>, vector<72x8xbf16>, vector<128x8xf32> -> vector<128x8xf32>
    %c0_3 = arith.constant 0 : index
    %c0_4 = arith.constant 0 : index
    %3 = vector.load %arg3[%c0_3, %c0_4] : memref<1x8xf32, #tpu.memory_space<vmem>>, vector<1x8xf32>
    %4 = vector.broadcast %3 : vector<1x8xf32> to vector<128x8xf32>
    %5 = arith.mulf %2, %4 : vector<128x8xf32>
    %c0_5 = arith.constant 0 : index
    %c0_6 = arith.constant 0 : index
    %6 = vector.load %arg4[%c0_5, %c0_6] : memref<1x8xf32, #tpu.memory_space<vmem>>, vector<1x8xf32>
    %7 = vector.broadcast %6 : vector<1x8xf32> to vector<128x8xf32>
    %8 = arith.addf %5, %7 : vector<128x8xf32>
    %cst_7 = arith.constant 0.000000e+00 : f32
    %9 = vector.broadcast %cst_7 : f32 to vector<128x8xf32>
    %10 = arith.maximumf %8, %9 : vector<128x8xf32>
    %11 = arith.truncf %10 : vector<128x8xf32> to vector<128x8xbf16>
    %c0_8 = arith.constant 0 : index
    %c0_9 = arith.constant 0 : index
    %12 = vector.load %arg5[%c0_8, %c0_9] : memref<128x8xbf16, #tpu.memory_space<vmem>>, vector<128x8xbf16>
    tpu.vector_store %arg5[%c0_8, %c0_9], %11 {strides = array<i32>} : memref<128x8xbf16, #tpu.memory_space<vmem>>, vector<128x8xbf16>,
    return
  }
  func.func @transform_0(%arg0: i32) -> (i32, i32) {
    %c0_i32 = arith.constant 0 : i32
    %c0_i32_0 = arith.constant 0 : i32
    return %arg0, %c0_i32 : i32, i32
  }
  func.func @transform_1(%arg0: i32) -> (i32, i32) {
    %c0_i32 = arith.constant 0 : i32
    %c0_i32_0 = arith.constant 0 : i32
    %c0_i32_1 = arith.constant 0 : i32
    return %c0_i32, %c0_i32_0 : i32, i32
  }
  func.func @transform_2(%arg0: i32) -> (i32, i32) {
    %c0_i32 = arith.constant 0 : i32
    %c0_i32_0 = arith.constant 0 : i32
    %c0_i32_1 = arith.constant 0 : i32
    return %c0_i32, %c0_i32_0 : i32, i32
  }
  func.func @transform_3(%arg0: i32) -> (i32, i32) {
    %c0_i32 = arith.constant 0 : i32
    %c0_i32_0 = arith.constant 0 : i32
    %c0_i32_1 = arith.constant 0 : i32
    return %c0_i32, %c0_i32_0 : i32, i32
  }
  func.func @transform_4(%arg0: i32) -> (i32, i32) {
    %c0_i32 = arith.constant 0 : i32
    %c0_i32_0 = arith.constant 0 : i32
    return %arg0, %c0_i32 : i32, i32
  }
}

module attributes {stable_mosaic.version = 11 : i64} {
  func.func @_conv3_tail_kernel(%arg0: i32, %arg1: i32, %arg2: memref<1x64x8xbf16, #tpu.memory_space<vmem>>, %arg3: memref<1x1x8xbf16, #tpu.memory_space<vmem>>, %arg4: memref<8x8xbf16, #tpu.memory_space<vmem>>, %arg5: memref<1x8xf32, #tpu.memory_space<vmem>>, %arg6: memref<1x8xf32, #tpu.memory_space<vmem>>, %arg7: memref<1x64x8xbf16, #tpu.memory_space<vmem>>, %arg8: memref<1x64x8xbf16, #tpu.memory_space<vmem>>) attributes {dimension_semantics = [#tpu.dimension_semantics<parallel>, #tpu.dimension_semantics<parallel>], iteration_bounds = array<i64: 2, 1>, scalar_prefetch = 0 : i64, scratch_operands = 0 : i64, tpu.core_type = #tpu.core_type<tc>, window_params = [{transform_indices = @transform_0, window_bounds = array<i64: 1, 64, 8>}, {transform_indices = @transform_1, window_bounds = array<i64: 1, 1, 8>}, {pipeline_mode = #tpu.pipeline_mode<synchronous>, transform_indices = @transform_2, window_bounds = array<i64: 8, 8>}, {pipeline_mode = #tpu.pipeline_mode<synchronous>, transform_indices = @transform_3, window_bounds = array<i64: 1, 8>}, {pipeline_mode = #tpu.pipeline_mode<synchronous>, transform_indices = @transform_4, window_bounds = array<i64: 1, 8>}, {transform_indices = @transform_5, window_bounds = array<i64: 1, 64, 8>}, {transform_indices = @transform_6, window_bounds = array<i64: 1, 64, 8>}]} {
    %c0 = arith.constant 0 : index
    %c0_0 = arith.constant 0 : index
    %c0_1 = arith.constant 0 : index
    %0 = vector.load %arg2[%c0, %c0_0, %c0_1] : memref<1x64x8xbf16, #tpu.memory_space<vmem>>, vector<1x64x8xbf16>
    %1 = vector.shape_cast %0 : vector<1x64x8xbf16> to vector<64x8xbf16>
    %2 = arith.extf %1 : vector<64x8xbf16> to vector<64x8xf32>
    %c0_2 = arith.constant 0 : index
    %c0_3 = arith.constant 0 : index
    %c0_4 = arith.constant 0 : index
    %3 = vector.load %arg3[%c0_2, %c0_3, %c0_4] : memref<1x1x8xbf16, #tpu.memory_space<vmem>>, vector<1x1x8xbf16>
    %4 = vector.shape_cast %3 : vector<1x1x8xbf16> to vector<1x8xbf16>
    %5 = arith.extf %4 : vector<1x8xbf16> to vector<1x8xf32>
    %6 = vector.broadcast %5 : vector<1x8xf32> to vector<64x8xf32>
    %7 = arith.mulf %2, %6 : vector<64x8xf32>
    %8 = arith.truncf %7 : vector<64x8xf32> to vector<64x8xbf16>
    %c0_5 = arith.constant 0 : index
    %c0_6 = arith.constant 0 : index
    %9 = vector.load %arg4[%c0_5, %c0_6] : memref<8x8xbf16, #tpu.memory_space<vmem>>, vector<8x8xbf16>
    %cst = arith.constant dense<0.000000e+00> : vector<64x8xf32>
    %10 = tpu.matmul %8, %9, %cst {dimension_numbers = #tpu.dot_dimension_numbers<[1], [0], [0], [1], [0, 0, 1, 1], [], []>} : vector<64x8xbf16>, vector<8x8xbf16>, vector<64x8xf32> -> vector<64x8xf32>
    %c0_7 = arith.constant 0 : index
    %c0_8 = arith.constant 0 : index
    %11 = vector.load %arg5[%c0_7, %c0_8] : memref<1x8xf32, #tpu.memory_space<vmem>>, vector<1x8xf32>
    %12 = vector.broadcast %11 : vector<1x8xf32> to vector<64x8xf32>
    %13 = arith.mulf %10, %12 : vector<64x8xf32>
    %c0_9 = arith.constant 0 : index
    %c0_10 = arith.constant 0 : index
    %14 = vector.load %arg6[%c0_9, %c0_10] : memref<1x8xf32, #tpu.memory_space<vmem>>, vector<1x8xf32>
    %15 = vector.broadcast %14 : vector<1x8xf32> to vector<64x8xf32>
    %16 = arith.addf %13, %15 : vector<64x8xf32>
    %c0_11 = arith.constant 0 : index
    %c0_12 = arith.constant 0 : index
    %c0_13 = arith.constant 0 : index
    %17 = vector.load %arg7[%c0_11, %c0_12, %c0_13] : memref<1x64x8xbf16, #tpu.memory_space<vmem>>, vector<1x64x8xbf16>
    %18 = vector.shape_cast %17 : vector<1x64x8xbf16> to vector<64x8xbf16>
    %19 = arith.extf %18 : vector<64x8xbf16> to vector<64x8xf32>
    %20 = arith.addf %16, %19 : vector<64x8xf32>
    %cst_14 = arith.constant 0.000000e+00 : f32
    %21 = vector.broadcast %cst_14 : f32 to vector<64x8xf32>
    %22 = arith.maximumf %20, %21 : vector<64x8xf32>
    %23 = arith.truncf %22 : vector<64x8xf32> to vector<64x8xbf16>
    %c0_15 = arith.constant 0 : index
    %c0_16 = arith.constant 0 : index
    %c0_17 = arith.constant 0 : index
    %24 = vector.load %arg8[%c0_15, %c0_16, %c0_17] : memref<1x64x8xbf16, #tpu.memory_space<vmem>>, vector<1x64x8xbf16>
    %25 = vector.shape_cast %24 : vector<1x64x8xbf16> to vector<64x8xbf16>
    %26 = vector.shape_cast %23 : vector<64x8xbf16> to vector<1x64x8xbf16>
    tpu.vector_store %arg8[%c0_15, %c0_16, %c0_17], %26 {strides = array<i32>} : memref<1x64x8xbf16, #tpu.memory_space<vmem>>, vector<1x64x8xbf16>,
    return
  }
  func.func @transform_0(%arg0: i32, %arg1: i32) -> (i32, i32, i32) {
    %c0_i32 = arith.constant 0 : i32
    %c0_i32_0 = arith.constant 0 : i32
    return %arg0, %arg1, %c0_i32 : i32, i32, i32
  }
  func.func @transform_1(%arg0: i32, %arg1: i32) -> (i32, i32, i32) {
    %c0_i32 = arith.constant 0 : i32
    %c0_i32_0 = arith.constant 0 : i32
    %c0_i32_1 = arith.constant 0 : i32
    return %arg0, %c0_i32, %c0_i32_0 : i32, i32, i32
  }
  func.func @transform_2(%arg0: i32, %arg1: i32) -> (i32, i32) {
    %c0_i32 = arith.constant 0 : i32
    %c0_i32_0 = arith.constant 0 : i32
    %c0_i32_1 = arith.constant 0 : i32
    return %c0_i32, %c0_i32_0 : i32, i32
  }
  func.func @transform_3(%arg0: i32, %arg1: i32) -> (i32, i32) {
    %c0_i32 = arith.constant 0 : i32
    %c0_i32_0 = arith.constant 0 : i32
    %c0_i32_1 = arith.constant 0 : i32
    return %c0_i32, %c0_i32_0 : i32, i32
  }
  func.func @transform_4(%arg0: i32, %arg1: i32) -> (i32, i32) {
    %c0_i32 = arith.constant 0 : i32
    %c0_i32_0 = arith.constant 0 : i32
    %c0_i32_1 = arith.constant 0 : i32
    return %c0_i32, %c0_i32_0 : i32, i32
  }
  func.func @transform_5(%arg0: i32, %arg1: i32) -> (i32, i32, i32) {
    %c0_i32 = arith.constant 0 : i32
    %c0_i32_0 = arith.constant 0 : i32
    return %arg0, %arg1, %c0_i32 : i32, i32, i32
  }
  func.func @transform_6(%arg0: i32, %arg1: i32) -> (i32, i32, i32) {
    %c0_i32 = arith.constant 0 : i32
    %c0_i32_0 = arith.constant 0 : i32
    return %arg0, %arg1, %c0_i32 : i32, i32, i32
  }
}

module attributes {stable_mosaic.version = 11 : i64} {
  func.func @_mm_kernel(%arg0: i32, %arg1: memref<32x8xbf16, #tpu.memory_space<vmem>>, %arg2: memref<8x16xbf16, #tpu.memory_space<vmem>>, %arg3: memref<1x16xf32, #tpu.memory_space<vmem>>, %arg4: memref<1x16xf32, #tpu.memory_space<vmem>>, %arg5: memref<32x16xbf16, #tpu.memory_space<vmem>>) attributes {dimension_semantics = [#tpu.dimension_semantics<parallel>], iteration_bounds = array<i64: 1>, scalar_prefetch = 0 : i64, scratch_operands = 0 : i64, tpu.core_type = #tpu.core_type<tc>, window_params = [{transform_indices = @transform_0, window_bounds = array<i64: 32, 8>}, {pipeline_mode = #tpu.pipeline_mode<synchronous>, transform_indices = @transform_1, window_bounds = array<i64: 8, 16>}, {pipeline_mode = #tpu.pipeline_mode<synchronous>, transform_indices = @transform_2, window_bounds = array<i64: 1, 16>}, {pipeline_mode = #tpu.pipeline_mode<synchronous>, transform_indices = @transform_3, window_bounds = array<i64: 1, 16>}, {transform_indices = @transform_4, window_bounds = array<i64: 32, 16>}]} {
    %c0 = arith.constant 0 : index
    %c0_0 = arith.constant 0 : index
    %0 = vector.load %arg1[%c0, %c0_0] : memref<32x8xbf16, #tpu.memory_space<vmem>>, vector<32x8xbf16>
    %c0_1 = arith.constant 0 : index
    %c0_2 = arith.constant 0 : index
    %1 = vector.load %arg2[%c0_1, %c0_2] : memref<8x16xbf16, #tpu.memory_space<vmem>>, vector<8x16xbf16>
    %cst = arith.constant dense<0.000000e+00> : vector<32x16xf32>
    %2 = tpu.matmul %0, %1, %cst {dimension_numbers = #tpu.dot_dimension_numbers<[1], [0], [0], [1], [0, 0, 1, 1], [], []>} : vector<32x8xbf16>, vector<8x16xbf16>, vector<32x16xf32> -> vector<32x16xf32>
    %c0_3 = arith.constant 0 : index
    %c0_4 = arith.constant 0 : index
    %3 = vector.load %arg3[%c0_3, %c0_4] : memref<1x16xf32, #tpu.memory_space<vmem>>, vector<1x16xf32>
    %4 = vector.broadcast %3 : vector<1x16xf32> to vector<32x16xf32>
    %5 = arith.mulf %2, %4 : vector<32x16xf32>
    %c0_5 = arith.constant 0 : index
    %c0_6 = arith.constant 0 : index
    %6 = vector.load %arg4[%c0_5, %c0_6] : memref<1x16xf32, #tpu.memory_space<vmem>>, vector<1x16xf32>
    %7 = vector.broadcast %6 : vector<1x16xf32> to vector<32x16xf32>
    %8 = arith.addf %5, %7 : vector<32x16xf32>
    %9 = arith.truncf %8 : vector<32x16xf32> to vector<32x16xbf16>
    %c0_7 = arith.constant 0 : index
    %c0_8 = arith.constant 0 : index
    %10 = vector.load %arg5[%c0_7, %c0_8] : memref<32x16xbf16, #tpu.memory_space<vmem>>, vector<32x16xbf16>
    tpu.vector_store %arg5[%c0_7, %c0_8], %9 {strides = array<i32>} : memref<32x16xbf16, #tpu.memory_space<vmem>>, vector<32x16xbf16>,
    return
  }
  func.func @transform_0(%arg0: i32) -> (i32, i32) {
    %c0_i32 = arith.constant 0 : i32
    %c0_i32_0 = arith.constant 0 : i32
    return %arg0, %c0_i32 : i32, i32
  }
  func.func @transform_1(%arg0: i32) -> (i32, i32) {
    %c0_i32 = arith.constant 0 : i32
    %c0_i32_0 = arith.constant 0 : i32
    %c0_i32_1 = arith.constant 0 : i32
    return %c0_i32, %c0_i32_0 : i32, i32
  }
  func.func @transform_2(%arg0: i32) -> (i32, i32) {
    %c0_i32 = arith.constant 0 : i32
    %c0_i32_0 = arith.constant 0 : i32
    %c0_i32_1 = arith.constant 0 : i32
    return %c0_i32, %c0_i32_0 : i32, i32
  }
  func.func @transform_3(%arg0: i32) -> (i32, i32) {
    %c0_i32 = arith.constant 0 : i32
    %c0_i32_0 = arith.constant 0 : i32
    %c0_i32_1 = arith.constant 0 : i32
    return %c0_i32, %c0_i32_0 : i32, i32
  }
  func.func @transform_4(%arg0: i32) -> (i32, i32) {
    %c0_i32 = arith.constant 0 : i32
    %c0_i32_0 = arith.constant 0 : i32
    return %arg0, %c0_i32 : i32, i32
  }
}

module attributes {stable_mosaic.version = 11 : i64} {
  func.func @_mm_kernel(%arg0: i32, %arg1: memref<128x8xbf16, #tpu.memory_space<vmem>>, %arg2: memref<8x16xbf16, #tpu.memory_space<vmem>>, %arg3: memref<1x16xf32, #tpu.memory_space<vmem>>, %arg4: memref<1x16xf32, #tpu.memory_space<vmem>>, %arg5: memref<128x16xbf16, #tpu.memory_space<vmem>>) attributes {dimension_semantics = [#tpu.dimension_semantics<parallel>], iteration_bounds = array<i64: 1>, scalar_prefetch = 0 : i64, scratch_operands = 0 : i64, tpu.core_type = #tpu.core_type<tc>, window_params = [{transform_indices = @transform_0, window_bounds = array<i64: 128, 8>}, {pipeline_mode = #tpu.pipeline_mode<synchronous>, transform_indices = @transform_1, window_bounds = array<i64: 8, 16>}, {pipeline_mode = #tpu.pipeline_mode<synchronous>, transform_indices = @transform_2, window_bounds = array<i64: 1, 16>}, {pipeline_mode = #tpu.pipeline_mode<synchronous>, transform_indices = @transform_3, window_bounds = array<i64: 1, 16>}, {transform_indices = @transform_4, window_bounds = array<i64: 128, 16>}]} {
    %c0 = arith.constant 0 : index
    %c0_0 = arith.constant 0 : index
    %0 = vector.load %arg1[%c0, %c0_0] : memref<128x8xbf16, #tpu.memory_space<vmem>>, vector<128x8xbf16>
    %c0_1 = arith.constant 0 : index
    %c0_2 = arith.constant 0 : index
    %1 = vector.load %arg2[%c0_1, %c0_2] : memref<8x16xbf16, #tpu.memory_space<vmem>>, vector<8x16xbf16>
    %cst = arith.constant dense<0.000000e+00> : vector<128x16xf32>
    %2 = tpu.matmul %0, %1, %cst {dimension_numbers = #tpu.dot_dimension_numbers<[1], [0], [0], [1], [0, 0, 1, 1], [], []>} : vector<128x8xbf16>, vector<8x16xbf16>, vector<128x16xf32> -> vector<128x16xf32>
    %c0_3 = arith.constant 0 : index
    %c0_4 = arith.constant 0 : index
    %3 = vector.load %arg3[%c0_3, %c0_4] : memref<1x16xf32, #tpu.memory_space<vmem>>, vector<1x16xf32>
    %4 = vector.broadcast %3 : vector<1x16xf32> to vector<128x16xf32>
    %5 = arith.mulf %2, %4 : vector<128x16xf32>
    %c0_5 = arith.constant 0 : index
    %c0_6 = arith.constant 0 : index
    %6 = vector.load %arg4[%c0_5, %c0_6] : memref<1x16xf32, #tpu.memory_space<vmem>>, vector<1x16xf32>
    %7 = vector.broadcast %6 : vector<1x16xf32> to vector<128x16xf32>
    %8 = arith.addf %5, %7 : vector<128x16xf32>
    %cst_7 = arith.constant 0.000000e+00 : f32
    %9 = vector.broadcast %cst_7 : f32 to vector<128x16xf32>
    %10 = arith.maximumf %8, %9 : vector<128x16xf32>
    %11 = arith.truncf %10 : vector<128x16xf32> to vector<128x16xbf16>
    %c0_8 = arith.constant 0 : index
    %c0_9 = arith.constant 0 : index
    %12 = vector.load %arg5[%c0_8, %c0_9] : memref<128x16xbf16, #tpu.memory_space<vmem>>, vector<128x16xbf16>
    tpu.vector_store %arg5[%c0_8, %c0_9], %11 {strides = array<i32>} : memref<128x16xbf16, #tpu.memory_space<vmem>>, vector<128x16xbf16>,
    return
  }
  func.func @transform_0(%arg0: i32) -> (i32, i32) {
    %c0_i32 = arith.constant 0 : i32
    %c0_i32_0 = arith.constant 0 : i32
    return %arg0, %c0_i32 : i32, i32
  }
  func.func @transform_1(%arg0: i32) -> (i32, i32) {
    %c0_i32 = arith.constant 0 : i32
    %c0_i32_0 = arith.constant 0 : i32
    %c0_i32_1 = arith.constant 0 : i32
    return %c0_i32, %c0_i32_0 : i32, i32
  }
  func.func @transform_2(%arg0: i32) -> (i32, i32) {
    %c0_i32 = arith.constant 0 : i32
    %c0_i32_0 = arith.constant 0 : i32
    %c0_i32_1 = arith.constant 0 : i32
    return %c0_i32, %c0_i32_0 : i32, i32
  }
  func.func @transform_3(%arg0: i32) -> (i32, i32) {
    %c0_i32 = arith.constant 0 : i32
    %c0_i32_0 = arith.constant 0 : i32
    %c0_i32_1 = arith.constant 0 : i32
    return %c0_i32, %c0_i32_0 : i32, i32
  }
  func.func @transform_4(%arg0: i32) -> (i32, i32) {
    %c0_i32 = arith.constant 0 : i32
    %c0_i32_0 = arith.constant 0 : i32
    return %arg0, %c0_i32 : i32, i32
  }
}

module attributes {stable_mosaic.version = 11 : i64} {
  func.func @_mm_kernel(%arg0: i32, %arg1: memref<32x144xbf16, #tpu.memory_space<vmem>>, %arg2: memref<144x16xbf16, #tpu.memory_space<vmem>>, %arg3: memref<1x16xf32, #tpu.memory_space<vmem>>, %arg4: memref<1x16xf32, #tpu.memory_space<vmem>>, %arg5: memref<32x16xbf16, #tpu.memory_space<vmem>>) attributes {dimension_semantics = [#tpu.dimension_semantics<parallel>], iteration_bounds = array<i64: 1>, scalar_prefetch = 0 : i64, scratch_operands = 0 : i64, tpu.core_type = #tpu.core_type<tc>, window_params = [{transform_indices = @transform_0, window_bounds = array<i64: 32, 144>}, {pipeline_mode = #tpu.pipeline_mode<synchronous>, transform_indices = @transform_1, window_bounds = array<i64: 144, 16>}, {pipeline_mode = #tpu.pipeline_mode<synchronous>, transform_indices = @transform_2, window_bounds = array<i64: 1, 16>}, {pipeline_mode = #tpu.pipeline_mode<synchronous>, transform_indices = @transform_3, window_bounds = array<i64: 1, 16>}, {transform_indices = @transform_4, window_bounds = array<i64: 32, 16>}]} {
    %c0 = arith.constant 0 : index
    %c0_0 = arith.constant 0 : index
    %0 = vector.load %arg1[%c0, %c0_0] : memref<32x144xbf16, #tpu.memory_space<vmem>>, vector<32x144xbf16>
    %c0_1 = arith.constant 0 : index
    %c0_2 = arith.constant 0 : index
    %1 = vector.load %arg2[%c0_1, %c0_2] : memref<144x16xbf16, #tpu.memory_space<vmem>>, vector<144x16xbf16>
    %cst = arith.constant dense<0.000000e+00> : vector<32x16xf32>
    %2 = tpu.matmul %0, %1, %cst {dimension_numbers = #tpu.dot_dimension_numbers<[1], [0], [0], [1], [0, 0, 1, 1], [], []>} : vector<32x144xbf16>, vector<144x16xbf16>, vector<32x16xf32> -> vector<32x16xf32>
    %c0_3 = arith.constant 0 : index
    %c0_4 = arith.constant 0 : index
    %3 = vector.load %arg3[%c0_3, %c0_4] : memref<1x16xf32, #tpu.memory_space<vmem>>, vector<1x16xf32>
    %4 = vector.broadcast %3 : vector<1x16xf32> to vector<32x16xf32>
    %5 = arith.mulf %2, %4 : vector<32x16xf32>
    %c0_5 = arith.constant 0 : index
    %c0_6 = arith.constant 0 : index
    %6 = vector.load %arg4[%c0_5, %c0_6] : memref<1x16xf32, #tpu.memory_space<vmem>>, vector<1x16xf32>
    %7 = vector.broadcast %6 : vector<1x16xf32> to vector<32x16xf32>
    %8 = arith.addf %5, %7 : vector<32x16xf32>
    %cst_7 = arith.constant 0.000000e+00 : f32
    %9 = vector.broadcast %cst_7 : f32 to vector<32x16xf32>
    %10 = arith.maximumf %8, %9 : vector<32x16xf32>
    %11 = arith.truncf %10 : vector<32x16xf32> to vector<32x16xbf16>
    %c0_8 = arith.constant 0 : index
    %c0_9 = arith.constant 0 : index
    %12 = vector.load %arg5[%c0_8, %c0_9] : memref<32x16xbf16, #tpu.memory_space<vmem>>, vector<32x16xbf16>
    tpu.vector_store %arg5[%c0_8, %c0_9], %11 {strides = array<i32>} : memref<32x16xbf16, #tpu.memory_space<vmem>>, vector<32x16xbf16>,
    return
  }
  func.func @transform_0(%arg0: i32) -> (i32, i32) {
    %c0_i32 = arith.constant 0 : i32
    %c0_i32_0 = arith.constant 0 : i32
    return %arg0, %c0_i32 : i32, i32
  }
  func.func @transform_1(%arg0: i32) -> (i32, i32) {
    %c0_i32 = arith.constant 0 : i32
    %c0_i32_0 = arith.constant 0 : i32
    %c0_i32_1 = arith.constant 0 : i32
    return %c0_i32, %c0_i32_0 : i32, i32
  }
  func.func @transform_2(%arg0: i32) -> (i32, i32) {
    %c0_i32 = arith.constant 0 : i32
    %c0_i32_0 = arith.constant 0 : i32
    %c0_i32_1 = arith.constant 0 : i32
    return %c0_i32, %c0_i32_0 : i32, i32
  }
  func.func @transform_3(%arg0: i32) -> (i32, i32) {
    %c0_i32 = arith.constant 0 : i32
    %c0_i32_0 = arith.constant 0 : i32
    %c0_i32_1 = arith.constant 0 : i32
    return %c0_i32, %c0_i32_0 : i32, i32
  }
  func.func @transform_4(%arg0: i32) -> (i32, i32) {
    %c0_i32 = arith.constant 0 : i32
    %c0_i32_0 = arith.constant 0 : i32
    return %arg0, %c0_i32 : i32, i32
  }
}

module attributes {stable_mosaic.version = 11 : i64} {
  func.func @_mm_kernel(%arg0: i32, %arg1: memref<2x16xbf16, #tpu.memory_space<vmem>>, %arg2: memref<16x8xbf16, #tpu.memory_space<vmem>>, %arg3: memref<1x8xf32, #tpu.memory_space<vmem>>, %arg4: memref<1x8xf32, #tpu.memory_space<vmem>>, %arg5: memref<2x8xbf16, #tpu.memory_space<vmem>>) attributes {dimension_semantics = [#tpu.dimension_semantics<parallel>], iteration_bounds = array<i64: 1>, scalar_prefetch = 0 : i64, scratch_operands = 0 : i64, tpu.core_type = #tpu.core_type<tc>, window_params = [{transform_indices = @transform_0, window_bounds = array<i64: 2, 16>}, {pipeline_mode = #tpu.pipeline_mode<synchronous>, transform_indices = @transform_1, window_bounds = array<i64: 16, 8>}, {pipeline_mode = #tpu.pipeline_mode<synchronous>, transform_indices = @transform_2, window_bounds = array<i64: 1, 8>}, {pipeline_mode = #tpu.pipeline_mode<synchronous>, transform_indices = @transform_3, window_bounds = array<i64: 1, 8>}, {transform_indices = @transform_4, window_bounds = array<i64: 2, 8>}]} {
    %c0 = arith.constant 0 : index
    %c0_0 = arith.constant 0 : index
    %0 = vector.load %arg1[%c0, %c0_0] : memref<2x16xbf16, #tpu.memory_space<vmem>>, vector<2x16xbf16>
    %c0_1 = arith.constant 0 : index
    %c0_2 = arith.constant 0 : index
    %1 = vector.load %arg2[%c0_1, %c0_2] : memref<16x8xbf16, #tpu.memory_space<vmem>>, vector<16x8xbf16>
    %cst = arith.constant dense<0.000000e+00> : vector<2x8xf32>
    %2 = tpu.matmul %0, %1, %cst {dimension_numbers = #tpu.dot_dimension_numbers<[1], [0], [0], [1], [0, 0, 1, 1], [], []>} : vector<2x16xbf16>, vector<16x8xbf16>, vector<2x8xf32> -> vector<2x8xf32>
    %c0_3 = arith.constant 0 : index
    %c0_4 = arith.constant 0 : index
    %3 = vector.load %arg3[%c0_3, %c0_4] : memref<1x8xf32, #tpu.memory_space<vmem>>, vector<1x8xf32>
    %4 = vector.broadcast %3 : vector<1x8xf32> to vector<2x8xf32>
    %5 = arith.mulf %2, %4 : vector<2x8xf32>
    %c0_5 = arith.constant 0 : index
    %c0_6 = arith.constant 0 : index
    %6 = vector.load %arg4[%c0_5, %c0_6] : memref<1x8xf32, #tpu.memory_space<vmem>>, vector<1x8xf32>
    %7 = vector.broadcast %6 : vector<1x8xf32> to vector<2x8xf32>
    %8 = arith.addf %5, %7 : vector<2x8xf32>
    %cst_7 = arith.constant 0.000000e+00 : f32
    %9 = vector.broadcast %cst_7 : f32 to vector<2x8xf32>
    %10 = arith.maximumf %8, %9 : vector<2x8xf32>
    %11 = arith.truncf %10 : vector<2x8xf32> to vector<2x8xbf16>
    %c0_8 = arith.constant 0 : index
    %c0_9 = arith.constant 0 : index
    %12 = vector.load %arg5[%c0_8, %c0_9] : memref<2x8xbf16, #tpu.memory_space<vmem>>, vector<2x8xbf16>
    tpu.vector_store %arg5[%c0_8, %c0_9], %11 {strides = array<i32>} : memref<2x8xbf16, #tpu.memory_space<vmem>>, vector<2x8xbf16>,
    return
  }
  func.func @transform_0(%arg0: i32) -> (i32, i32) {
    %c0_i32 = arith.constant 0 : i32
    %c0_i32_0 = arith.constant 0 : i32
    return %arg0, %c0_i32 : i32, i32
  }
  func.func @transform_1(%arg0: i32) -> (i32, i32) {
    %c0_i32 = arith.constant 0 : i32
    %c0_i32_0 = arith.constant 0 : i32
    %c0_i32_1 = arith.constant 0 : i32
    return %c0_i32, %c0_i32_0 : i32, i32
  }
  func.func @transform_2(%arg0: i32) -> (i32, i32) {
    %c0_i32 = arith.constant 0 : i32
    %c0_i32_0 = arith.constant 0 : i32
    %c0_i32_1 = arith.constant 0 : i32
    return %c0_i32, %c0_i32_0 : i32, i32
  }
  func.func @transform_3(%arg0: i32) -> (i32, i32) {
    %c0_i32 = arith.constant 0 : i32
    %c0_i32_0 = arith.constant 0 : i32
    %c0_i32_1 = arith.constant 0 : i32
    return %c0_i32, %c0_i32_0 : i32, i32
  }
  func.func @transform_4(%arg0: i32) -> (i32, i32) {
    %c0_i32 = arith.constant 0 : i32
    %c0_i32_0 = arith.constant 0 : i32
    return %arg0, %c0_i32 : i32, i32
  }
}

module attributes {stable_mosaic.version = 11 : i64} {
  func.func @_mm_kernel(%arg0: i32, %arg1: memref<2x8xbf16, #tpu.memory_space<vmem>>, %arg2: memref<8x16xbf16, #tpu.memory_space<vmem>>, %arg3: memref<1x16xf32, #tpu.memory_space<vmem>>, %arg4: memref<1x16xf32, #tpu.memory_space<vmem>>, %arg5: memref<2x16xbf16, #tpu.memory_space<vmem>>) attributes {dimension_semantics = [#tpu.dimension_semantics<parallel>], iteration_bounds = array<i64: 1>, scalar_prefetch = 0 : i64, scratch_operands = 0 : i64, tpu.core_type = #tpu.core_type<tc>, window_params = [{transform_indices = @transform_0, window_bounds = array<i64: 2, 8>}, {pipeline_mode = #tpu.pipeline_mode<synchronous>, transform_indices = @transform_1, window_bounds = array<i64: 8, 16>}, {pipeline_mode = #tpu.pipeline_mode<synchronous>, transform_indices = @transform_2, window_bounds = array<i64: 1, 16>}, {pipeline_mode = #tpu.pipeline_mode<synchronous>, transform_indices = @transform_3, window_bounds = array<i64: 1, 16>}, {transform_indices = @transform_4, window_bounds = array<i64: 2, 16>}]} {
    %c0 = arith.constant 0 : index
    %c0_0 = arith.constant 0 : index
    %0 = vector.load %arg1[%c0, %c0_0] : memref<2x8xbf16, #tpu.memory_space<vmem>>, vector<2x8xbf16>
    %c0_1 = arith.constant 0 : index
    %c0_2 = arith.constant 0 : index
    %1 = vector.load %arg2[%c0_1, %c0_2] : memref<8x16xbf16, #tpu.memory_space<vmem>>, vector<8x16xbf16>
    %cst = arith.constant dense<0.000000e+00> : vector<2x16xf32>
    %2 = tpu.matmul %0, %1, %cst {dimension_numbers = #tpu.dot_dimension_numbers<[1], [0], [0], [1], [0, 0, 1, 1], [], []>} : vector<2x8xbf16>, vector<8x16xbf16>, vector<2x16xf32> -> vector<2x16xf32>
    %c0_3 = arith.constant 0 : index
    %c0_4 = arith.constant 0 : index
    %3 = vector.load %arg3[%c0_3, %c0_4] : memref<1x16xf32, #tpu.memory_space<vmem>>, vector<1x16xf32>
    %4 = vector.broadcast %3 : vector<1x16xf32> to vector<2x16xf32>
    %5 = arith.mulf %2, %4 : vector<2x16xf32>
    %c0_5 = arith.constant 0 : index
    %c0_6 = arith.constant 0 : index
    %6 = vector.load %arg4[%c0_5, %c0_6] : memref<1x16xf32, #tpu.memory_space<vmem>>, vector<1x16xf32>
    %7 = vector.broadcast %6 : vector<1x16xf32> to vector<2x16xf32>
    %8 = arith.addf %5, %7 : vector<2x16xf32>
    %9 = arith.negf %8 : vector<2x16xf32>
    %10 = math.exp %9 : vector<2x16xf32>
    %cst_7 = arith.constant 1.000000e+00 : f32
    %11 = vector.broadcast %cst_7 : f32 to vector<2x16xf32>
    %12 = arith.addf %11, %10 : vector<2x16xf32>
    %13 = arith.divf %11, %12 : vector<2x16xf32>
    %14 = arith.truncf %13 : vector<2x16xf32> to vector<2x16xbf16>
    %c0_8 = arith.constant 0 : index
    %c0_9 = arith.constant 0 : index
    %15 = vector.load %arg5[%c0_8, %c0_9] : memref<2x16xbf16, #tpu.memory_space<vmem>>, vector<2x16xbf16>
    tpu.vector_store %arg5[%c0_8, %c0_9], %14 {strides = array<i32>} : memref<2x16xbf16, #tpu.memory_space<vmem>>, vector<2x16xbf16>,
    return
  }
  func.func @transform_0(%arg0: i32) -> (i32, i32) {
    %c0_i32 = arith.constant 0 : i32
    %c0_i32_0 = arith.constant 0 : i32
    return %arg0, %c0_i32 : i32, i32
  }
  func.func @transform_1(%arg0: i32) -> (i32, i32) {
    %c0_i32 = arith.constant 0 : i32
    %c0_i32_0 = arith.constant 0 : i32
    %c0_i32_1 = arith.constant 0 : i32
    return %c0_i32, %c0_i32_0 : i32, i32
  }
  func.func @transform_2(%arg0: i32) -> (i32, i32) {
    %c0_i32 = arith.constant 0 : i32
    %c0_i32_0 = arith.constant 0 : i32
    %c0_i32_1 = arith.constant 0 : i32
    return %c0_i32, %c0_i32_0 : i32, i32
  }
  func.func @transform_3(%arg0: i32) -> (i32, i32) {
    %c0_i32 = arith.constant 0 : i32
    %c0_i32_0 = arith.constant 0 : i32
    %c0_i32_1 = arith.constant 0 : i32
    return %c0_i32, %c0_i32_0 : i32, i32
  }
  func.func @transform_4(%arg0: i32) -> (i32, i32) {
    %c0_i32 = arith.constant 0 : i32
    %c0_i32_0 = arith.constant 0 : i32
    return %arg0, %c0_i32 : i32, i32
  }
}

module attributes {stable_mosaic.version = 11 : i64} {
  func.func @_conv3_tail_kernel(%arg0: i32, %arg1: i32, %arg2: memref<1x16x16xbf16, #tpu.memory_space<vmem>>, %arg3: memref<1x1x16xbf16, #tpu.memory_space<vmem>>, %arg4: memref<16x16xbf16, #tpu.memory_space<vmem>>, %arg5: memref<1x16xf32, #tpu.memory_space<vmem>>, %arg6: memref<1x16xf32, #tpu.memory_space<vmem>>, %arg7: memref<1x16x16xbf16, #tpu.memory_space<vmem>>, %arg8: memref<1x16x16xbf16, #tpu.memory_space<vmem>>) attributes {dimension_semantics = [#tpu.dimension_semantics<parallel>, #tpu.dimension_semantics<parallel>], iteration_bounds = array<i64: 2, 1>, scalar_prefetch = 0 : i64, scratch_operands = 0 : i64, tpu.core_type = #tpu.core_type<tc>, window_params = [{transform_indices = @transform_0, window_bounds = array<i64: 1, 16, 16>}, {transform_indices = @transform_1, window_bounds = array<i64: 1, 1, 16>}, {pipeline_mode = #tpu.pipeline_mode<synchronous>, transform_indices = @transform_2, window_bounds = array<i64: 16, 16>}, {pipeline_mode = #tpu.pipeline_mode<synchronous>, transform_indices = @transform_3, window_bounds = array<i64: 1, 16>}, {pipeline_mode = #tpu.pipeline_mode<synchronous>, transform_indices = @transform_4, window_bounds = array<i64: 1, 16>}, {transform_indices = @transform_5, window_bounds = array<i64: 1, 16, 16>}, {transform_indices = @transform_6, window_bounds = array<i64: 1, 16, 16>}]} {
    %c0 = arith.constant 0 : index
    %c0_0 = arith.constant 0 : index
    %c0_1 = arith.constant 0 : index
    %0 = vector.load %arg2[%c0, %c0_0, %c0_1] : memref<1x16x16xbf16, #tpu.memory_space<vmem>>, vector<1x16x16xbf16>
    %1 = vector.shape_cast %0 : vector<1x16x16xbf16> to vector<16x16xbf16>
    %2 = arith.extf %1 : vector<16x16xbf16> to vector<16x16xf32>
    %c0_2 = arith.constant 0 : index
    %c0_3 = arith.constant 0 : index
    %c0_4 = arith.constant 0 : index
    %3 = vector.load %arg3[%c0_2, %c0_3, %c0_4] : memref<1x1x16xbf16, #tpu.memory_space<vmem>>, vector<1x1x16xbf16>
    %4 = vector.shape_cast %3 : vector<1x1x16xbf16> to vector<1x16xbf16>
    %5 = arith.extf %4 : vector<1x16xbf16> to vector<1x16xf32>
    %6 = vector.broadcast %5 : vector<1x16xf32> to vector<16x16xf32>
    %7 = arith.mulf %2, %6 : vector<16x16xf32>
    %8 = arith.truncf %7 : vector<16x16xf32> to vector<16x16xbf16>
    %c0_5 = arith.constant 0 : index
    %c0_6 = arith.constant 0 : index
    %9 = vector.load %arg4[%c0_5, %c0_6] : memref<16x16xbf16, #tpu.memory_space<vmem>>, vector<16x16xbf16>
    %cst = arith.constant dense<0.000000e+00> : vector<16x16xf32>
    %10 = tpu.matmul %8, %9, %cst {dimension_numbers = #tpu.dot_dimension_numbers<[1], [0], [0], [1], [0, 0, 1, 1], [], []>} : vector<16x16xbf16>, vector<16x16xbf16>, vector<16x16xf32> -> vector<16x16xf32>
    %c0_7 = arith.constant 0 : index
    %c0_8 = arith.constant 0 : index
    %11 = vector.load %arg5[%c0_7, %c0_8] : memref<1x16xf32, #tpu.memory_space<vmem>>, vector<1x16xf32>
    %12 = vector.broadcast %11 : vector<1x16xf32> to vector<16x16xf32>
    %13 = arith.mulf %10, %12 : vector<16x16xf32>
    %c0_9 = arith.constant 0 : index
    %c0_10 = arith.constant 0 : index
    %14 = vector.load %arg6[%c0_9, %c0_10] : memref<1x16xf32, #tpu.memory_space<vmem>>, vector<1x16xf32>
    %15 = vector.broadcast %14 : vector<1x16xf32> to vector<16x16xf32>
    %16 = arith.addf %13, %15 : vector<16x16xf32>
    %c0_11 = arith.constant 0 : index
    %c0_12 = arith.constant 0 : index
    %c0_13 = arith.constant 0 : index
    %17 = vector.load %arg7[%c0_11, %c0_12, %c0_13] : memref<1x16x16xbf16, #tpu.memory_space<vmem>>, vector<1x16x16xbf16>
    %18 = vector.shape_cast %17 : vector<1x16x16xbf16> to vector<16x16xbf16>
    %19 = arith.extf %18 : vector<16x16xbf16> to vector<16x16xf32>
    %20 = arith.addf %16, %19 : vector<16x16xf32>
    %cst_14 = arith.constant 0.000000e+00 : f32
    %21 = vector.broadcast %cst_14 : f32 to vector<16x16xf32>
    %22 = arith.maximumf %20, %21 : vector<16x16xf32>
    %23 = arith.truncf %22 : vector<16x16xf32> to vector<16x16xbf16>
    %c0_15 = arith.constant 0 : index
    %c0_16 = arith.constant 0 : index
    %c0_17 = arith.constant 0 : index
    %24 = vector.load %arg8[%c0_15, %c0_16, %c0_17] : memref<1x16x16xbf16, #tpu.memory_space<vmem>>, vector<1x16x16xbf16>
    %25 = vector.shape_cast %24 : vector<1x16x16xbf16> to vector<16x16xbf16>
    %26 = vector.shape_cast %23 : vector<16x16xbf16> to vector<1x16x16xbf16>
    tpu.vector_store %arg8[%c0_15, %c0_16, %c0_17], %26 {strides = array<i32>} : memref<1x16x16xbf16, #tpu.memory_space<vmem>>, vector<1x16x16xbf16>,
    return
  }
  func.func @transform_0(%arg0: i32, %arg1: i32) -> (i32, i32, i32) {
    %c0_i32 = arith.constant 0 : i32
    %c0_i32_0 = arith.constant 0 : i32
    return %arg0, %arg1, %c0_i32 : i32, i32, i32
  }
  func.func @transform_1(%arg0: i32, %arg1: i32) -> (i32, i32, i32) {
    %c0_i32 = arith.constant 0 : i32
    %c0_i32_0 = arith.constant 0 : i32
    %c0_i32_1 = arith.constant 0 : i32
    return %arg0, %c0_i32, %c0_i32_0 : i32, i32, i32
  }
  func.func @transform_2(%arg0: i32, %arg1: i32) -> (i32, i32) {
    %c0_i32 = arith.constant 0 : i32
    %c0_i32_0 = arith.constant 0 : i32
    %c0_i32_1 = arith.constant 0 : i32
    return %c0_i32, %c0_i32_0 : i32, i32
  }
  func.func @transform_3(%arg0: i32, %arg1: i32) -> (i32, i32) {
    %c0_i32 = arith.constant 0 : i32
    %c0_i32_0 = arith.constant 0 : i32
    %c0_i32_1 = arith.constant 0 : i32
    return %c0_i32, %c0_i32_0 : i32, i32
  }
  func.func @transform_4(%arg0: i32, %arg1: i32) -> (i32, i32) {
    %c0_i32 = arith.constant 0 : i32
    %c0_i32_0 = arith.constant 0 : i32
    %c0_i32_1 = arith.constant 0 : i32
    return %c0_i32, %c0_i32_0 : i32, i32
  }
  func.func @transform_5(%arg0: i32, %arg1: i32) -> (i32, i32, i32) {
    %c0_i32 = arith.constant 0 : i32
    %c0_i32_0 = arith.constant 0 : i32
    return %arg0, %arg1, %c0_i32 : i32, i32, i32
  }
  func.func @transform_6(%arg0: i32, %arg1: i32) -> (i32, i32, i32) {
    %c0_i32 = arith.constant 0 : i32
    %c0_i32_0 = arith.constant 0 : i32
    return %arg0, %arg1, %c0_i32 : i32, i32, i32
  }
}

module attributes {stable_mosaic.version = 11 : i64} {
  func.func @_mm_kernel(%arg0: i32, %arg1: memref<32x16xbf16, #tpu.memory_space<vmem>>, %arg2: memref<16x32xbf16, #tpu.memory_space<vmem>>, %arg3: memref<1x32xf32, #tpu.memory_space<vmem>>, %arg4: memref<1x32xf32, #tpu.memory_space<vmem>>, %arg5: memref<32x32xbf16, #tpu.memory_space<vmem>>) attributes {dimension_semantics = [#tpu.dimension_semantics<parallel>], iteration_bounds = array<i64: 1>, scalar_prefetch = 0 : i64, scratch_operands = 0 : i64, tpu.core_type = #tpu.core_type<tc>, window_params = [{transform_indices = @transform_0, window_bounds = array<i64: 32, 16>}, {pipeline_mode = #tpu.pipeline_mode<synchronous>, transform_indices = @transform_1, window_bounds = array<i64: 16, 32>}, {pipeline_mode = #tpu.pipeline_mode<synchronous>, transform_indices = @transform_2, window_bounds = array<i64: 1, 32>}, {pipeline_mode = #tpu.pipeline_mode<synchronous>, transform_indices = @transform_3, window_bounds = array<i64: 1, 32>}, {transform_indices = @transform_4, window_bounds = array<i64: 32, 32>}]} {
    %c0 = arith.constant 0 : index
    %c0_0 = arith.constant 0 : index
    %0 = vector.load %arg1[%c0, %c0_0] : memref<32x16xbf16, #tpu.memory_space<vmem>>, vector<32x16xbf16>
    %c0_1 = arith.constant 0 : index
    %c0_2 = arith.constant 0 : index
    %1 = vector.load %arg2[%c0_1, %c0_2] : memref<16x32xbf16, #tpu.memory_space<vmem>>, vector<16x32xbf16>
    %cst = arith.constant dense<0.000000e+00> : vector<32x32xf32>
    %2 = tpu.matmul %0, %1, %cst {dimension_numbers = #tpu.dot_dimension_numbers<[1], [0], [0], [1], [0, 0, 1, 1], [], []>} : vector<32x16xbf16>, vector<16x32xbf16>, vector<32x32xf32> -> vector<32x32xf32>
    %c0_3 = arith.constant 0 : index
    %c0_4 = arith.constant 0 : index
    %3 = vector.load %arg3[%c0_3, %c0_4] : memref<1x32xf32, #tpu.memory_space<vmem>>, vector<1x32xf32>
    %4 = vector.broadcast %3 : vector<1x32xf32> to vector<32x32xf32>
    %5 = arith.mulf %2, %4 : vector<32x32xf32>
    %c0_5 = arith.constant 0 : index
    %c0_6 = arith.constant 0 : index
    %6 = vector.load %arg4[%c0_5, %c0_6] : memref<1x32xf32, #tpu.memory_space<vmem>>, vector<1x32xf32>
    %7 = vector.broadcast %6 : vector<1x32xf32> to vector<32x32xf32>
    %8 = arith.addf %5, %7 : vector<32x32xf32>
    %cst_7 = arith.constant 0.000000e+00 : f32
    %9 = vector.broadcast %cst_7 : f32 to vector<32x32xf32>
    %10 = arith.maximumf %8, %9 : vector<32x32xf32>
    %11 = arith.truncf %10 : vector<32x32xf32> to vector<32x32xbf16>
    %c0_8 = arith.constant 0 : index
    %c0_9 = arith.constant 0 : index
    %12 = vector.load %arg5[%c0_8, %c0_9] : memref<32x32xbf16, #tpu.memory_space<vmem>>, vector<32x32xbf16>
    tpu.vector_store %arg5[%c0_8, %c0_9], %11 {strides = array<i32>} : memref<32x32xbf16, #tpu.memory_space<vmem>>, vector<32x32xbf16>,
    return
  }
  func.func @transform_0(%arg0: i32) -> (i32, i32) {
    %c0_i32 = arith.constant 0 : i32
    %c0_i32_0 = arith.constant 0 : i32
    return %arg0, %c0_i32 : i32, i32
  }
  func.func @transform_1(%arg0: i32) -> (i32, i32) {
    %c0_i32 = arith.constant 0 : i32
    %c0_i32_0 = arith.constant 0 : i32
    %c0_i32_1 = arith.constant 0 : i32
    return %c0_i32, %c0_i32_0 : i32, i32
  }
  func.func @transform_2(%arg0: i32) -> (i32, i32) {
    %c0_i32 = arith.constant 0 : i32
    %c0_i32_0 = arith.constant 0 : i32
    %c0_i32_1 = arith.constant 0 : i32
    return %c0_i32, %c0_i32_0 : i32, i32
  }
  func.func @transform_3(%arg0: i32) -> (i32, i32) {
    %c0_i32 = arith.constant 0 : i32
    %c0_i32_0 = arith.constant 0 : i32
    %c0_i32_1 = arith.constant 0 : i32
    return %c0_i32, %c0_i32_0 : i32, i32
  }
  func.func @transform_4(%arg0: i32) -> (i32, i32) {
    %c0_i32 = arith.constant 0 : i32
    %c0_i32_0 = arith.constant 0 : i32
    return %arg0, %c0_i32 : i32, i32
  }
}

module attributes {stable_mosaic.version = 11 : i64} {
  func.func @_mm_kernel(%arg0: i32, %arg1: memref<8x16xbf16, #tpu.memory_space<vmem>>, %arg2: memref<16x32xbf16, #tpu.memory_space<vmem>>, %arg3: memref<1x32xf32, #tpu.memory_space<vmem>>, %arg4: memref<1x32xf32, #tpu.memory_space<vmem>>, %arg5: memref<8x32xbf16, #tpu.memory_space<vmem>>) attributes {dimension_semantics = [#tpu.dimension_semantics<parallel>], iteration_bounds = array<i64: 1>, scalar_prefetch = 0 : i64, scratch_operands = 0 : i64, tpu.core_type = #tpu.core_type<tc>, window_params = [{transform_indices = @transform_0, window_bounds = array<i64: 8, 16>}, {pipeline_mode = #tpu.pipeline_mode<synchronous>, transform_indices = @transform_1, window_bounds = array<i64: 16, 32>}, {pipeline_mode = #tpu.pipeline_mode<synchronous>, transform_indices = @transform_2, window_bounds = array<i64: 1, 32>}, {pipeline_mode = #tpu.pipeline_mode<synchronous>, transform_indices = @transform_3, window_bounds = array<i64: 1, 32>}, {transform_indices = @transform_4, window_bounds = array<i64: 8, 32>}]} {
    %c0 = arith.constant 0 : index
    %c0_0 = arith.constant 0 : index
    %0 = vector.load %arg1[%c0, %c0_0] : memref<8x16xbf16, #tpu.memory_space<vmem>>, vector<8x16xbf16>
    %c0_1 = arith.constant 0 : index
    %c0_2 = arith.constant 0 : index
    %1 = vector.load %arg2[%c0_1, %c0_2] : memref<16x32xbf16, #tpu.memory_space<vmem>>, vector<16x32xbf16>
    %cst = arith.constant dense<0.000000e+00> : vector<8x32xf32>
    %2 = tpu.matmul %0, %1, %cst {dimension_numbers = #tpu.dot_dimension_numbers<[1], [0], [0], [1], [0, 0, 1, 1], [], []>} : vector<8x16xbf16>, vector<16x32xbf16>, vector<8x32xf32> -> vector<8x32xf32>
    %c0_3 = arith.constant 0 : index
    %c0_4 = arith.constant 0 : index
    %3 = vector.load %arg3[%c0_3, %c0_4] : memref<1x32xf32, #tpu.memory_space<vmem>>, vector<1x32xf32>
    %4 = vector.broadcast %3 : vector<1x32xf32> to vector<8x32xf32>
    %5 = arith.mulf %2, %4 : vector<8x32xf32>
    %c0_5 = arith.constant 0 : index
    %c0_6 = arith.constant 0 : index
    %6 = vector.load %arg4[%c0_5, %c0_6] : memref<1x32xf32, #tpu.memory_space<vmem>>, vector<1x32xf32>
    %7 = vector.broadcast %6 : vector<1x32xf32> to vector<8x32xf32>
    %8 = arith.addf %5, %7 : vector<8x32xf32>
    %9 = arith.truncf %8 : vector<8x32xf32> to vector<8x32xbf16>
    %c0_7 = arith.constant 0 : index
    %c0_8 = arith.constant 0 : index
    %10 = vector.load %arg5[%c0_7, %c0_8] : memref<8x32xbf16, #tpu.memory_space<vmem>>, vector<8x32xbf16>
    tpu.vector_store %arg5[%c0_7, %c0_8], %9 {strides = array<i32>} : memref<8x32xbf16, #tpu.memory_space<vmem>>, vector<8x32xbf16>,
    return
  }
  func.func @transform_0(%arg0: i32) -> (i32, i32) {
    %c0_i32 = arith.constant 0 : i32
    %c0_i32_0 = arith.constant 0 : i32
    return %arg0, %c0_i32 : i32, i32
  }
  func.func @transform_1(%arg0: i32) -> (i32, i32) {
    %c0_i32 = arith.constant 0 : i32
    %c0_i32_0 = arith.constant 0 : i32
    %c0_i32_1 = arith.constant 0 : i32
    return %c0_i32, %c0_i32_0 : i32, i32
  }
  func.func @transform_2(%arg0: i32) -> (i32, i32) {
    %c0_i32 = arith.constant 0 : i32
    %c0_i32_0 = arith.constant 0 : i32
    %c0_i32_1 = arith.constant 0 : i32
    return %c0_i32, %c0_i32_0 : i32, i32
  }
  func.func @transform_3(%arg0: i32) -> (i32, i32) {
    %c0_i32 = arith.constant 0 : i32
    %c0_i32_0 = arith.constant 0 : i32
    %c0_i32_1 = arith.constant 0 : i32
    return %c0_i32, %c0_i32_0 : i32, i32
  }
  func.func @transform_4(%arg0: i32) -> (i32, i32) {
    %c0_i32 = arith.constant 0 : i32
    %c0_i32_0 = arith.constant 0 : i32
    return %arg0, %c0_i32 : i32, i32
  }
}

module attributes {stable_mosaic.version = 11 : i64} {
  func.func @_conv3_tail_kernel(%arg0: i32, %arg1: i32, %arg2: memref<1x4x32xbf16, #tpu.memory_space<vmem>>, %arg3: memref<1x1x32xbf16, #tpu.memory_space<vmem>>, %arg4: memref<32x32xbf16, #tpu.memory_space<vmem>>, %arg5: memref<1x32xf32, #tpu.memory_space<vmem>>, %arg6: memref<1x32xf32, #tpu.memory_space<vmem>>, %arg7: memref<1x4x32xbf16, #tpu.memory_space<vmem>>, %arg8: memref<1x4x32xbf16, #tpu.memory_space<vmem>>) attributes {dimension_semantics = [#tpu.dimension_semantics<parallel>, #tpu.dimension_semantics<parallel>], iteration_bounds = array<i64: 2, 1>, scalar_prefetch = 0 : i64, scratch_operands = 0 : i64, tpu.core_type = #tpu.core_type<tc>, window_params = [{transform_indices = @transform_0, window_bounds = array<i64: 1, 4, 32>}, {transform_indices = @transform_1, window_bounds = array<i64: 1, 1, 32>}, {pipeline_mode = #tpu.pipeline_mode<synchronous>, transform_indices = @transform_2, window_bounds = array<i64: 32, 32>}, {pipeline_mode = #tpu.pipeline_mode<synchronous>, transform_indices = @transform_3, window_bounds = array<i64: 1, 32>}, {pipeline_mode = #tpu.pipeline_mode<synchronous>, transform_indices = @transform_4, window_bounds = array<i64: 1, 32>}, {transform_indices = @transform_5, window_bounds = array<i64: 1, 4, 32>}, {transform_indices = @transform_6, window_bounds = array<i64: 1, 4, 32>}]} {
    %c0 = arith.constant 0 : index
    %c0_0 = arith.constant 0 : index
    %c0_1 = arith.constant 0 : index
    %0 = vector.load %arg2[%c0, %c0_0, %c0_1] : memref<1x4x32xbf16, #tpu.memory_space<vmem>>, vector<1x4x32xbf16>
    %1 = vector.shape_cast %0 : vector<1x4x32xbf16> to vector<4x32xbf16>
    %2 = arith.extf %1 : vector<4x32xbf16> to vector<4x32xf32>
    %c0_2 = arith.constant 0 : index
    %c0_3 = arith.constant 0 : index
    %c0_4 = arith.constant 0 : index
    %3 = vector.load %arg3[%c0_2, %c0_3, %c0_4] : memref<1x1x32xbf16, #tpu.memory_space<vmem>>, vector<1x1x32xbf16>
    %4 = vector.shape_cast %3 : vector<1x1x32xbf16> to vector<1x32xbf16>
    %5 = arith.extf %4 : vector<1x32xbf16> to vector<1x32xf32>
    %6 = vector.broadcast %5 : vector<1x32xf32> to vector<4x32xf32>
    %7 = arith.mulf %2, %6 : vector<4x32xf32>
    %8 = arith.truncf %7 : vector<4x32xf32> to vector<4x32xbf16>
    %c0_5 = arith.constant 0 : index
    %c0_6 = arith.constant 0 : index
    %9 = vector.load %arg4[%c0_5, %c0_6] : memref<32x32xbf16, #tpu.memory_space<vmem>>, vector<32x32xbf16>
    %cst = arith.constant dense<0.000000e+00> : vector<4x32xf32>
    %10 = tpu.matmul %8, %9, %cst {dimension_numbers = #tpu.dot_dimension_numbers<[1], [0], [0], [1], [0, 0, 1, 1], [], []>} : vector<4x32xbf16>, vector<32x32xbf16>, vector<4x32xf32> -> vector<4x32xf32>
    %c0_7 = arith.constant 0 : index
    %c0_8 = arith.constant 0 : index
    %11 = vector.load %arg5[%c0_7, %c0_8] : memref<1x32xf32, #tpu.memory_space<vmem>>, vector<1x32xf32>
    %12 = vector.broadcast %11 : vector<1x32xf32> to vector<4x32xf32>
    %13 = arith.mulf %10, %12 : vector<4x32xf32>
    %c0_9 = arith.constant 0 : index
    %c0_10 = arith.constant 0 : index
    %14 = vector.load %arg6[%c0_9, %c0_10] : memref<1x32xf32, #tpu.memory_space<vmem>>, vector<1x32xf32>
    %15 = vector.broadcast %14 : vector<1x32xf32> to vector<4x32xf32>
    %16 = arith.addf %13, %15 : vector<4x32xf32>
    %c0_11 = arith.constant 0 : index
    %c0_12 = arith.constant 0 : index
    %c0_13 = arith.constant 0 : index
    %17 = vector.load %arg7[%c0_11, %c0_12, %c0_13] : memref<1x4x32xbf16, #tpu.memory_space<vmem>>, vector<1x4x32xbf16>
    %18 = vector.shape_cast %17 : vector<1x4x32xbf16> to vector<4x32xbf16>
    %19 = arith.extf %18 : vector<4x32xbf16> to vector<4x32xf32>
    %20 = arith.addf %16, %19 : vector<4x32xf32>
    %cst_14 = arith.constant 0.000000e+00 : f32
    %21 = vector.broadcast %cst_14 : f32 to vector<4x32xf32>
    %22 = arith.maximumf %20, %21 : vector<4x32xf32>
    %23 = arith.truncf %22 : vector<4x32xf32> to vector<4x32xbf16>
    %c0_15 = arith.constant 0 : index
    %c0_16 = arith.constant 0 : index
    %c0_17 = arith.constant 0 : index
    %24 = vector.load %arg8[%c0_15, %c0_16, %c0_17] : memref<1x4x32xbf16, #tpu.memory_space<vmem>>, vector<1x4x32xbf16>
    %25 = vector.shape_cast %24 : vector<1x4x32xbf16> to vector<4x32xbf16>
    %26 = vector.shape_cast %23 : vector<4x32xbf16> to vector<1x4x32xbf16>
    tpu.vector_store %arg8[%c0_15, %c0_16, %c0_17], %26 {strides = array<i32>} : memref<1x4x32xbf16, #tpu.memory_space<vmem>>, vector<1x4x32xbf16>,
    return
  }
  func.func @transform_0(%arg0: i32, %arg1: i32) -> (i32, i32, i32) {
    %c0_i32 = arith.constant 0 : i32
    %c0_i32_0 = arith.constant 0 : i32
    return %arg0, %arg1, %c0_i32 : i32, i32, i32
  }
  func.func @transform_1(%arg0: i32, %arg1: i32) -> (i32, i32, i32) {
    %c0_i32 = arith.constant 0 : i32
    %c0_i32_0 = arith.constant 0 : i32
    %c0_i32_1 = arith.constant 0 : i32
    return %arg0, %c0_i32, %c0_i32_0 : i32, i32, i32
  }
  func.func @transform_2(%arg0: i32, %arg1: i32) -> (i32, i32) {
    %c0_i32 = arith.constant 0 : i32
    %c0_i32_0 = arith.constant 0 : i32
    %c0_i32_1 = arith.constant 0 : i32
    return %c0_i32, %c0_i32_0 : i32, i32
  }
  func.func @transform_3(%arg0: i32, %arg1: i32) -> (i32, i32) {
    %c0_i32 = arith.constant 0 : i32
    %c0_i32_0 = arith.constant 0 : i32
    %c0_i32_1 = arith.constant 0 : i32
    return %c0_i32, %c0_i32_0 : i32, i32
  }
  func.func @transform_4(%arg0: i32, %arg1: i32) -> (i32, i32) {
    %c0_i32 = arith.constant 0 : i32
    %c0_i32_0 = arith.constant 0 : i32
    %c0_i32_1 = arith.constant 0 : i32
    return %c0_i32, %c0_i32_0 : i32, i32
  }
  func.func @transform_5(%arg0: i32, %arg1: i32) -> (i32, i32, i32) {
    %c0_i32 = arith.constant 0 : i32
    %c0_i32_0 = arith.constant 0 : i32
    return %arg0, %arg1, %c0_i32 : i32, i32, i32
  }
  func.func @transform_6(%arg0: i32, %arg1: i32) -> (i32, i32, i32) {
    %c0_i32 = arith.constant 0 : i32
    %c0_i32_0 = arith.constant 0 : i32
    return %arg0, %arg1, %c0_i32 : i32, i32, i32
  }
}

module attributes {stable_mosaic.version = 11 : i64} {
  func.func @_mm_kernel(%arg0: i32, %arg1: memref<8x288xbf16, #tpu.memory_space<vmem>>, %arg2: memref<288x32xbf16, #tpu.memory_space<vmem>>, %arg3: memref<1x32xf32, #tpu.memory_space<vmem>>, %arg4: memref<1x32xf32, #tpu.memory_space<vmem>>, %arg5: memref<8x32xbf16, #tpu.memory_space<vmem>>) attributes {dimension_semantics = [#tpu.dimension_semantics<parallel>], iteration_bounds = array<i64: 1>, scalar_prefetch = 0 : i64, scratch_operands = 0 : i64, tpu.core_type = #tpu.core_type<tc>, window_params = [{transform_indices = @transform_0, window_bounds = array<i64: 8, 288>}, {pipeline_mode = #tpu.pipeline_mode<synchronous>, transform_indices = @transform_1, window_bounds = array<i64: 288, 32>}, {pipeline_mode = #tpu.pipeline_mode<synchronous>, transform_indices = @transform_2, window_bounds = array<i64: 1, 32>}, {pipeline_mode = #tpu.pipeline_mode<synchronous>, transform_indices = @transform_3, window_bounds = array<i64: 1, 32>}, {transform_indices = @transform_4, window_bounds = array<i64: 8, 32>}]} {
    %c0 = arith.constant 0 : index
    %c0_0 = arith.constant 0 : index
    %0 = vector.load %arg1[%c0, %c0_0] : memref<8x288xbf16, #tpu.memory_space<vmem>>, vector<8x288xbf16>
    %c0_1 = arith.constant 0 : index
    %c0_2 = arith.constant 0 : index
    %1 = vector.load %arg2[%c0_1, %c0_2] : memref<288x32xbf16, #tpu.memory_space<vmem>>, vector<288x32xbf16>
    %cst = arith.constant dense<0.000000e+00> : vector<8x32xf32>
    %2 = tpu.matmul %0, %1, %cst {dimension_numbers = #tpu.dot_dimension_numbers<[1], [0], [0], [1], [0, 0, 1, 1], [], []>} : vector<8x288xbf16>, vector<288x32xbf16>, vector<8x32xf32> -> vector<8x32xf32>
    %c0_3 = arith.constant 0 : index
    %c0_4 = arith.constant 0 : index
    %3 = vector.load %arg3[%c0_3, %c0_4] : memref<1x32xf32, #tpu.memory_space<vmem>>, vector<1x32xf32>
    %4 = vector.broadcast %3 : vector<1x32xf32> to vector<8x32xf32>
    %5 = arith.mulf %2, %4 : vector<8x32xf32>
    %c0_5 = arith.constant 0 : index
    %c0_6 = arith.constant 0 : index
    %6 = vector.load %arg4[%c0_5, %c0_6] : memref<1x32xf32, #tpu.memory_space<vmem>>, vector<1x32xf32>
    %7 = vector.broadcast %6 : vector<1x32xf32> to vector<8x32xf32>
    %8 = arith.addf %5, %7 : vector<8x32xf32>
    %cst_7 = arith.constant 0.000000e+00 : f32
    %9 = vector.broadcast %cst_7 : f32 to vector<8x32xf32>
    %10 = arith.maximumf %8, %9 : vector<8x32xf32>
    %11 = arith.truncf %10 : vector<8x32xf32> to vector<8x32xbf16>
    %c0_8 = arith.constant 0 : index
    %c0_9 = arith.constant 0 : index
    %12 = vector.load %arg5[%c0_8, %c0_9] : memref<8x32xbf16, #tpu.memory_space<vmem>>, vector<8x32xbf16>
    tpu.vector_store %arg5[%c0_8, %c0_9], %11 {strides = array<i32>} : memref<8x32xbf16, #tpu.memory_space<vmem>>, vector<8x32xbf16>,
    return
  }
  func.func @transform_0(%arg0: i32) -> (i32, i32) {
    %c0_i32 = arith.constant 0 : i32
    %c0_i32_0 = arith.constant 0 : i32
    return %arg0, %c0_i32 : i32, i32
  }
  func.func @transform_1(%arg0: i32) -> (i32, i32) {
    %c0_i32 = arith.constant 0 : i32
    %c0_i32_0 = arith.constant 0 : i32
    %c0_i32_1 = arith.constant 0 : i32
    return %c0_i32, %c0_i32_0 : i32, i32
  }
  func.func @transform_2(%arg0: i32) -> (i32, i32) {
    %c0_i32 = arith.constant 0 : i32
    %c0_i32_0 = arith.constant 0 : i32
    %c0_i32_1 = arith.constant 0 : i32
    return %c0_i32, %c0_i32_0 : i32, i32
  }
  func.func @transform_3(%arg0: i32) -> (i32, i32) {
    %c0_i32 = arith.constant 0 : i32
    %c0_i32_0 = arith.constant 0 : i32
    %c0_i32_1 = arith.constant 0 : i32
    return %c0_i32, %c0_i32_0 : i32, i32
  }
  func.func @transform_4(%arg0: i32) -> (i32, i32) {
    %c0_i32 = arith.constant 0 : i32
    %c0_i32_0 = arith.constant 0 : i32
    return %arg0, %c0_i32 : i32, i32
  }
}

module attributes {stable_mosaic.version = 11 : i64} {
  func.func @_mm_kernel(%arg0: i32, %arg1: memref<2x32xbf16, #tpu.memory_space<vmem>>, %arg2: memref<32x8xbf16, #tpu.memory_space<vmem>>, %arg3: memref<1x8xf32, #tpu.memory_space<vmem>>, %arg4: memref<1x8xf32, #tpu.memory_space<vmem>>, %arg5: memref<2x8xbf16, #tpu.memory_space<vmem>>) attributes {dimension_semantics = [#tpu.dimension_semantics<parallel>], iteration_bounds = array<i64: 1>, scalar_prefetch = 0 : i64, scratch_operands = 0 : i64, tpu.core_type = #tpu.core_type<tc>, window_params = [{transform_indices = @transform_0, window_bounds = array<i64: 2, 32>}, {pipeline_mode = #tpu.pipeline_mode<synchronous>, transform_indices = @transform_1, window_bounds = array<i64: 32, 8>}, {pipeline_mode = #tpu.pipeline_mode<synchronous>, transform_indices = @transform_2, window_bounds = array<i64: 1, 8>}, {pipeline_mode = #tpu.pipeline_mode<synchronous>, transform_indices = @transform_3, window_bounds = array<i64: 1, 8>}, {transform_indices = @transform_4, window_bounds = array<i64: 2, 8>}]} {
    %c0 = arith.constant 0 : index
    %c0_0 = arith.constant 0 : index
    %0 = vector.load %arg1[%c0, %c0_0] : memref<2x32xbf16, #tpu.memory_space<vmem>>, vector<2x32xbf16>
    %c0_1 = arith.constant 0 : index
    %c0_2 = arith.constant 0 : index
    %1 = vector.load %arg2[%c0_1, %c0_2] : memref<32x8xbf16, #tpu.memory_space<vmem>>, vector<32x8xbf16>
    %cst = arith.constant dense<0.000000e+00> : vector<2x8xf32>
    %2 = tpu.matmul %0, %1, %cst {dimension_numbers = #tpu.dot_dimension_numbers<[1], [0], [0], [1], [0, 0, 1, 1], [], []>} : vector<2x32xbf16>, vector<32x8xbf16>, vector<2x8xf32> -> vector<2x8xf32>
    %c0_3 = arith.constant 0 : index
    %c0_4 = arith.constant 0 : index
    %3 = vector.load %arg3[%c0_3, %c0_4] : memref<1x8xf32, #tpu.memory_space<vmem>>, vector<1x8xf32>
    %4 = vector.broadcast %3 : vector<1x8xf32> to vector<2x8xf32>
    %5 = arith.mulf %2, %4 : vector<2x8xf32>
    %c0_5 = arith.constant 0 : index
    %c0_6 = arith.constant 0 : index
    %6 = vector.load %arg4[%c0_5, %c0_6] : memref<1x8xf32, #tpu.memory_space<vmem>>, vector<1x8xf32>
    %7 = vector.broadcast %6 : vector<1x8xf32> to vector<2x8xf32>
    %8 = arith.addf %5, %7 : vector<2x8xf32>
    %cst_7 = arith.constant 0.000000e+00 : f32
    %9 = vector.broadcast %cst_7 : f32 to vector<2x8xf32>
    %10 = arith.maximumf %8, %9 : vector<2x8xf32>
    %11 = arith.truncf %10 : vector<2x8xf32> to vector<2x8xbf16>
    %c0_8 = arith.constant 0 : index
    %c0_9 = arith.constant 0 : index
    %12 = vector.load %arg5[%c0_8, %c0_9] : memref<2x8xbf16, #tpu.memory_space<vmem>>, vector<2x8xbf16>
    tpu.vector_store %arg5[%c0_8, %c0_9], %11 {strides = array<i32>} : memref<2x8xbf16, #tpu.memory_space<vmem>>, vector<2x8xbf16>,
    return
  }
  func.func @transform_0(%arg0: i32) -> (i32, i32) {
    %c0_i32 = arith.constant 0 : i32
    %c0_i32_0 = arith.constant 0 : i32
    return %arg0, %c0_i32 : i32, i32
  }
  func.func @transform_1(%arg0: i32) -> (i32, i32) {
    %c0_i32 = arith.constant 0 : i32
    %c0_i32_0 = arith.constant 0 : i32
    %c0_i32_1 = arith.constant 0 : i32
    return %c0_i32, %c0_i32_0 : i32, i32
  }
  func.func @transform_2(%arg0: i32) -> (i32, i32) {
    %c0_i32 = arith.constant 0 : i32
    %c0_i32_0 = arith.constant 0 : i32
    %c0_i32_1 = arith.constant 0 : i32
    return %c0_i32, %c0_i32_0 : i32, i32
  }
  func.func @transform_3(%arg0: i32) -> (i32, i32) {
    %c0_i32 = arith.constant 0 : i32
    %c0_i32_0 = arith.constant 0 : i32
    %c0_i32_1 = arith.constant 0 : i32
    return %c0_i32, %c0_i32_0 : i32, i32
  }
  func.func @transform_4(%arg0: i32) -> (i32, i32) {
    %c0_i32 = arith.constant 0 : i32
    %c0_i32_0 = arith.constant 0 : i32
    return %arg0, %c0_i32 : i32, i32
  }
}

module attributes {stable_mosaic.version = 11 : i64} {
  func.func @_mm_kernel(%arg0: i32, %arg1: memref<2x8xbf16, #tpu.memory_space<vmem>>, %arg2: memref<8x32xbf16, #tpu.memory_space<vmem>>, %arg3: memref<1x32xf32, #tpu.memory_space<vmem>>, %arg4: memref<1x32xf32, #tpu.memory_space<vmem>>, %arg5: memref<2x32xbf16, #tpu.memory_space<vmem>>) attributes {dimension_semantics = [#tpu.dimension_semantics<parallel>], iteration_bounds = array<i64: 1>, scalar_prefetch = 0 : i64, scratch_operands = 0 : i64, tpu.core_type = #tpu.core_type<tc>, window_params = [{transform_indices = @transform_0, window_bounds = array<i64: 2, 8>}, {pipeline_mode = #tpu.pipeline_mode<synchronous>, transform_indices = @transform_1, window_bounds = array<i64: 8, 32>}, {pipeline_mode = #tpu.pipeline_mode<synchronous>, transform_indices = @transform_2, window_bounds = array<i64: 1, 32>}, {pipeline_mode = #tpu.pipeline_mode<synchronous>, transform_indices = @transform_3, window_bounds = array<i64: 1, 32>}, {transform_indices = @transform_4, window_bounds = array<i64: 2, 32>}]} {
    %c0 = arith.constant 0 : index
    %c0_0 = arith.constant 0 : index
    %0 = vector.load %arg1[%c0, %c0_0] : memref<2x8xbf16, #tpu.memory_space<vmem>>, vector<2x8xbf16>
    %c0_1 = arith.constant 0 : index
    %c0_2 = arith.constant 0 : index
    %1 = vector.load %arg2[%c0_1, %c0_2] : memref<8x32xbf16, #tpu.memory_space<vmem>>, vector<8x32xbf16>
    %cst = arith.constant dense<0.000000e+00> : vector<2x32xf32>
    %2 = tpu.matmul %0, %1, %cst {dimension_numbers = #tpu.dot_dimension_numbers<[1], [0], [0], [1], [0, 0, 1, 1], [], []>} : vector<2x8xbf16>, vector<8x32xbf16>, vector<2x32xf32> -> vector<2x32xf32>
    %c0_3 = arith.constant 0 : index
    %c0_4 = arith.constant 0 : index
    %3 = vector.load %arg3[%c0_3, %c0_4] : memref<1x32xf32, #tpu.memory_space<vmem>>, vector<1x32xf32>
    %4 = vector.broadcast %3 : vector<1x32xf32> to vector<2x32xf32>
    %5 = arith.mulf %2, %4 : vector<2x32xf32>
    %c0_5 = arith.constant 0 : index
    %c0_6 = arith.constant 0 : index
    %6 = vector.load %arg4[%c0_5, %c0_6] : memref<1x32xf32, #tpu.memory_space<vmem>>, vector<1x32xf32>
    %7 = vector.broadcast %6 : vector<1x32xf32> to vector<2x32xf32>
    %8 = arith.addf %5, %7 : vector<2x32xf32>
    %9 = arith.negf %8 : vector<2x32xf32>
    %10 = math.exp %9 : vector<2x32xf32>
    %cst_7 = arith.constant 1.000000e+00 : f32
    %11 = vector.broadcast %cst_7 : f32 to vector<2x32xf32>
    %12 = arith.addf %11, %10 : vector<2x32xf32>
    %13 = arith.divf %11, %12 : vector<2x32xf32>
    %14 = arith.truncf %13 : vector<2x32xf32> to vector<2x32xbf16>
    %c0_8 = arith.constant 0 : index
    %c0_9 = arith.constant 0 : index
    %15 = vector.load %arg5[%c0_8, %c0_9] : memref<2x32xbf16, #tpu.memory_space<vmem>>, vector<2x32xbf16>
    tpu.vector_store %arg5[%c0_8, %c0_9], %14 {strides = array<i32>} : memref<2x32xbf16, #tpu.memory_space<vmem>>, vector<2x32xbf16>,
    return
  }
  func.func @transform_0(%arg0: i32) -> (i32, i32) {
    %c0_i32 = arith.constant 0 : i32
    %c0_i32_0 = arith.constant 0 : i32
    return %arg0, %c0_i32 : i32, i32
  }
  func.func @transform_1(%arg0: i32) -> (i32, i32) {
    %c0_i32 = arith.constant 0 : i32
    %c0_i32_0 = arith.constant 0 : i32
    %c0_i32_1 = arith.constant 0 : i32
    return %c0_i32, %c0_i32_0 : i32, i32
  }
  func.func @transform_2(%arg0: i32) -> (i32, i32) {
    %c0_i32 = arith.constant 0 : i32
    %c0_i32_0 = arith.constant 0 : i32
    %c0_i32_1 = arith.constant 0 : i32
    return %c0_i32, %c0_i32_0 : i32, i32
  }
  func.func @transform_3(%arg0: i32) -> (i32, i32) {
    %c0_i32 = arith.constant 0 : i32
    %c0_i32_0 = arith.constant 0 : i32
    %c0_i32_1 = arith.constant 0 : i32
    return %c0_i32, %c0_i32_0 : i32, i32
  }
  func.func @transform_4(%arg0: i32) -> (i32, i32) {
    %c0_i32 = arith.constant 0 : i32
    %c0_i32_0 = arith.constant 0 : i32
    return %arg0, %c0_i32 : i32, i32
  }
}

module attributes {stable_mosaic.version = 11 : i64} {
  func.func @_mm_kernel(%arg0: i32, %arg1: memref<8x32xbf16, #tpu.memory_space<vmem>>, %arg2: memref<32x32xbf16, #tpu.memory_space<vmem>>, %arg3: memref<1x32xf32, #tpu.memory_space<vmem>>, %arg4: memref<1x32xf32, #tpu.memory_space<vmem>>, %arg5: memref<8x32xbf16, #tpu.memory_space<vmem>>) attributes {dimension_semantics = [#tpu.dimension_semantics<parallel>], iteration_bounds = array<i64: 1>, scalar_prefetch = 0 : i64, scratch_operands = 0 : i64, tpu.core_type = #tpu.core_type<tc>, window_params = [{transform_indices = @transform_0, window_bounds = array<i64: 8, 32>}, {pipeline_mode = #tpu.pipeline_mode<synchronous>, transform_indices = @transform_1, window_bounds = array<i64: 32, 32>}, {pipeline_mode = #tpu.pipeline_mode<synchronous>, transform_indices = @transform_2, window_bounds = array<i64: 1, 32>}, {pipeline_mode = #tpu.pipeline_mode<synchronous>, transform_indices = @transform_3, window_bounds = array<i64: 1, 32>}, {transform_indices = @transform_4, window_bounds = array<i64: 8, 32>}]} {
    %c0 = arith.constant 0 : index
    %c0_0 = arith.constant 0 : index
    %0 = vector.load %arg1[%c0, %c0_0] : memref<8x32xbf16, #tpu.memory_space<vmem>>, vector<8x32xbf16>
    %c0_1 = arith.constant 0 : index
    %c0_2 = arith.constant 0 : index
    %1 = vector.load %arg2[%c0_1, %c0_2] : memref<32x32xbf16, #tpu.memory_space<vmem>>, vector<32x32xbf16>
    %cst = arith.constant dense<0.000000e+00> : vector<8x32xf32>
    %2 = tpu.matmul %0, %1, %cst {dimension_numbers = #tpu.dot_dimension_numbers<[1], [0], [0], [1], [0, 0, 1, 1], [], []>} : vector<8x32xbf16>, vector<32x32xbf16>, vector<8x32xf32> -> vector<8x32xf32>
    %c0_3 = arith.constant 0 : index
    %c0_4 = arith.constant 0 : index
    %3 = vector.load %arg3[%c0_3, %c0_4] : memref<1x32xf32, #tpu.memory_space<vmem>>, vector<1x32xf32>
    %4 = vector.broadcast %3 : vector<1x32xf32> to vector<8x32xf32>
    %5 = arith.mulf %2, %4 : vector<8x32xf32>
    %c0_5 = arith.constant 0 : index
    %c0_6 = arith.constant 0 : index
    %6 = vector.load %arg4[%c0_5, %c0_6] : memref<1x32xf32, #tpu.memory_space<vmem>>, vector<1x32xf32>
    %7 = vector.broadcast %6 : vector<1x32xf32> to vector<8x32xf32>
    %8 = arith.addf %5, %7 : vector<8x32xf32>
    %cst_7 = arith.constant 0.000000e+00 : f32
    %9 = vector.broadcast %cst_7 : f32 to vector<8x32xf32>
    %10 = arith.maximumf %8, %9 : vector<8x32xf32>
    %11 = arith.truncf %10 : vector<8x32xf32> to vector<8x32xbf16>
    %c0_8 = arith.constant 0 : index
    %c0_9 = arith.constant 0 : index
    %12 = vector.load %arg5[%c0_8, %c0_9] : memref<8x32xbf16, #tpu.memory_space<vmem>>, vector<8x32xbf16>
    tpu.vector_store %arg5[%c0_8, %c0_9], %11 {strides = array<i32>} : memref<8x32xbf16, #tpu.memory_space<vmem>>, vector<8x32xbf16>,
    return
  }
  func.func @transform_0(%arg0: i32) -> (i32, i32) {
    %c0_i32 = arith.constant 0 : i32
    %c0_i32_0 = arith.constant 0 : i32
    return %arg0, %c0_i32 : i32, i32
  }
  func.func @transform_1(%arg0: i32) -> (i32, i32) {
    %c0_i32 = arith.constant 0 : i32
    %c0_i32_0 = arith.constant 0 : i32
    %c0_i32_1 = arith.constant 0 : i32
    return %c0_i32, %c0_i32_0 : i32, i32
  }
  func.func @transform_2(%arg0: i32) -> (i32, i32) {
    %c0_i32 = arith.constant 0 : i32
    %c0_i32_0 = arith.constant 0 : i32
    %c0_i32_1 = arith.constant 0 : i32
    return %c0_i32, %c0_i32_0 : i32, i32
  }
  func.func @transform_3(%arg0: i32) -> (i32, i32) {
    %c0_i32 = arith.constant 0 : i32
    %c0_i32_0 = arith.constant 0 : i32
    %c0_i32_1 = arith.constant 0 : i32
    return %c0_i32, %c0_i32_0 : i32, i32
  }
  func.func @transform_4(%arg0: i32) -> (i32, i32) {
    %c0_i32 = arith.constant 0 : i32
    %c0_i32_0 = arith.constant 0 : i32
    return %arg0, %c0_i32 : i32, i32
  }
}

module attributes {stable_mosaic.version = 11 : i64} {
  func.func @_mm_kernel(%arg0: i32, %arg1: memref<2x32xbf16, #tpu.memory_space<vmem>>, %arg2: memref<32x64xbf16, #tpu.memory_space<vmem>>, %arg3: memref<1x64xf32, #tpu.memory_space<vmem>>, %arg4: memref<1x64xf32, #tpu.memory_space<vmem>>, %arg5: memref<2x64xbf16, #tpu.memory_space<vmem>>) attributes {dimension_semantics = [#tpu.dimension_semantics<parallel>], iteration_bounds = array<i64: 1>, scalar_prefetch = 0 : i64, scratch_operands = 0 : i64, tpu.core_type = #tpu.core_type<tc>, window_params = [{transform_indices = @transform_0, window_bounds = array<i64: 2, 32>}, {pipeline_mode = #tpu.pipeline_mode<synchronous>, transform_indices = @transform_1, window_bounds = array<i64: 32, 64>}, {pipeline_mode = #tpu.pipeline_mode<synchronous>, transform_indices = @transform_2, window_bounds = array<i64: 1, 64>}, {pipeline_mode = #tpu.pipeline_mode<synchronous>, transform_indices = @transform_3, window_bounds = array<i64: 1, 64>}, {transform_indices = @transform_4, window_bounds = array<i64: 2, 64>}]} {
    %c0 = arith.constant 0 : index
    %c0_0 = arith.constant 0 : index
    %0 = vector.load %arg1[%c0, %c0_0] : memref<2x32xbf16, #tpu.memory_space<vmem>>, vector<2x32xbf16>
    %c0_1 = arith.constant 0 : index
    %c0_2 = arith.constant 0 : index
    %1 = vector.load %arg2[%c0_1, %c0_2] : memref<32x64xbf16, #tpu.memory_space<vmem>>, vector<32x64xbf16>
    %cst = arith.constant dense<0.000000e+00> : vector<2x64xf32>
    %2 = tpu.matmul %0, %1, %cst {dimension_numbers = #tpu.dot_dimension_numbers<[1], [0], [0], [1], [0, 0, 1, 1], [], []>} : vector<2x32xbf16>, vector<32x64xbf16>, vector<2x64xf32> -> vector<2x64xf32>
    %c0_3 = arith.constant 0 : index
    %c0_4 = arith.constant 0 : index
    %3 = vector.load %arg3[%c0_3, %c0_4] : memref<1x64xf32, #tpu.memory_space<vmem>>, vector<1x64xf32>
    %4 = vector.broadcast %3 : vector<1x64xf32> to vector<2x64xf32>
    %5 = arith.mulf %2, %4 : vector<2x64xf32>
    %c0_5 = arith.constant 0 : index
    %c0_6 = arith.constant 0 : index
    %6 = vector.load %arg4[%c0_5, %c0_6] : memref<1x64xf32, #tpu.memory_space<vmem>>, vector<1x64xf32>
    %7 = vector.broadcast %6 : vector<1x64xf32> to vector<2x64xf32>
    %8 = arith.addf %5, %7 : vector<2x64xf32>
    %9 = arith.truncf %8 : vector<2x64xf32> to vector<2x64xbf16>
    %c0_7 = arith.constant 0 : index
    %c0_8 = arith.constant 0 : index
    %10 = vector.load %arg5[%c0_7, %c0_8] : memref<2x64xbf16, #tpu.memory_space<vmem>>, vector<2x64xbf16>
    tpu.vector_store %arg5[%c0_7, %c0_8], %9 {strides = array<i32>} : memref<2x64xbf16, #tpu.memory_space<vmem>>, vector<2x64xbf16>,
    return
  }
  func.func @transform_0(%arg0: i32) -> (i32, i32) {
    %c0_i32 = arith.constant 0 : i32
    %c0_i32_0 = arith.constant 0 : i32
    return %arg0, %c0_i32 : i32, i32
  }
  func.func @transform_1(%arg0: i32) -> (i32, i32) {
    %c0_i32 = arith.constant 0 : i32
    %c0_i32_0 = arith.constant 0 : i32
    %c0_i32_1 = arith.constant 0 : i32
    return %c0_i32, %c0_i32_0 : i32, i32
  }
  func.func @transform_2(%arg0: i32) -> (i32, i32) {
    %c0_i32 = arith.constant 0 : i32
    %c0_i32_0 = arith.constant 0 : i32
    %c0_i32_1 = arith.constant 0 : i32
    return %c0_i32, %c0_i32_0 : i32, i32
  }
  func.func @transform_3(%arg0: i32) -> (i32, i32) {
    %c0_i32 = arith.constant 0 : i32
    %c0_i32_0 = arith.constant 0 : i32
    %c0_i32_1 = arith.constant 0 : i32
    return %c0_i32, %c0_i32_0 : i32, i32
  }
  func.func @transform_4(%arg0: i32) -> (i32, i32) {
    %c0_i32 = arith.constant 0 : i32
    %c0_i32_0 = arith.constant 0 : i32
    return %arg0, %c0_i32 : i32, i32
  }
}

module attributes {stable_mosaic.version = 11 : i64} {
  func.func @_mm_kernel(%arg0: i32, %arg1: memref<8x32xbf16, #tpu.memory_space<vmem>>, %arg2: memref<32x64xbf16, #tpu.memory_space<vmem>>, %arg3: memref<1x64xf32, #tpu.memory_space<vmem>>, %arg4: memref<1x64xf32, #tpu.memory_space<vmem>>, %arg5: memref<8x64xbf16, #tpu.memory_space<vmem>>) attributes {dimension_semantics = [#tpu.dimension_semantics<parallel>], iteration_bounds = array<i64: 1>, scalar_prefetch = 0 : i64, scratch_operands = 0 : i64, tpu.core_type = #tpu.core_type<tc>, window_params = [{transform_indices = @transform_0, window_bounds = array<i64: 8, 32>}, {pipeline_mode = #tpu.pipeline_mode<synchronous>, transform_indices = @transform_1, window_bounds = array<i64: 32, 64>}, {pipeline_mode = #tpu.pipeline_mode<synchronous>, transform_indices = @transform_2, window_bounds = array<i64: 1, 64>}, {pipeline_mode = #tpu.pipeline_mode<synchronous>, transform_indices = @transform_3, window_bounds = array<i64: 1, 64>}, {transform_indices = @transform_4, window_bounds = array<i64: 8, 64>}]} {
    %c0 = arith.constant 0 : index
    %c0_0 = arith.constant 0 : index
    %0 = vector.load %arg1[%c0, %c0_0] : memref<8x32xbf16, #tpu.memory_space<vmem>>, vector<8x32xbf16>
    %c0_1 = arith.constant 0 : index
    %c0_2 = arith.constant 0 : index
    %1 = vector.load %arg2[%c0_1, %c0_2] : memref<32x64xbf16, #tpu.memory_space<vmem>>, vector<32x64xbf16>
    %cst = arith.constant dense<0.000000e+00> : vector<8x64xf32>
    %2 = tpu.matmul %0, %1, %cst {dimension_numbers = #tpu.dot_dimension_numbers<[1], [0], [0], [1], [0, 0, 1, 1], [], []>} : vector<8x32xbf16>, vector<32x64xbf16>, vector<8x64xf32> -> vector<8x64xf32>
    %c0_3 = arith.constant 0 : index
    %c0_4 = arith.constant 0 : index
    %3 = vector.load %arg3[%c0_3, %c0_4] : memref<1x64xf32, #tpu.memory_space<vmem>>, vector<1x64xf32>
    %4 = vector.broadcast %3 : vector<1x64xf32> to vector<8x64xf32>
    %5 = arith.mulf %2, %4 : vector<8x64xf32>
    %c0_5 = arith.constant 0 : index
    %c0_6 = arith.constant 0 : index
    %6 = vector.load %arg4[%c0_5, %c0_6] : memref<1x64xf32, #tpu.memory_space<vmem>>, vector<1x64xf32>
    %7 = vector.broadcast %6 : vector<1x64xf32> to vector<8x64xf32>
    %8 = arith.addf %5, %7 : vector<8x64xf32>
    %cst_7 = arith.constant 0.000000e+00 : f32
    %9 = vector.broadcast %cst_7 : f32 to vector<8x64xf32>
    %10 = arith.maximumf %8, %9 : vector<8x64xf32>
    %11 = arith.truncf %10 : vector<8x64xf32> to vector<8x64xbf16>
    %c0_8 = arith.constant 0 : index
    %c0_9 = arith.constant 0 : index
    %12 = vector.load %arg5[%c0_8, %c0_9] : memref<8x64xbf16, #tpu.memory_space<vmem>>, vector<8x64xbf16>
    tpu.vector_store %arg5[%c0_8, %c0_9], %11 {strides = array<i32>} : memref<8x64xbf16, #tpu.memory_space<vmem>>, vector<8x64xbf16>,
    return
  }
  func.func @transform_0(%arg0: i32) -> (i32, i32) {
    %c0_i32 = arith.constant 0 : i32
    %c0_i32_0 = arith.constant 0 : i32
    return %arg0, %c0_i32 : i32, i32
  }
  func.func @transform_1(%arg0: i32) -> (i32, i32) {
    %c0_i32 = arith.constant 0 : i32
    %c0_i32_0 = arith.constant 0 : i32
    %c0_i32_1 = arith.constant 0 : i32
    return %c0_i32, %c0_i32_0 : i32, i32
  }
  func.func @transform_2(%arg0: i32) -> (i32, i32) {
    %c0_i32 = arith.constant 0 : i32
    %c0_i32_0 = arith.constant 0 : i32
    %c0_i32_1 = arith.constant 0 : i32
    return %c0_i32, %c0_i32_0 : i32, i32
  }
  func.func @transform_3(%arg0: i32) -> (i32, i32) {
    %c0_i32 = arith.constant 0 : i32
    %c0_i32_0 = arith.constant 0 : i32
    %c0_i32_1 = arith.constant 0 : i32
    return %c0_i32, %c0_i32_0 : i32, i32
  }
  func.func @transform_4(%arg0: i32) -> (i32, i32) {
    %c0_i32 = arith.constant 0 : i32
    %c0_i32_0 = arith.constant 0 : i32
    return %arg0, %c0_i32 : i32, i32
  }
}

module attributes {stable_mosaic.version = 11 : i64} {
  func.func @_mm_kernel(%arg0: i32, %arg1: memref<2x576xbf16, #tpu.memory_space<vmem>>, %arg2: memref<576x64xbf16, #tpu.memory_space<vmem>>, %arg3: memref<1x64xf32, #tpu.memory_space<vmem>>, %arg4: memref<1x64xf32, #tpu.memory_space<vmem>>, %arg5: memref<2x64xbf16, #tpu.memory_space<vmem>>) attributes {dimension_semantics = [#tpu.dimension_semantics<parallel>], iteration_bounds = array<i64: 1>, scalar_prefetch = 0 : i64, scratch_operands = 0 : i64, tpu.core_type = #tpu.core_type<tc>, window_params = [{transform_indices = @transform_0, window_bounds = array<i64: 2, 576>}, {pipeline_mode = #tpu.pipeline_mode<synchronous>, transform_indices = @transform_1, window_bounds = array<i64: 576, 64>}, {pipeline_mode = #tpu.pipeline_mode<synchronous>, transform_indices = @transform_2, window_bounds = array<i64: 1, 64>}, {pipeline_mode = #tpu.pipeline_mode<synchronous>, transform_indices = @transform_3, window_bounds = array<i64: 1, 64>}, {transform_indices = @transform_4, window_bounds = array<i64: 2, 64>}]} {
    %c0 = arith.constant 0 : index
    %c0_0 = arith.constant 0 : index
    %0 = vector.load %arg1[%c0, %c0_0] : memref<2x576xbf16, #tpu.memory_space<vmem>>, vector<2x576xbf16>
    %c0_1 = arith.constant 0 : index
    %c0_2 = arith.constant 0 : index
    %1 = vector.load %arg2[%c0_1, %c0_2] : memref<576x64xbf16, #tpu.memory_space<vmem>>, vector<576x64xbf16>
    %cst = arith.constant dense<0.000000e+00> : vector<2x64xf32>
    %2 = tpu.matmul %0, %1, %cst {dimension_numbers = #tpu.dot_dimension_numbers<[1], [0], [0], [1], [0, 0, 1, 1], [], []>} : vector<2x576xbf16>, vector<576x64xbf16>, vector<2x64xf32> -> vector<2x64xf32>
    %c0_3 = arith.constant 0 : index
    %c0_4 = arith.constant 0 : index
    %3 = vector.load %arg3[%c0_3, %c0_4] : memref<1x64xf32, #tpu.memory_space<vmem>>, vector<1x64xf32>
    %4 = vector.broadcast %3 : vector<1x64xf32> to vector<2x64xf32>
    %5 = arith.mulf %2, %4 : vector<2x64xf32>
    %c0_5 = arith.constant 0 : index
    %c0_6 = arith.constant 0 : index
    %6 = vector.load %arg4[%c0_5, %c0_6] : memref<1x64xf32, #tpu.memory_space<vmem>>, vector<1x64xf32>
    %7 = vector.broadcast %6 : vector<1x64xf32> to vector<2x64xf32>
    %8 = arith.addf %5, %7 : vector<2x64xf32>
    %cst_7 = arith.constant 0.000000e+00 : f32
    %9 = vector.broadcast %cst_7 : f32 to vector<2x64xf32>
    %10 = arith.maximumf %8, %9 : vector<2x64xf32>
    %11 = arith.truncf %10 : vector<2x64xf32> to vector<2x64xbf16>
    %c0_8 = arith.constant 0 : index
    %c0_9 = arith.constant 0 : index
    %12 = vector.load %arg5[%c0_8, %c0_9] : memref<2x64xbf16, #tpu.memory_space<vmem>>, vector<2x64xbf16>
    tpu.vector_store %arg5[%c0_8, %c0_9], %11 {strides = array<i32>} : memref<2x64xbf16, #tpu.memory_space<vmem>>, vector<2x64xbf16>,
    return
  }
  func.func @transform_0(%arg0: i32) -> (i32, i32) {
    %c0_i32 = arith.constant 0 : i32
    %c0_i32_0 = arith.constant 0 : i32
    return %arg0, %c0_i32 : i32, i32
  }
  func.func @transform_1(%arg0: i32) -> (i32, i32) {
    %c0_i32 = arith.constant 0 : i32
    %c0_i32_0 = arith.constant 0 : i32
    %c0_i32_1 = arith.constant 0 : i32
    return %c0_i32, %c0_i32_0 : i32, i32
  }
  func.func @transform_2(%arg0: i32) -> (i32, i32) {
    %c0_i32 = arith.constant 0 : i32
    %c0_i32_0 = arith.constant 0 : i32
    %c0_i32_1 = arith.constant 0 : i32
    return %c0_i32, %c0_i32_0 : i32, i32
  }
  func.func @transform_3(%arg0: i32) -> (i32, i32) {
    %c0_i32 = arith.constant 0 : i32
    %c0_i32_0 = arith.constant 0 : i32
    %c0_i32_1 = arith.constant 0 : i32
    return %c0_i32, %c0_i32_0 : i32, i32
  }
  func.func @transform_4(%arg0: i32) -> (i32, i32) {
    %c0_i32 = arith.constant 0 : i32
    %c0_i32_0 = arith.constant 0 : i32
    return %arg0, %c0_i32 : i32, i32
  }
}

module attributes {stable_mosaic.version = 11 : i64} {
  func.func @_mm_kernel(%arg0: i32, %arg1: memref<2x64xbf16, #tpu.memory_space<vmem>>, %arg2: memref<64x8xbf16, #tpu.memory_space<vmem>>, %arg3: memref<1x8xf32, #tpu.memory_space<vmem>>, %arg4: memref<1x8xf32, #tpu.memory_space<vmem>>, %arg5: memref<2x8xbf16, #tpu.memory_space<vmem>>) attributes {dimension_semantics = [#tpu.dimension_semantics<parallel>], iteration_bounds = array<i64: 1>, scalar_prefetch = 0 : i64, scratch_operands = 0 : i64, tpu.core_type = #tpu.core_type<tc>, window_params = [{transform_indices = @transform_0, window_bounds = array<i64: 2, 64>}, {pipeline_mode = #tpu.pipeline_mode<synchronous>, transform_indices = @transform_1, window_bounds = array<i64: 64, 8>}, {pipeline_mode = #tpu.pipeline_mode<synchronous>, transform_indices = @transform_2, window_bounds = array<i64: 1, 8>}, {pipeline_mode = #tpu.pipeline_mode<synchronous>, transform_indices = @transform_3, window_bounds = array<i64: 1, 8>}, {transform_indices = @transform_4, window_bounds = array<i64: 2, 8>}]} {
    %c0 = arith.constant 0 : index
    %c0_0 = arith.constant 0 : index
    %0 = vector.load %arg1[%c0, %c0_0] : memref<2x64xbf16, #tpu.memory_space<vmem>>, vector<2x64xbf16>
    %c0_1 = arith.constant 0 : index
    %c0_2 = arith.constant 0 : index
    %1 = vector.load %arg2[%c0_1, %c0_2] : memref<64x8xbf16, #tpu.memory_space<vmem>>, vector<64x8xbf16>
    %cst = arith.constant dense<0.000000e+00> : vector<2x8xf32>
    %2 = tpu.matmul %0, %1, %cst {dimension_numbers = #tpu.dot_dimension_numbers<[1], [0], [0], [1], [0, 0, 1, 1], [], []>} : vector<2x64xbf16>, vector<64x8xbf16>, vector<2x8xf32> -> vector<2x8xf32>
    %c0_3 = arith.constant 0 : index
    %c0_4 = arith.constant 0 : index
    %3 = vector.load %arg3[%c0_3, %c0_4] : memref<1x8xf32, #tpu.memory_space<vmem>>, vector<1x8xf32>
    %4 = vector.broadcast %3 : vector<1x8xf32> to vector<2x8xf32>
    %5 = arith.mulf %2, %4 : vector<2x8xf32>
    %c0_5 = arith.constant 0 : index
    %c0_6 = arith.constant 0 : index
    %6 = vector.load %arg4[%c0_5, %c0_6] : memref<1x8xf32, #tpu.memory_space<vmem>>, vector<1x8xf32>
    %7 = vector.broadcast %6 : vector<1x8xf32> to vector<2x8xf32>
    %8 = arith.addf %5, %7 : vector<2x8xf32>
    %cst_7 = arith.constant 0.000000e+00 : f32
    %9 = vector.broadcast %cst_7 : f32 to vector<2x8xf32>
    %10 = arith.maximumf %8, %9 : vector<2x8xf32>
    %11 = arith.truncf %10 : vector<2x8xf32> to vector<2x8xbf16>
    %c0_8 = arith.constant 0 : index
    %c0_9 = arith.constant 0 : index
    %12 = vector.load %arg5[%c0_8, %c0_9] : memref<2x8xbf16, #tpu.memory_space<vmem>>, vector<2x8xbf16>
    tpu.vector_store %arg5[%c0_8, %c0_9], %11 {strides = array<i32>} : memref<2x8xbf16, #tpu.memory_space<vmem>>, vector<2x8xbf16>,
    return
  }
  func.func @transform_0(%arg0: i32) -> (i32, i32) {
    %c0_i32 = arith.constant 0 : i32
    %c0_i32_0 = arith.constant 0 : i32
    return %arg0, %c0_i32 : i32, i32
  }
  func.func @transform_1(%arg0: i32) -> (i32, i32) {
    %c0_i32 = arith.constant 0 : i32
    %c0_i32_0 = arith.constant 0 : i32
    %c0_i32_1 = arith.constant 0 : i32
    return %c0_i32, %c0_i32_0 : i32, i32
  }
  func.func @transform_2(%arg0: i32) -> (i32, i32) {
    %c0_i32 = arith.constant 0 : i32
    %c0_i32_0 = arith.constant 0 : i32
    %c0_i32_1 = arith.constant 0 : i32
    return %c0_i32, %c0_i32_0 : i32, i32
  }
  func.func @transform_3(%arg0: i32) -> (i32, i32) {
    %c0_i32 = arith.constant 0 : i32
    %c0_i32_0 = arith.constant 0 : i32
    %c0_i32_1 = arith.constant 0 : i32
    return %c0_i32, %c0_i32_0 : i32, i32
  }
  func.func @transform_4(%arg0: i32) -> (i32, i32) {
    %c0_i32 = arith.constant 0 : i32
    %c0_i32_0 = arith.constant 0 : i32
    return %arg0, %c0_i32 : i32, i32
  }
}

module attributes {stable_mosaic.version = 11 : i64} {
  func.func @_mm_kernel(%arg0: i32, %arg1: memref<2x8xbf16, #tpu.memory_space<vmem>>, %arg2: memref<8x64xbf16, #tpu.memory_space<vmem>>, %arg3: memref<1x64xf32, #tpu.memory_space<vmem>>, %arg4: memref<1x64xf32, #tpu.memory_space<vmem>>, %arg5: memref<2x64xbf16, #tpu.memory_space<vmem>>) attributes {dimension_semantics = [#tpu.dimension_semantics<parallel>], iteration_bounds = array<i64: 1>, scalar_prefetch = 0 : i64, scratch_operands = 0 : i64, tpu.core_type = #tpu.core_type<tc>, window_params = [{transform_indices = @transform_0, window_bounds = array<i64: 2, 8>}, {pipeline_mode = #tpu.pipeline_mode<synchronous>, transform_indices = @transform_1, window_bounds = array<i64: 8, 64>}, {pipeline_mode = #tpu.pipeline_mode<synchronous>, transform_indices = @transform_2, window_bounds = array<i64: 1, 64>}, {pipeline_mode = #tpu.pipeline_mode<synchronous>, transform_indices = @transform_3, window_bounds = array<i64: 1, 64>}, {transform_indices = @transform_4, window_bounds = array<i64: 2, 64>}]} {
    %c0 = arith.constant 0 : index
    %c0_0 = arith.constant 0 : index
    %0 = vector.load %arg1[%c0, %c0_0] : memref<2x8xbf16, #tpu.memory_space<vmem>>, vector<2x8xbf16>
    %c0_1 = arith.constant 0 : index
    %c0_2 = arith.constant 0 : index
    %1 = vector.load %arg2[%c0_1, %c0_2] : memref<8x64xbf16, #tpu.memory_space<vmem>>, vector<8x64xbf16>
    %cst = arith.constant dense<0.000000e+00> : vector<2x64xf32>
    %2 = tpu.matmul %0, %1, %cst {dimension_numbers = #tpu.dot_dimension_numbers<[1], [0], [0], [1], [0, 0, 1, 1], [], []>} : vector<2x8xbf16>, vector<8x64xbf16>, vector<2x64xf32> -> vector<2x64xf32>
    %c0_3 = arith.constant 0 : index
    %c0_4 = arith.constant 0 : index
    %3 = vector.load %arg3[%c0_3, %c0_4] : memref<1x64xf32, #tpu.memory_space<vmem>>, vector<1x64xf32>
    %4 = vector.broadcast %3 : vector<1x64xf32> to vector<2x64xf32>
    %5 = arith.mulf %2, %4 : vector<2x64xf32>
    %c0_5 = arith.constant 0 : index
    %c0_6 = arith.constant 0 : index
    %6 = vector.load %arg4[%c0_5, %c0_6] : memref<1x64xf32, #tpu.memory_space<vmem>>, vector<1x64xf32>
    %7 = vector.broadcast %6 : vector<1x64xf32> to vector<2x64xf32>
    %8 = arith.addf %5, %7 : vector<2x64xf32>
    %9 = arith.negf %8 : vector<2x64xf32>
    %10 = math.exp %9 : vector<2x64xf32>
    %cst_7 = arith.constant 1.000000e+00 : f32
    %11 = vector.broadcast %cst_7 : f32 to vector<2x64xf32>
    %12 = arith.addf %11, %10 : vector<2x64xf32>
    %13 = arith.divf %11, %12 : vector<2x64xf32>
    %14 = arith.truncf %13 : vector<2x64xf32> to vector<2x64xbf16>
    %c0_8 = arith.constant 0 : index
    %c0_9 = arith.constant 0 : index
    %15 = vector.load %arg5[%c0_8, %c0_9] : memref<2x64xbf16, #tpu.memory_space<vmem>>, vector<2x64xbf16>
    tpu.vector_store %arg5[%c0_8, %c0_9], %14 {strides = array<i32>} : memref<2x64xbf16, #tpu.memory_space<vmem>>, vector<2x64xbf16>,
    return
  }
  func.func @transform_0(%arg0: i32) -> (i32, i32) {
    %c0_i32 = arith.constant 0 : i32
    %c0_i32_0 = arith.constant 0 : i32
    return %arg0, %c0_i32 : i32, i32
  }
  func.func @transform_1(%arg0: i32) -> (i32, i32) {
    %c0_i32 = arith.constant 0 : i32
    %c0_i32_0 = arith.constant 0 : i32
    %c0_i32_1 = arith.constant 0 : i32
    return %c0_i32, %c0_i32_0 : i32, i32
  }
  func.func @transform_2(%arg0: i32) -> (i32, i32) {
    %c0_i32 = arith.constant 0 : i32
    %c0_i32_0 = arith.constant 0 : i32
    %c0_i32_1 = arith.constant 0 : i32
    return %c0_i32, %c0_i32_0 : i32, i32
  }
  func.func @transform_3(%arg0: i32) -> (i32, i32) {
    %c0_i32 = arith.constant 0 : i32
    %c0_i32_0 = arith.constant 0 : i32
    %c0_i32_1 = arith.constant 0 : i32
    return %c0_i32, %c0_i32_0 : i32, i32
  }
  func.func @transform_4(%arg0: i32) -> (i32, i32) {
    %c0_i32 = arith.constant 0 : i32
    %c0_i32_0 = arith.constant 0 : i32
    return %arg0, %c0_i32 : i32, i32
  }
}

module attributes {stable_mosaic.version = 11 : i64} {
  func.func @_conv3_tail_kernel(%arg0: i32, %arg1: i32, %arg2: memref<1x1x64xbf16, #tpu.memory_space<vmem>>, %arg3: memref<1x1x64xbf16, #tpu.memory_space<vmem>>, %arg4: memref<64x64xbf16, #tpu.memory_space<vmem>>, %arg5: memref<1x64xf32, #tpu.memory_space<vmem>>, %arg6: memref<1x64xf32, #tpu.memory_space<vmem>>, %arg7: memref<1x1x64xbf16, #tpu.memory_space<vmem>>, %arg8: memref<1x1x64xbf16, #tpu.memory_space<vmem>>) attributes {dimension_semantics = [#tpu.dimension_semantics<parallel>, #tpu.dimension_semantics<parallel>], iteration_bounds = array<i64: 2, 1>, scalar_prefetch = 0 : i64, scratch_operands = 0 : i64, tpu.core_type = #tpu.core_type<tc>, window_params = [{transform_indices = @transform_0, window_bounds = array<i64: 1, 1, 64>}, {transform_indices = @transform_1, window_bounds = array<i64: 1, 1, 64>}, {pipeline_mode = #tpu.pipeline_mode<synchronous>, transform_indices = @transform_2, window_bounds = array<i64: 64, 64>}, {pipeline_mode = #tpu.pipeline_mode<synchronous>, transform_indices = @transform_3, window_bounds = array<i64: 1, 64>}, {pipeline_mode = #tpu.pipeline_mode<synchronous>, transform_indices = @transform_4, window_bounds = array<i64: 1, 64>}, {transform_indices = @transform_5, window_bounds = array<i64: 1, 1, 64>}, {transform_indices = @transform_6, window_bounds = array<i64: 1, 1, 64>}]} {
    %c0 = arith.constant 0 : index
    %c0_0 = arith.constant 0 : index
    %c0_1 = arith.constant 0 : index
    %0 = vector.load %arg2[%c0, %c0_0, %c0_1] : memref<1x1x64xbf16, #tpu.memory_space<vmem>>, vector<1x1x64xbf16>
    %1 = vector.shape_cast %0 : vector<1x1x64xbf16> to vector<1x64xbf16>
    %2 = arith.extf %1 : vector<1x64xbf16> to vector<1x64xf32>
    %c0_2 = arith.constant 0 : index
    %c0_3 = arith.constant 0 : index
    %c0_4 = arith.constant 0 : index
    %3 = vector.load %arg3[%c0_2, %c0_3, %c0_4] : memref<1x1x64xbf16, #tpu.memory_space<vmem>>, vector<1x1x64xbf16>
    %4 = vector.shape_cast %3 : vector<1x1x64xbf16> to vector<1x64xbf16>
    %5 = arith.extf %4 : vector<1x64xbf16> to vector<1x64xf32>
    %6 = arith.mulf %2, %5 : vector<1x64xf32>
    %7 = arith.truncf %6 : vector<1x64xf32> to vector<1x64xbf16>
    %c0_5 = arith.constant 0 : index
    %c0_6 = arith.constant 0 : index
    %8 = vector.load %arg4[%c0_5, %c0_6] : memref<64x64xbf16, #tpu.memory_space<vmem>>, vector<64x64xbf16>
    %cst = arith.constant dense<0.000000e+00> : vector<1x64xf32>
    %9 = tpu.matmul %7, %8, %cst {dimension_numbers = #tpu.dot_dimension_numbers<[1], [0], [0], [1], [0, 0, 1, 1], [], []>} : vector<1x64xbf16>, vector<64x64xbf16>, vector<1x64xf32> -> vector<1x64xf32>
    %c0_7 = arith.constant 0 : index
    %c0_8 = arith.constant 0 : index
    %10 = vector.load %arg5[%c0_7, %c0_8] : memref<1x64xf32, #tpu.memory_space<vmem>>, vector<1x64xf32>
    %11 = arith.mulf %9, %10 : vector<1x64xf32>
    %c0_9 = arith.constant 0 : index
    %c0_10 = arith.constant 0 : index
    %12 = vector.load %arg6[%c0_9, %c0_10] : memref<1x64xf32, #tpu.memory_space<vmem>>, vector<1x64xf32>
    %13 = arith.addf %11, %12 : vector<1x64xf32>
    %c0_11 = arith.constant 0 : index
    %c0_12 = arith.constant 0 : index
    %c0_13 = arith.constant 0 : index
    %14 = vector.load %arg7[%c0_11, %c0_12, %c0_13] : memref<1x1x64xbf16, #tpu.memory_space<vmem>>, vector<1x1x64xbf16>
    %15 = vector.shape_cast %14 : vector<1x1x64xbf16> to vector<1x64xbf16>
    %16 = arith.extf %15 : vector<1x64xbf16> to vector<1x64xf32>
    %17 = arith.addf %13, %16 : vector<1x64xf32>
    %cst_14 = arith.constant 0.000000e+00 : f32
    %18 = vector.broadcast %cst_14 : f32 to vector<1x64xf32>
    %19 = arith.maximumf %17, %18 : vector<1x64xf32>
    %20 = arith.truncf %19 : vector<1x64xf32> to vector<1x64xbf16>
    %c0_15 = arith.constant 0 : index
    %c0_16 = arith.constant 0 : index
    %c0_17 = arith.constant 0 : index
    %21 = vector.load %arg8[%c0_15, %c0_16, %c0_17] : memref<1x1x64xbf16, #tpu.memory_space<vmem>>, vector<1x1x64xbf16>
    %22 = vector.shape_cast %21 : vector<1x1x64xbf16> to vector<1x64xbf16>
    %23 = vector.shape_cast %20 : vector<1x64xbf16> to vector<1x1x64xbf16>
    tpu.vector_store %arg8[%c0_15, %c0_16, %c0_17], %23 {strides = array<i32>} : memref<1x1x64xbf16, #tpu.memory_space<vmem>>, vector<1x1x64xbf16>,
    return
  }
  func.func @transform_0(%arg0: i32, %arg1: i32) -> (i32, i32, i32) {
    %c0_i32 = arith.constant 0 : i32
    %c0_i32_0 = arith.constant 0 : i32
    return %arg0, %arg1, %c0_i32 : i32, i32, i32
  }
  func.func @transform_1(%arg0: i32, %arg1: i32) -> (i32, i32, i32) {
    %c0_i32 = arith.constant 0 : i32
    %c0_i32_0 = arith.constant 0 : i32
    %c0_i32_1 = arith.constant 0 : i32
    return %arg0, %c0_i32, %c0_i32_0 : i32, i32, i32
  }
  func.func @transform_2(%arg0: i32, %arg1: i32) -> (i32, i32) {
    %c0_i32 = arith.constant 0 : i32
    %c0_i32_0 = arith.constant 0 : i32
    %c0_i32_1 = arith.constant 0 : i32
    return %c0_i32, %c0_i32_0 : i32, i32
  }
  func.func @transform_3(%arg0: i32, %arg1: i32) -> (i32, i32) {
    %c0_i32 = arith.constant 0 : i32
    %c0_i32_0 = arith.constant 0 : i32
    %c0_i32_1 = arith.constant 0 : i32
    return %c0_i32, %c0_i32_0 : i32, i32
  }
  func.func @transform_4(%arg0: i32, %arg1: i32) -> (i32, i32) {
    %c0_i32 = arith.constant 0 : i32
    %c0_i32_0 = arith.constant 0 : i32
    %c0_i32_1 = arith.constant 0 : i32
    return %c0_i32, %c0_i32_0 : i32, i32
  }
  func.func @transform_5(%arg0: i32, %arg1: i32) -> (i32, i32, i32) {
    %c0_i32 = arith.constant 0 : i32
    %c0_i32_0 = arith.constant 0 : i32
    return %arg0, %arg1, %c0_i32 : i32, i32, i32
  }
  func.func @transform_6(%arg0: i32, %arg1: i32) -> (i32, i32, i32) {
    %c0_i32 = arith.constant 0 : i32
    %c0_i32_0 = arith.constant 0 : i32
    return %arg0, %arg1, %c0_i32 : i32, i32, i32
  }
}

module attributes {stable_mosaic.version = 11 : i64} {
  func.func @_mm_kernel(%arg0: i32, %arg1: memref<2x64xbf16, #tpu.memory_space<vmem>>, %arg2: memref<64x16xbf16, #tpu.memory_space<vmem>>, %arg3: memref<1x16xf32, #tpu.memory_space<vmem>>, %arg4: memref<1x16xf32, #tpu.memory_space<vmem>>, %arg5: memref<2x16xbf16, #tpu.memory_space<vmem>>) attributes {dimension_semantics = [#tpu.dimension_semantics<parallel>], iteration_bounds = array<i64: 1>, scalar_prefetch = 0 : i64, scratch_operands = 0 : i64, tpu.core_type = #tpu.core_type<tc>, window_params = [{transform_indices = @transform_0, window_bounds = array<i64: 2, 64>}, {pipeline_mode = #tpu.pipeline_mode<synchronous>, transform_indices = @transform_1, window_bounds = array<i64: 64, 16>}, {pipeline_mode = #tpu.pipeline_mode<synchronous>, transform_indices = @transform_2, window_bounds = array<i64: 1, 16>}, {pipeline_mode = #tpu.pipeline_mode<synchronous>, transform_indices = @transform_3, window_bounds = array<i64: 1, 16>}, {transform_indices = @transform_4, window_bounds = array<i64: 2, 16>}]} {
    %c0 = arith.constant 0 : index
    %c0_0 = arith.constant 0 : index
    %0 = vector.load %arg1[%c0, %c0_0] : memref<2x64xbf16, #tpu.memory_space<vmem>>, vector<2x64xbf16>
    %c0_1 = arith.constant 0 : index
    %c0_2 = arith.constant 0 : index
    %1 = vector.load %arg2[%c0_1, %c0_2] : memref<64x16xbf16, #tpu.memory_space<vmem>>, vector<64x16xbf16>
    %cst = arith.constant dense<0.000000e+00> : vector<2x16xf32>
    %2 = tpu.matmul %0, %1, %cst {dimension_numbers = #tpu.dot_dimension_numbers<[1], [0], [0], [1], [0, 0, 1, 1], [], []>} : vector<2x64xbf16>, vector<64x16xbf16>, vector<2x16xf32> -> vector<2x16xf32>
    %c0_3 = arith.constant 0 : index
    %c0_4 = arith.constant 0 : index
    %3 = vector.load %arg3[%c0_3, %c0_4] : memref<1x16xf32, #tpu.memory_space<vmem>>, vector<1x16xf32>
    %4 = vector.broadcast %3 : vector<1x16xf32> to vector<2x16xf32>
    %5 = arith.mulf %2, %4 : vector<2x16xf32>
    %c0_5 = arith.constant 0 : index
    %c0_6 = arith.constant 0 : index
    %6 = vector.load %arg4[%c0_5, %c0_6] : memref<1x16xf32, #tpu.memory_space<vmem>>, vector<1x16xf32>
    %7 = vector.broadcast %6 : vector<1x16xf32> to vector<2x16xf32>
    %8 = arith.addf %5, %7 : vector<2x16xf32>
    %cst_7 = arith.constant 0.000000e+00 : f32
    %9 = vector.broadcast %cst_7 : f32 to vector<2x16xf32>
    %10 = arith.maximumf %8, %9 : vector<2x16xf32>
    %11 = arith.truncf %10 : vector<2x16xf32> to vector<2x16xbf16>
    %c0_8 = arith.constant 0 : index
    %c0_9 = arith.constant 0 : index
    %12 = vector.load %arg5[%c0_8, %c0_9] : memref<2x16xbf16, #tpu.memory_space<vmem>>, vector<2x16xbf16>
    tpu.vector_store %arg5[%c0_8, %c0_9], %11 {strides = array<i32>} : memref<2x16xbf16, #tpu.memory_space<vmem>>, vector<2x16xbf16>,
    return
  }
  func.func @transform_0(%arg0: i32) -> (i32, i32) {
    %c0_i32 = arith.constant 0 : i32
    %c0_i32_0 = arith.constant 0 : i32
    return %arg0, %c0_i32 : i32, i32
  }
  func.func @transform_1(%arg0: i32) -> (i32, i32) {
    %c0_i32 = arith.constant 0 : i32
    %c0_i32_0 = arith.constant 0 : i32
    %c0_i32_1 = arith.constant 0 : i32
    return %c0_i32, %c0_i32_0 : i32, i32
  }
  func.func @transform_2(%arg0: i32) -> (i32, i32) {
    %c0_i32 = arith.constant 0 : i32
    %c0_i32_0 = arith.constant 0 : i32
    %c0_i32_1 = arith.constant 0 : i32
    return %c0_i32, %c0_i32_0 : i32, i32
  }
  func.func @transform_3(%arg0: i32) -> (i32, i32) {
    %c0_i32 = arith.constant 0 : i32
    %c0_i32_0 = arith.constant 0 : i32
    %c0_i32_1 = arith.constant 0 : i32
    return %c0_i32, %c0_i32_0 : i32, i32
  }
  func.func @transform_4(%arg0: i32) -> (i32, i32) {
    %c0_i32 = arith.constant 0 : i32
    %c0_i32_0 = arith.constant 0 : i32
    return %arg0, %c0_i32 : i32, i32
  }
}

module attributes {stable_mosaic.version = 11 : i64} {
  func.func @_mm_kernel(%arg0: i32, %arg1: memref<2x64xbf16, #tpu.memory_space<vmem>>, %arg2: memref<64x64xbf16, #tpu.memory_space<vmem>>, %arg3: memref<1x64xf32, #tpu.memory_space<vmem>>, %arg4: memref<1x64xf32, #tpu.memory_space<vmem>>, %arg5: memref<2x64xbf16, #tpu.memory_space<vmem>>) attributes {dimension_semantics = [#tpu.dimension_semantics<parallel>], iteration_bounds = array<i64: 1>, scalar_prefetch = 0 : i64, scratch_operands = 0 : i64, tpu.core_type = #tpu.core_type<tc>, window_params = [{transform_indices = @transform_0, window_bounds = array<i64: 2, 64>}, {pipeline_mode = #tpu.pipeline_mode<synchronous>, transform_indices = @transform_1, window_bounds = array<i64: 64, 64>}, {pipeline_mode = #tpu.pipeline_mode<synchronous>, transform_indices = @transform_2, window_bounds = array<i64: 1, 64>}, {pipeline_mode = #tpu.pipeline_mode<synchronous>, transform_indices = @transform_3, window_bounds = array<i64: 1, 64>}, {transform_indices = @transform_4, window_bounds = array<i64: 2, 64>}]} {
    %c0 = arith.constant 0 : index
    %c0_0 = arith.constant 0 : index
    %0 = vector.load %arg1[%c0, %c0_0] : memref<2x64xbf16, #tpu.memory_space<vmem>>, vector<2x64xbf16>
    %c0_1 = arith.constant 0 : index
    %c0_2 = arith.constant 0 : index
    %1 = vector.load %arg2[%c0_1, %c0_2] : memref<64x64xbf16, #tpu.memory_space<vmem>>, vector<64x64xbf16>
    %cst = arith.constant dense<0.000000e+00> : vector<2x64xf32>
    %2 = tpu.matmul %0, %1, %cst {dimension_numbers = #tpu.dot_dimension_numbers<[1], [0], [0], [1], [0, 0, 1, 1], [], []>} : vector<2x64xbf16>, vector<64x64xbf16>, vector<2x64xf32> -> vector<2x64xf32>
    %c0_3 = arith.constant 0 : index
    %c0_4 = arith.constant 0 : index
    %3 = vector.load %arg3[%c0_3, %c0_4] : memref<1x64xf32, #tpu.memory_space<vmem>>, vector<1x64xf32>
    %4 = vector.broadcast %3 : vector<1x64xf32> to vector<2x64xf32>
    %5 = arith.mulf %2, %4 : vector<2x64xf32>
    %c0_5 = arith.constant 0 : index
    %c0_6 = arith.constant 0 : index
    %6 = vector.load %arg4[%c0_5, %c0_6] : memref<1x64xf32, #tpu.memory_space<vmem>>, vector<1x64xf32>
    %7 = vector.broadcast %6 : vector<1x64xf32> to vector<2x64xf32>
    %8 = arith.addf %5, %7 : vector<2x64xf32>
    %cst_7 = arith.constant 0.000000e+00 : f32
    %9 = vector.broadcast %cst_7 : f32 to vector<2x64xf32>
    %10 = arith.maximumf %8, %9 : vector<2x64xf32>
    %11 = arith.truncf %10 : vector<2x64xf32> to vector<2x64xbf16>
    %c0_8 = arith.constant 0 : index
    %c0_9 = arith.constant 0 : index
    %12 = vector.load %arg5[%c0_8, %c0_9] : memref<2x64xbf16, #tpu.memory_space<vmem>>, vector<2x64xbf16>
    tpu.vector_store %arg5[%c0_8, %c0_9], %11 {strides = array<i32>} : memref<2x64xbf16, #tpu.memory_space<vmem>>, vector<2x64xbf16>,
    return
  }
  func.func @transform_0(%arg0: i32) -> (i32, i32) {
    %c0_i32 = arith.constant 0 : i32
    %c0_i32_0 = arith.constant 0 : i32
    return %arg0, %c0_i32 : i32, i32
  }
  func.func @transform_1(%arg0: i32) -> (i32, i32) {
    %c0_i32 = arith.constant 0 : i32
    %c0_i32_0 = arith.constant 0 : i32
    %c0_i32_1 = arith.constant 0 : i32
    return %c0_i32, %c0_i32_0 : i32, i32
  }
  func.func @transform_2(%arg0: i32) -> (i32, i32) {
    %c0_i32 = arith.constant 0 : i32
    %c0_i32_0 = arith.constant 0 : i32
    %c0_i32_1 = arith.constant 0 : i32
    return %c0_i32, %c0_i32_0 : i32, i32
  }
  func.func @transform_3(%arg0: i32) -> (i32, i32) {
    %c0_i32 = arith.constant 0 : i32
    %c0_i32_0 = arith.constant 0 : i32
    %c0_i32_1 = arith.constant 0 : i32
    return %c0_i32, %c0_i32_0 : i32, i32
  }
  func.func @transform_4(%arg0: i32) -> (i32, i32) {
    %c0_i32 = arith.constant 0 : i32
    %c0_i32_0 = arith.constant 0 : i32
    return %arg0, %c0_i32 : i32, i32
  }
}

module attributes {stable_mosaic.version = 11 : i64} {
  func.func @_mm_kernel(%arg0: i32, %arg1: memref<2x16xbf16, #tpu.memory_space<vmem>>, %arg2: memref<16x64xbf16, #tpu.memory_space<vmem>>, %arg3: memref<1x64xf32, #tpu.memory_space<vmem>>, %arg4: memref<1x64xf32, #tpu.memory_space<vmem>>, %arg5: memref<2x64xbf16, #tpu.memory_space<vmem>>) attributes {dimension_semantics = [#tpu.dimension_semantics<parallel>], iteration_bounds = array<i64: 1>, scalar_prefetch = 0 : i64, scratch_operands = 0 : i64, tpu.core_type = #tpu.core_type<tc>, window_params = [{transform_indices = @transform_0, window_bounds = array<i64: 2, 16>}, {pipeline_mode = #tpu.pipeline_mode<synchronous>, transform_indices = @transform_1, window_bounds = array<i64: 16, 64>}, {pipeline_mode = #tpu.pipeline_mode<synchronous>, transform_indices = @transform_2, window_bounds = array<i64: 1, 64>}, {pipeline_mode = #tpu.pipeline_mode<synchronous>, transform_indices = @transform_3, window_bounds = array<i64: 1, 64>}, {transform_indices = @transform_4, window_bounds = array<i64: 2, 64>}]} {
    %c0 = arith.constant 0 : index
    %c0_0 = arith.constant 0 : index
    %0 = vector.load %arg1[%c0, %c0_0] : memref<2x16xbf16, #tpu.memory_space<vmem>>, vector<2x16xbf16>
    %c0_1 = arith.constant 0 : index
    %c0_2 = arith.constant 0 : index
    %1 = vector.load %arg2[%c0_1, %c0_2] : memref<16x64xbf16, #tpu.memory_space<vmem>>, vector<16x64xbf16>
    %cst = arith.constant dense<0.000000e+00> : vector<2x64xf32>
    %2 = tpu.matmul %0, %1, %cst {dimension_numbers = #tpu.dot_dimension_numbers<[1], [0], [0], [1], [0, 0, 1, 1], [], []>} : vector<2x16xbf16>, vector<16x64xbf16>, vector<2x64xf32> -> vector<2x64xf32>
    %c0_3 = arith.constant 0 : index
    %c0_4 = arith.constant 0 : index
    %3 = vector.load %arg3[%c0_3, %c0_4] : memref<1x64xf32, #tpu.memory_space<vmem>>, vector<1x64xf32>
    %4 = vector.broadcast %3 : vector<1x64xf32> to vector<2x64xf32>
    %5 = arith.mulf %2, %4 : vector<2x64xf32>
    %c0_5 = arith.constant 0 : index
    %c0_6 = arith.constant 0 : index
    %6 = vector.load %arg4[%c0_5, %c0_6] : memref<1x64xf32, #tpu.memory_space<vmem>>, vector<1x64xf32>
    %7 = vector.broadcast %6 : vector<1x64xf32> to vector<2x64xf32>
    %8 = arith.addf %5, %7 : vector<2x64xf32>
    %9 = arith.negf %8 : vector<2x64xf32>
    %10 = math.exp %9 : vector<2x64xf32>
    %cst_7 = arith.constant 1.000000e+00 : f32
    %11 = vector.broadcast %cst_7 : f32 to vector<2x64xf32>
    %12 = arith.addf %11, %10 : vector<2x64xf32>
    %13 = arith.divf %11, %12 : vector<2x64xf32>
    %14 = arith.truncf %13 : vector<2x64xf32> to vector<2x64xbf16>
    %c0_8 = arith.constant 0 : index
    %c0_9 = arith.constant 0 : index
    %15 = vector.load %arg5[%c0_8, %c0_9] : memref<2x64xbf16, #tpu.memory_space<vmem>>, vector<2x64xbf16>
    tpu.vector_store %arg5[%c0_8, %c0_9], %14 {strides = array<i32>} : memref<2x64xbf16, #tpu.memory_space<vmem>>, vector<2x64xbf16>,
    return
  }
  func.func @transform_0(%arg0: i32) -> (i32, i32) {
    %c0_i32 = arith.constant 0 : i32
    %c0_i32_0 = arith.constant 0 : i32
    return %arg0, %c0_i32 : i32, i32
  }
  func.func @transform_1(%arg0: i32) -> (i32, i32) {
    %c0_i32 = arith.constant 0 : i32
    %c0_i32_0 = arith.constant 0 : i32
    %c0_i32_1 = arith.constant 0 : i32
    return %c0_i32, %c0_i32_0 : i32, i32
  }
  func.func @transform_2(%arg0: i32) -> (i32, i32) {
    %c0_i32 = arith.constant 0 : i32
    %c0_i32_0 = arith.constant 0 : i32
    %c0_i32_1 = arith.constant 0 : i32
    return %c0_i32, %c0_i32_0 : i32, i32
  }
  func.func @transform_3(%arg0: i32) -> (i32, i32) {
    %c0_i32 = arith.constant 0 : i32
    %c0_i32_0 = arith.constant 0 : i32
    %c0_i32_1 = arith.constant 0 : i32
    return %c0_i32, %c0_i32_0 : i32, i32
  }
  func.func @transform_4(%arg0: i32) -> (i32, i32) {
    %c0_i32 = arith.constant 0 : i32
    %c0_i32_0 = arith.constant 0 : i32
    return %arg0, %c0_i32 : i32, i32
  }
}

module attributes {stable_mosaic.version = 11 : i64} {
  func.func @_mm_kernel(%arg0: i32, %arg1: memref<2x64xbf16, #tpu.memory_space<vmem>>, %arg2: memref<64x10xbf16, #tpu.memory_space<vmem>>, %arg3: memref<1x10xf32, #tpu.memory_space<vmem>>, %arg4: memref<1x10xf32, #tpu.memory_space<vmem>>, %arg5: memref<2x10xf32, #tpu.memory_space<vmem>>) attributes {dimension_semantics = [#tpu.dimension_semantics<parallel>], iteration_bounds = array<i64: 1>, scalar_prefetch = 0 : i64, scratch_operands = 0 : i64, tpu.core_type = #tpu.core_type<tc>, window_params = [{transform_indices = @transform_0, window_bounds = array<i64: 2, 64>}, {pipeline_mode = #tpu.pipeline_mode<synchronous>, transform_indices = @transform_1, window_bounds = array<i64: 64, 10>}, {pipeline_mode = #tpu.pipeline_mode<synchronous>, transform_indices = @transform_2, window_bounds = array<i64: 1, 10>}, {pipeline_mode = #tpu.pipeline_mode<synchronous>, transform_indices = @transform_3, window_bounds = array<i64: 1, 10>}, {transform_indices = @transform_4, window_bounds = array<i64: 2, 10>}]} {
    %c0 = arith.constant 0 : index
    %c0_0 = arith.constant 0 : index
    %0 = vector.load %arg1[%c0, %c0_0] : memref<2x64xbf16, #tpu.memory_space<vmem>>, vector<2x64xbf16>
    %c0_1 = arith.constant 0 : index
    %c0_2 = arith.constant 0 : index
    %1 = vector.load %arg2[%c0_1, %c0_2] : memref<64x10xbf16, #tpu.memory_space<vmem>>, vector<64x10xbf16>
    %cst = arith.constant dense<0.000000e+00> : vector<2x10xf32>
    %2 = tpu.matmul %0, %1, %cst {dimension_numbers = #tpu.dot_dimension_numbers<[1], [0], [0], [1], [0, 0, 1, 1], [], []>} : vector<2x64xbf16>, vector<64x10xbf16>, vector<2x10xf32> -> vector<2x10xf32>
    %c0_3 = arith.constant 0 : index
    %c0_4 = arith.constant 0 : index
    %3 = vector.load %arg3[%c0_3, %c0_4] : memref<1x10xf32, #tpu.memory_space<vmem>>, vector<1x10xf32>
    %4 = vector.broadcast %3 : vector<1x10xf32> to vector<2x10xf32>
    %5 = arith.mulf %2, %4 : vector<2x10xf32>
    %c0_5 = arith.constant 0 : index
    %c0_6 = arith.constant 0 : index
    %6 = vector.load %arg4[%c0_5, %c0_6] : memref<1x10xf32, #tpu.memory_space<vmem>>, vector<1x10xf32>
    %7 = vector.broadcast %6 : vector<1x10xf32> to vector<2x10xf32>
    %8 = arith.addf %5, %7 : vector<2x10xf32>
    %c0_7 = arith.constant 0 : index
    %c0_8 = arith.constant 0 : index
    %9 = vector.load %arg5[%c0_7, %c0_8] : memref<2x10xf32, #tpu.memory_space<vmem>>, vector<2x10xf32>
    tpu.vector_store %arg5[%c0_7, %c0_8], %8 {strides = array<i32>} : memref<2x10xf32, #tpu.memory_space<vmem>>, vector<2x10xf32>,
    return
  }
  func.func @transform_0(%arg0: i32) -> (i32, i32) {
    %c0_i32 = arith.constant 0 : i32
    %c0_i32_0 = arith.constant 0 : i32
    return %arg0, %c0_i32 : i32, i32
  }
  func.func @transform_1(%arg0: i32) -> (i32, i32) {
    %c0_i32 = arith.constant 0 : i32
    %c0_i32_0 = arith.constant 0 : i32
    %c0_i32_1 = arith.constant 0 : i32
    return %c0_i32, %c0_i32_0 : i32, i32
  }
  func.func @transform_2(%arg0: i32) -> (i32, i32) {
    %c0_i32 = arith.constant 0 : i32
    %c0_i32_0 = arith.constant 0 : i32
    %c0_i32_1 = arith.constant 0 : i32
    return %c0_i32, %c0_i32_0 : i32, i32
  }
  func.func @transform_3(%arg0: i32) -> (i32, i32) {
    %c0_i32 = arith.constant 0 : i32
    %c0_i32_0 = arith.constant 0 : i32
    %c0_i32_1 = arith.constant 0 : i32
    return %c0_i32, %c0_i32_0 : i32, i32
  }
  func.func @transform_4(%arg0: i32) -> (i32, i32) {
    %c0_i32 = arith.constant 0 : i32
    %c0_i32_0 = arith.constant 0 : i32
    return %arg0, %c0_i32 : i32, i32
  }
}

</mosaic_0001>

<bundles_post_ra>
// kernel: _lambda_.47
= control target key start
LH: loop header
LB: loop body
LE: loop exit
PB: predicated region body
PF: predicated region fallthrough
CT: control target
= control target key end

     0   :  { %s728_s15 = smov 0   ;;  %s839_s0 = inlined_call_operand.vmem [shape: bf16[512,16], index: 0, kind: input, shape index: {}]   ;;  %s840_s1 = inlined_call_operand.vmem [shape: bf16[16,8], index: 1, kind: input, shape index: {}]   ;;  %s841_s2 = inlined_call_operand.vmem [shape: f32[1,8], index: 2, kind: input, shape index: {}]   ;;  %s842_s3 = inlined_call_operand.vmem [shape: f32[1,8], index: 3, kind: input, shape index: {}]   ;;  %s843_s4 = inlined_call_operand.vmem [shape: bf16[512,8], index: 4, kind: output, shape index: {}]  }
   0x1 LB: > { %s587_s16 = sadd.s32 4294967295, %s701_s15   ;;  %p591_p0 = scmp.ge.s32.totalorder %s701_s15, 1  ;;  %s701_s15 = sphi %s728_s15, %s14_s15  }
   0x2   : > { %p163_p1 = scmp.lt.s32.totalorder %s701_s15, 5 }
   0x4   : > { %p164_p2 = pnand %p591_p0, %p163_p1 }
   0x5   : > { %s592_s19 = sshll.u32 (!%p164_p2), %s587_s16, 4 }
   0x6   : > { %167 = sbr.rel (%p164_p2) target bundleno = 233 (0xe9), region = 36  ;;  %p190_p3 = scmp.lt.s32.totalorder (!%p164_p2), %s592_s19, 63 }
   0xb   : > { %v686_v0 = vld [vmem:[%s840_s1] sm:$0xff]   ;;  %s845_s19 = smov (!%p190_p3, %s592_s19), 63  ;;  %vm266_vm0 = vcmask 130048   ;;  %vm514_vm1 = vcmask 60416  }
   0xc   : > { %658 = vmatprep.subr.bf16.mxu0 %v686_v0  ;;  %676 = vmatprep.subr.bf16.mxu1 %v686_v0  ;;  %s593_s20 = sshll.u32 %s845_s19, 2  ;;  %v758_v9 = vld [vmem:[%s841_s2] ss:$0 sm:$0xff] }
   0xd   : > { %659 = vmatpush3.bf16.msra.mxu0 %v686_v0  ;;  %677 = vmatpush3.bf16.msra.mxu1 %v686_v0  ;;  %s193_s23 = scalar_lea.vmem %s839_s0, %s593_s20  ;;  %v763_v11 = vld [vmem:[%s842_s3] ss:$0 sm:$0xff]  ;;  %s778_s30 = scalar_lea.vmem %s843_s4, %s593_s20 }
   0xe   : > { %v687_v1 = vld [vmem:[%s193_s23] sm:$0xff]   ;;  %v689_v3 = vld [vmem:[%s193_s23 + $0x8] sm:$0xff]   ;;  %v691_v5 = vld [vmem:[%s193_s23 + $0x10] sm:$0xff]  }
   0xf   : > { %v688_v2 = vld [vmem:[%s193_s23 + $0x20] sm:$0xff]   ;;  %660 = vmatprep.mubr.msk.bf16.mxu0 %vm266_vm0, %v687_v1  ;;  %v690_v4 = vld [vmem:[%s193_s23 + $0x28] sm:$0xff]   ;;  %v692_v6 = vld [vmem:[%s193_s23 + $0x30] sm:$0xff]  }
  0x10   : > { %668 = vmatprep.mubr.msk.bf16.mxu1 %vm266_vm0, %v688_v2  ;;  %661 = vmatmul.mubr.msk.bf16.vlgmr.msra.gmra.mxu0 %vm266_vm0, %v689_v3  ;;  %v693_v7 = vld [vmem:[%s193_s23 + $0x18] sm:$0xff]  }
  0x11   : > { %669 = vmatmul.mubr.msk.bf16.vlgmr.msra.gmra.mxu1 %vm266_vm0, %v690_v4  ;;  %664 = vmatprep.mubr.msk.bf16.mxu0 %vm266_vm0, %v691_v5  ;;  %v694_v8 = vld [vmem:[%s193_s23 + $0x38] sm:$0xff]  }
  0x12   : > { %672 = vmatprep.mubr.msk.bf16.mxu1 %vm266_vm0, %v692_v6 }
  0x18   : > { %665 = vmatmul.mubr.msk.bf16.gmra.mxu0 %vm266_vm0, %v693_v7 }
  0x19   : > { %673 = vmatmul.mubr.msk.bf16.gmra.mxu1 %vm266_vm0, %v694_v8 }
  0xd0   : > { %v662_v10 = vpop.f32.mrf.mxu0 }
  0xd1   : > { %v397_v12 = vmul.f32 %v662_v10, %v758_v9  ;;  %v670_v13 = vpop.f32.mrf.mxu1 }
  0xd2   : > { %v405_v14 = vmul.f32 %v670_v13, %v758_v9  ;;  %v325_v15 = vpop.f32.mrf.mxu0 }
  0xd3   : > { %v420_v16 = vadd.f32 %v763_v11, %v397_v12  ;;  %v395_v17 = vmul.f32 %v758_v9, %v325_v15  ;;  %v357_v18 = vpop.f32.mrf.mxu1 }
  0xd4   : > { %v428_v19 = vadd.f32 %v763_v11, %v405_v14  ;;  %v403_v20 = vmul.f32 %v758_v9, %v357_v18  ;;  %v663_v21 = vpop.f32.mrf.mxu0 }
  0xd5   : > { %v436_v22 = vmax.f32 %v420_v16, 0.0  ;;  %v418_v23 = vadd.f32 %v763_v11, %v395_v17  ;;  %v398_v24 = vmul.f32 %v663_v21, %v758_v9  ;;  %v671_v25 = vpop.f32.mrf.mxu1 }
  0xd6   : > { %v444_v26 = vmax.f32 %v428_v19, 0.0  ;;  %v426_v27 = vadd.f32 %v763_v11, %v403_v20  ;;  %v406_v28 = vmul.f32 %v671_v25, %v758_v9  ;;  %v328_v29 = vpop.f32.mrf.mxu0 }
  0xd7   : > { %v635_v30 = vpack.c.bf16 %v436_v22, %v436_v22  ;;  %v434_v31 = vmax.f32 %v418_v23, 0.0  ;;  %v421_v32 = vadd.f32 %v763_v11, %v398_v24  ;;  %v396_v33 = vmul.f32 %v758_v9, %v328_v29  ;;  %v360_v34 = vpop.f32.mrf.mxu1 }
  0xd8   : > { %v643_v35 = vpack.c.bf16 %v444_v26, %v444_v26  ;;  %v442_v36 = vmax.f32 %v426_v27, 0.0  ;;  %v429_v37 = vadd.f32 %v763_v11, %v406_v28  ;;  %v404_v38 = vmul.f32 %v758_v9, %v360_v34  ;;  %v666_v39 = vpop.f32.mrf.mxu0 }
  0xd9   : > { %517 = vst.msk [vmem:[%s778_s30 + $0x8] sm:$0xf] %vm514_vm1, %v635_v30  ;;  %v633_v40 = vpack.c.bf16 %v434_v31, %v434_v31  ;;  %v437_v41 = vmax.f32 %v421_v32, 0.0  ;;  %v419_v42 = vadd.f32 %v763_v11, %v396_v33  ;;  %v401_v43 = vmul.f32 %v666_v39, %v758_v9  ;;  %v674_v44 = vpop.f32.mrf.mxu1 }
  0xda   : > { %525 = vst.msk [vmem:[%s778_s30 + $0x28] sm:$0xf] %vm514_vm1, %v643_v35  ;;  %v641_v45 = vpack.c.bf16 %v442_v36, %v442_v36  ;;  %v445_v46 = vmax.f32 %v429_v37, 0.0  ;;  %v427_v47 = vadd.f32 %v763_v11, %v404_v38  ;;  %v409_v48 = vmul.f32 %v674_v44, %v758_v9  ;;  %v341_v49 = vpop.f32.mrf.mxu0 }
  0xdb   : > { %515 = vst.msk [vmem:[%s778_s30] sm:$0xf] %vm514_vm1, %v633_v40  ;;  %v636_v50 = vpack.c.bf16 %v437_v41, %v437_v41  ;;  %v435_v51 = vmax.f32 %v419_v42, 0.0  ;;  %v424_v52 = vadd.f32 %v763_v11, %v401_v43  ;;  %v399_v53 = vmul.f32 %v758_v9, %v341_v49  ;;  %v373_v54 = vpop.f32.mrf.mxu1 }
  0xdc   : > { %523 = vst.msk [vmem:[%s778_s30 + $0x20] sm:$0xf] %vm514_vm1, %v641_v45  ;;  %v644_v55 = vpack.c.bf16 %v445_v46, %v445_v46  ;;  %v443_v56 = vmax.f32 %v427_v47, 0.0  ;;  %v432_v57 = vadd.f32 %v763_v11, %v409_v48  ;;  %v407_v58 = vmul.f32 %v758_v9, %v373_v54  ;;  %v667_v59 = vpop.f32.mrf.mxu0 }
  0xdd   : > { %518 = vst.msk [vmem:[%s778_s30 + $0xc] sm:$0xf] %vm514_vm1, %v636_v50  ;;  %v634_v60 = vpack.c.bf16 %v435_v51, %v435_v51  ;;  %v440_v61 = vmax.f32 %v424_v52, 0.0  ;;  %v422_v62 = vadd.f32 %v763_v11, %v399_v53  ;;  %v402_v63 = vmul.f32 %v667_v59, %v758_v9  ;;  %v675_v0 = vpop.f32.mrf.mxu1 }
  0xde   : > { %526 = vst.msk [vmem:[%s778_s30 + $0x2c] sm:$0xf] %vm514_vm1, %v644_v55  ;;  %v642_v1 = vpack.c.bf16 %v443_v56, %v443_v56  ;;  %v448_v2 = vmax.f32 %v432_v57, 0.0  ;;  %v430_v3 = vadd.f32 %v763_v11, %v407_v58  ;;  %v410_v4 = vmul.f32 %v675_v0, %v758_v9  ;;  %v344_v5 = vpop.f32.mrf.mxu0 }
  0xdf   : > { %516 = vst.msk [vmem:[%s778_s30 + $0x4] sm:$0xf] %vm514_vm1, %v634_v60  ;;  %v639_v6 = vpack.c.bf16 %v440_v61, %v440_v61  ;;  %v438_v7 = vmax.f32 %v422_v62, 0.0  ;;  %v425_v8 = vadd.f32 %v763_v11, %v402_v63  ;;  %v400_v10 = vmul.f32 %v758_v9, %v344_v5  ;;  %v376_v12 = vpop.f32.mrf.mxu1 }
  0xe0   : > { %524 = vst.msk [vmem:[%s778_s30 + $0x24] sm:$0xf] %vm514_vm1, %v642_v1  ;;  %v647_v13 = vpack.c.bf16 %v448_v2, %v448_v2  ;;  %v446_v14 = vmax.f32 %v430_v3, 0.0  ;;  %v433_v15 = vadd.f32 %v763_v11, %v410_v4  ;;  %v408_v16 = vmul.f32 %v758_v9, %v376_v12 }
  0xe1   : > { %521 = vst.msk [vmem:[%s778_s30 + $0x18] sm:$0xf] %vm514_vm1, %v639_v6  ;;  %v637_v17 = vpack.c.bf16 %v438_v7, %v438_v7  ;;  %v441_v18 = vmax.f32 %v425_v8, 0.0  ;;  %v423_v19 = vadd.f32 %v763_v11, %v400_v10 }
  0xe2   : > { %529 = vst.msk [vmem:[%s778_s30 + $0x38] sm:$0xf] %vm514_vm1, %v647_v13  ;;  %v645_v20 = vpack.c.bf16 %v446_v14, %v446_v14  ;;  %v449_v21 = vmax.f32 %v433_v15, 0.0  ;;  %v431_v22 = vadd.f32 %v763_v11, %v408_v16 }
  0xe3   : > { %519 = vst.msk [vmem:[%s778_s30 + $0x10] sm:$0xf] %vm514_vm1, %v637_v17  ;;  %v640_v23 = vpack.c.bf16 %v441_v18, %v441_v18  ;;  %v439_v24 = vmax.f32 %v423_v19, 0.0 }
  0xe4   : > { %527 = vst.msk [vmem:[%s778_s30 + $0x30] sm:$0xf] %vm514_vm1, %v645_v20  ;;  %v648_v9 = vpack.c.bf16 %v449_v21, %v449_v21  ;;  %v447_v25 = vmax.f32 %v431_v22, 0.0 }
  0xe5   : > { %522 = vst.msk [vmem:[%s778_s30 + $0x1c] sm:$0xf] %vm514_vm1, %v640_v23  ;;  %v638_v26 = vpack.c.bf16 %v439_v24, %v439_v24 }
  0xe6   : > { %530 = vst.msk [vmem:[%s778_s30 + $0x3c] sm:$0xf] %vm514_vm1, %v648_v9  ;;  %v646_v27 = vpack.c.bf16 %v447_v25, %v447_v25 }
  0xe7   : > { %520 = vst.msk [vmem:[%s778_s30 + $0x14] sm:$0xf] %vm514_vm1, %v638_v26 }
  0xe8   : > { %528 = vst.msk [vmem:[%s778_s30 + $0x34] sm:$0xf] %vm514_vm1, %v646_v27 }
  0xe9 PF: > { %s14_s15 = sadd.s32 1, %s701_s15  }
  0xea   : > { %p11_p4 = scmp.ge.s32.totalorder %s14_s15, 6  }
  0xec   :  { %13 = sbr.rel (!%p11_p4) target bundleno = 1 (0x1), region = 66 }

// kernel: _lambda_.51
= control target key start
LH: loop header
LB: loop body
LE: loop exit
PB: predicated region body
PF: predicated region fallthrough
CT: control target
= control target key end

     0   :  { %vm82_vm0 = vcmask 130048   ;;  %vm314_vm1 = vcmask 60416   ;;  %s590_s1 = inlined_call_operand.vmem [shape: bf16[16,8], index: 1, kind: input, shape index: {}]   ;;  %s591_s0 = inlined_call_operand.vmem [shape: bf16[128,16], index: 0, kind: input, shape index: {}]   ;;  %s592_s2 = inlined_call_operand.vmem [shape: f32[1,8], index: 2, kind: input, shape index: {}]   ;;  %s593_s3 = inlined_call_operand.vmem [shape: f32[1,8], index: 3, kind: input, shape index: {}]   ;;  %s594_s4 = inlined_call_operand.vmem [shape: bf16[128,8], index: 4, kind: output, shape index: {}]  }
   0x1   :  { %v415_v0 = vld [vmem:[%s590_s1] sm:$0xff]   ;;  %v418_v3 = vld [vmem:[%s591_s0 + $0x8] sm:$0xff]   ;;  %v420_v5 = vld [vmem:[%s591_s0 + $0x10] sm:$0xff]  }
   0x2   :  { %v416_v1 = vld [vmem:[%s591_s0] sm:$0xff]   ;;  %395 = vmatprep.subr.bf16.mxu0 %v415_v0  ;;  %413 = vmatprep.subr.bf16.mxu1 %v415_v0  ;;  %v419_v4 = vld [vmem:[%s591_s0 + $0x28] sm:$0xff]   ;;  %v421_v6 = vld [vmem:[%s591_s0 + $0x30] sm:$0xff]  }
   0x3   :  { %v417_v2 = vld [vmem:[%s591_s0 + $0x20] sm:$0xff]   ;;  %396 = vmatpush3.bf16.msra.mxu0 %v415_v0  ;;  %414 = vmatpush3.bf16.msra.mxu1 %v415_v0  ;;  %v422_v7 = vld [vmem:[%s591_s0 + $0x18] sm:$0xff]  }
   0x4   :  { %397 = vmatprep.mubr.msk.bf16.mxu0 %vm82_vm0, %v416_v1  ;;  %405 = vmatprep.mubr.msk.bf16.mxu1 %vm82_vm0, %v417_v2  ;;  %v423_v8 = vld [vmem:[%s591_s0 + $0x38] sm:$0xff]   ;;  %v487_v9 = vld [vmem:[%s592_s2] ss:$0 sm:$0xff] }
   0x5   :  { %v492_v11 = vld [vmem:[%s593_s3] ss:$0 sm:$0xff] }
   0x6   :  { %398 = vmatmul.mubr.msk.bf16.vlgmr.msra.gmra.mxu0 %vm82_vm0, %v418_v3  ;;  %406 = vmatmul.mubr.msk.bf16.vlgmr.msra.gmra.mxu1 %vm82_vm0, %v419_v4 }
   0x7   :  { %401 = vmatprep.mubr.msk.bf16.mxu0 %vm82_vm0, %v420_v5  ;;  %409 = vmatprep.mubr.msk.bf16.mxu1 %vm82_vm0, %v421_v6 }
   0xe   :  { %402 = vmatmul.mubr.msk.bf16.gmra.mxu0 %vm82_vm0, %v422_v7  ;;  %410 = vmatmul.mubr.msk.bf16.gmra.mxu1 %vm82_vm0, %v423_v8 }
  0xc6   :  { %v399_v10 = vpop.f32.mrf.mxu0  ;;  %v407_v12 = vpop.f32.mrf.mxu1 }
  0xc7   :  { %v213_v13 = vmul.f32 %v399_v10, %v487_v9  ;;  %v221_v14 = vmul.f32 %v407_v12, %v487_v9 }
  0xc8   :  { %v141_v15 = vpop.f32.mrf.mxu0  ;;  %v173_v16 = vpop.f32.mrf.mxu1 }
  0xc9   :  { %v236_v17 = vadd.f32 %v492_v11, %v213_v13  ;;  %v244_v18 = vadd.f32 %v492_v11, %v221_v14  ;;  %v211_v19 = vmul.f32 %v487_v9, %v141_v15  ;;  %v219_v20 = vmul.f32 %v487_v9, %v173_v16 }
  0xca   :  { %v400_v21 = vpop.f32.mrf.mxu0  ;;  %v408_v22 = vpop.f32.mrf.mxu1 }
  0xcb   :  { %v372_v23 = vpack.c.bf16 %v236_v17, %v236_v17  ;;  %v380_v24 = vpack.c.bf16 %v244_v18, %v244_v18  ;;  %v234_v25 = vadd.f32 %v492_v11, %v211_v19  ;;  %v242_v26 = vadd.f32 %v492_v11, %v219_v20 }
  0xcc   :  { %v214_v27 = vmul.f32 %v400_v21, %v487_v9  ;;  %v222_v28 = vmul.f32 %v408_v22, %v487_v9  ;;  %v144_v29 = vpop.f32.mrf.mxu0  ;;  %v176_v30 = vpop.f32.mrf.mxu1 }
  0xcd   :  { %317 = vst.msk [vmem:[%s594_s4 + $0x8] sm:$0xf] %vm314_vm1, %v372_v23  ;;  %325 = vst.msk [vmem:[%s594_s4 + $0x28] sm:$0xf] %vm314_vm1, %v380_v24  ;;  %v370_v31 = vpack.c.bf16 %v234_v25, %v234_v25  ;;  %v378_v32 = vpack.c.bf16 %v242_v26, %v242_v26  ;;  %v212_v33 = vmul.f32 %v487_v9, %v144_v29 }
  0xce   :  { %v220_v34 = vmul.f32 %v487_v9, %v176_v30  ;;  %v237_v35 = vadd.f32 %v492_v11, %v214_v27  ;;  %v245_v36 = vadd.f32 %v492_v11, %v222_v28  ;;  %v403_v37 = vpop.f32.mrf.mxu0  ;;  %v411_v38 = vpop.f32.mrf.mxu1 }
  0xcf   :  { %315 = vst.msk [vmem:[%s594_s4] sm:$0xf] %vm314_vm1, %v370_v31  ;;  %323 = vst.msk [vmem:[%s594_s4 + $0x20] sm:$0xf] %vm314_vm1, %v378_v32  ;;  %v235_v39 = vadd.f32 %v492_v11, %v212_v33  ;;  %v217_v41 = vmul.f32 %v403_v37, %v487_v9  ;;  %v225_v42 = vmul.f32 %v411_v38, %v487_v9 }
  0xd0   :  { %v243_v40 = vadd.f32 %v492_v11, %v220_v34  ;;  %v373_v43 = vpack.c.bf16 %v237_v35, %v237_v35  ;;  %v381_v44 = vpack.c.bf16 %v245_v36, %v245_v36  ;;  %v157_v45 = vpop.f32.mrf.mxu0  ;;  %v189_v46 = vpop.f32.mrf.mxu1 }
  0xd1   :  { %v371_v47 = vpack.c.bf16 %v235_v39, %v235_v39  ;;  %v240_v49 = vadd.f32 %v492_v11, %v217_v41  ;;  %v248_v50 = vadd.f32 %v492_v11, %v225_v42  ;;  %v215_v51 = vmul.f32 %v487_v9, %v157_v45 }
  0xd2   :  { %v379_v48 = vpack.c.bf16 %v243_v40, %v243_v40  ;;  %318 = vst.msk [vmem:[%s594_s4 + $0xc] sm:$0xf] %vm314_vm1, %v373_v43  ;;  %326 = vst.msk [vmem:[%s594_s4 + $0x2c] sm:$0xf] %vm314_vm1, %v381_v44  ;;  %v223_v52 = vmul.f32 %v487_v9, %v189_v46  ;;  %v404_v53 = vpop.f32.mrf.mxu0  ;;  %v412_v54 = vpop.f32.mrf.mxu1 }
  0xd3   :  { %316 = vst.msk [vmem:[%s594_s4 + $0x4] sm:$0xf] %vm314_vm1, %v371_v47  ;;  %v376_v55 = vpack.c.bf16 %v240_v49, %v240_v49  ;;  %v384_v56 = vpack.c.bf16 %v248_v50, %v248_v50  ;;  %v218_v57 = vmul.f32 %v404_v53, %v487_v9  ;;  %v226_v58 = vmul.f32 %v412_v54, %v487_v9 }
  0xd4   :  { %324 = vst.msk [vmem:[%s594_s4 + $0x24] sm:$0xf] %vm314_vm1, %v379_v48  ;;  %v238_v59 = vadd.f32 %v492_v11, %v215_v51  ;;  %v246_v60 = vadd.f32 %v492_v11, %v223_v52  ;;  %v160_v61 = vpop.f32.mrf.mxu0  ;;  %v192_v62 = vpop.f32.mrf.mxu1 }
  0xd5   :  { %321 = vst.msk [vmem:[%s594_s4 + $0x18] sm:$0xf] %vm314_vm1, %v376_v55  ;;  %329 = vst.msk [vmem:[%s594_s4 + $0x38] sm:$0xf] %vm314_vm1, %v384_v56  ;;  %v241_v63 = vadd.f32 %v492_v11, %v218_v57  ;;  %v249_v0 = vadd.f32 %v492_v11, %v226_v58  ;;  %v216_v1 = vmul.f32 %v487_v9, %v160_v61 }
  0xd6   :  { %v224_v2 = vmul.f32 %v487_v9, %v192_v62  ;;  %v374_v3 = vpack.c.bf16 %v238_v59, %v238_v59  ;;  %v382_v4 = vpack.c.bf16 %v246_v60, %v246_v60 }
  0xd7   :  { %v377_v5 = vpack.c.bf16 %v241_v63, %v241_v63  ;;  %v385_v6 = vpack.c.bf16 %v249_v0, %v249_v0  ;;  %v239_v7 = vadd.f32 %v492_v11, %v216_v1 }
  0xd8   :  { %v247_v8 = vadd.f32 %v492_v11, %v224_v2  ;;  %319 = vst.msk [vmem:[%s594_s4 + $0x10] sm:$0xf] %vm314_vm1, %v374_v3  ;;  %327 = vst.msk [vmem:[%s594_s4 + $0x30] sm:$0xf] %vm314_vm1, %v382_v4 }
  0xd9   :  { %322 = vst.msk [vmem:[%s594_s4 + $0x1c] sm:$0xf] %vm314_vm1, %v377_v5  ;;  %330 = vst.msk [vmem:[%s594_s4 + $0x3c] sm:$0xf] %vm314_vm1, %v385_v6  ;;  %v375_v9 = vpack.c.bf16 %v239_v7, %v239_v7 }
  0xda   :  { %v383_v10 = vpack.c.bf16 %v247_v8, %v247_v8 }
  0xdb   :  { %320 = vst.msk [vmem:[%s594_s4 + $0x14] sm:$0xf] %vm314_vm1, %v375_v9 }
  0xdc   :  { %328 = vst.msk [vmem:[%s594_s4 + $0x34] sm:$0xf] %vm314_vm1, %v383_v10 }

// kernel: _lambda_.46
= control target key start
LH: loop header
LB: loop body
LE: loop exit
PB: predicated region body
PF: predicated region fallthrough
CT: control target
= control target key end

     0   :  { %s751_s15 = smov 0   ;;  %s865_s0 = inlined_call_operand.vmem [shape: bf16[512,27], index: 0, kind: input, shape index: {}]   ;;  %s866_s1 = inlined_call_operand.vmem [shape: bf16[27,16], index: 1, kind: input, shape index: {}]   ;;  %s867_s2 = inlined_call_operand.vmem [shape: f32[1,16], index: 2, kind: input, shape index: {}]   ;;  %s868_s3 = inlined_call_operand.vmem [shape: f32[1,16], index: 3, kind: input, shape index: {}]   ;;  %s869_s4 = inlined_call_operand.vmem [shape: bf16[512,16], index: 4, kind: output, shape index: {}]  }
   0x1 LB: > { %s601_s16 = sadd.s32 4294967295, %s723_s15   ;;  %p605_p0 = scmp.ge.s32.totalorder %s723_s15, 1  ;;  %s723_s15 = sphi %s751_s15, %s14_s15  }
   0x2   : > { %p163_p1 = scmp.lt.s32.totalorder %s723_s15, 5 }
   0x4   : > { %p164_p2 = pnand %p605_p0, %p163_p1 }
   0x5   : > { %s606_s19 = sshll.u32 (!%p164_p2), %s601_s16, 4 }
   0x6   : > { %167 = sbr.rel (%p164_p2) target bundleno = 242 (0xf2), region = 36  ;;  %p190_p3 = scmp.lt.s32.totalorder (!%p164_p2), %s606_s19, 63 }
   0xb   : > { %v707_v0 = vld [vmem:[%s866_s1 + $0x8] sm:$0x3f]   ;;  %vm298_vm0 = vcmask 1044480   ;;  %vm299_vm1 = vcmask 1045504   ;;  %v725_v1 = vmov 65535   ;;  %v708_v5 = vld [vmem:[%s866_s1] sm:$0xff]  }
   0xc   : > { %v300_v2 = vsel %vm298_vm0, 4294967295, %v725_v1  ;;  %s871_s19 = smov (!%p190_p3, %s606_s19), 63  ;;  %vm273_vm2 = vcmask 220160   ;;  %v784_v14 = vld [vmem:[%s867_s2] ss:$0 sm:$0xff]  ;;  %vm528_vm3 = vcmask 125952  }
   0xd   : > { %v301_v3 = vsel %vm299_vm1, %v300_v2, 0  ;;  %s607_s22 = sshll.u32 %s871_s19, 2  ;;  %v789_v16 = vld [vmem:[%s868_s3] ss:$0 sm:$0xff] }
   0xe   : > { %v303_v4 = vand.u32 %v707_v0, %v301_v3  ;;  %s193_s25 = scalar_lea.vmem %s865_s0, %s607_s22  ;;  %s804_s6 = scalar_lea.vmem %s869_s4, %s607_s22 }
   0xf   : > { %v709_v6 = vld [vmem:[%s193_s25] sm:$0xff]   ;;  %v711_v8 = vld [vmem:[%s193_s25 + $0x8] sm:$0xff]   ;;  %v713_v10 = vld [vmem:[%s193_s25 + $0x10] sm:$0xff]  }
  0x10   : > { %674 = vmatprep.subr.bf16.mxu0 %v303_v4  ;;  %694 = vmatprep.subr.bf16.mxu1 %v303_v4  ;;  %v710_v7 = vld [vmem:[%s193_s25 + $0x20] sm:$0xff]   ;;  %v712_v9 = vld [vmem:[%s193_s25 + $0x28] sm:$0xff]   ;;  %v714_v11 = vld [vmem:[%s193_s25 + $0x30] sm:$0xff]  }
  0x11   : > { %675 = vmatpush3.bf16.msra.mxu0 %v303_v4  ;;  %696 = vmatpush3.bf16.msra.mxu1 %v303_v4  ;;  %v715_v12 = vld [vmem:[%s193_s25 + $0x18] sm:$0xff]  }
  0x12   : > { %676 = vmatprep.subr.bf16.mxu0 %v708_v5  ;;  %695 = vmatprep.subr.bf16.mxu1 %v708_v5  ;;  %v716_v13 = vld [vmem:[%s193_s25 + $0x38] sm:$0xff]  }
  0x13   : > { %678 = vmatprep.mubr.msk.bf16.mxu0 %vm273_vm2, %v709_v6  ;;  %686 = vmatprep.mubr.msk.bf16.mxu1 %vm273_vm2, %v710_v7 }
  0x15   : > { %677 = vmatpush3.bf16.msra.mxu0 %v708_v5  ;;  %697 = vmatpush3.bf16.msra.mxu1 %v708_v5 }
  0x18   : > { %679 = vmatmul.mubr.msk.bf16.vlgmr.msra.gmra.mxu0 %vm273_vm2, %v711_v8  ;;  %687 = vmatmul.mubr.msk.bf16.vlgmr.msra.gmra.mxu1 %vm273_vm2, %v712_v9 }
  0x19   : > { %682 = vmatprep.mubr.msk.bf16.mxu0 %vm273_vm2, %v713_v10  ;;  %690 = vmatprep.mubr.msk.bf16.mxu1 %vm273_vm2, %v714_v11 }
  0x20   : > { %683 = vmatmul.mubr.msk.bf16.gmra.mxu0 %vm273_vm2, %v715_v12  ;;  %691 = vmatmul.mubr.msk.bf16.gmra.mxu1 %vm273_vm2, %v716_v13 }
  0xd8   : > { %v680_v15 = vpop.f32.mrf.mxu0  ;;  %v688_v17 = vpop.f32.mrf.mxu1 }
  0xd9   : > { %v411_v18 = vmul.f32 %v680_v15, %v784_v14  ;;  %v419_v19 = vmul.f32 %v688_v17, %v784_v14 }
  0xda   : > { %v339_v20 = vpop.f32.mrf.mxu0  ;;  %v371_v21 = vpop.f32.mrf.mxu1 }
  0xdb   : > { %v434_v22 = vadd.f32 %v789_v16, %v411_v18  ;;  %v442_v23 = vadd.f32 %v789_v16, %v419_v19  ;;  %v409_v24 = vmul.f32 %v784_v14, %v339_v20  ;;  %v417_v25 = vmul.f32 %v784_v14, %v371_v21 }
  0xdc   : > { %v681_v26 = vpop.f32.mrf.mxu0  ;;  %v689_v27 = vpop.f32.mrf.mxu1 }
  0xdd   : > { %v450_v28 = vmax.f32 %v434_v22, 0.0  ;;  %v458_v29 = vmax.f32 %v442_v23, 0.0  ;;  %v432_v30 = vadd.f32 %v789_v16, %v409_v24  ;;  %v440_v31 = vadd.f32 %v789_v16, %v417_v25 }
  0xde   : > { %v412_v32 = vmul.f32 %v681_v26, %v784_v14  ;;  %v420_v33 = vmul.f32 %v689_v27, %v784_v14  ;;  %v342_v34 = vpop.f32.mrf.mxu0  ;;  %v374_v35 = vpop.f32.mrf.mxu1 }
  0xdf   : > { %v650_v36 = vpack.c.bf16 %v450_v28, %v450_v28  ;;  %v658_v37 = vpack.c.bf16 %v458_v29, %v458_v29  ;;  %v448_v38 = vmax.f32 %v432_v30, 0.0  ;;  %v456_v39 = vmax.f32 %v440_v31, 0.0 }
  0xe0   : > { %v435_v40 = vadd.f32 %v789_v16, %v412_v32  ;;  %v443_v41 = vadd.f32 %v789_v16, %v420_v33  ;;  %v410_v42 = vmul.f32 %v784_v14, %v342_v34  ;;  %v418_v43 = vmul.f32 %v784_v14, %v374_v35  ;;  %v684_v44 = vpop.f32.mrf.mxu0  ;;  %v692_v45 = vpop.f32.mrf.mxu1 }
  0xe1   : > { %531 = vst.msk [vmem:[%s804_s6 + $0x8] sm:$0xf] %vm528_vm3, %v650_v36  ;;  %539 = vst.msk [vmem:[%s804_s6 + $0x28] sm:$0xf] %vm528_vm3, %v658_v37  ;;  %v648_v46 = vpack.c.bf16 %v448_v38, %v448_v38  ;;  %v656_v47 = vpack.c.bf16 %v456_v39, %v456_v39  ;;  %v415_v48 = vmul.f32 %v684_v44, %v784_v14 }
  0xe2   : > { %v423_v49 = vmul.f32 %v692_v45, %v784_v14  ;;  %v451_v50 = vmax.f32 %v435_v40, 0.0  ;;  %v459_v51 = vmax.f32 %v443_v41, 0.0  ;;  %v433_v52 = vadd.f32 %v789_v16, %v410_v42  ;;  %v355_v54 = vpop.f32.mrf.mxu0  ;;  %v387_v55 = vpop.f32.mrf.mxu1 }
  0xe3   : > { %v441_v53 = vadd.f32 %v789_v16, %v418_v43  ;;  %529 = vst.msk [vmem:[%s804_s6] sm:$0xf] %vm528_vm3, %v648_v46  ;;  %537 = vst.msk [vmem:[%s804_s6 + $0x20] sm:$0xf] %vm528_vm3, %v656_v47  ;;  %v438_v56 = vadd.f32 %v789_v16, %v415_v48  ;;  %v413_v58 = vmul.f32 %v784_v14, %v355_v54 }
  0xe4   : > { %v446_v57 = vadd.f32 %v789_v16, %v423_v49  ;;  %v421_v59 = vmul.f32 %v784_v14, %v387_v55  ;;  %v651_v60 = vpack.c.bf16 %v451_v50, %v451_v50  ;;  %v659_v61 = vpack.c.bf16 %v459_v51, %v459_v51  ;;  %v685_v0 = vpop.f32.mrf.mxu0  ;;  %v693_v1 = vpop.f32.mrf.mxu1 }
  0xe5   : > { %v449_v62 = vmax.f32 %v433_v52, 0.0  ;;  %v457_v63 = vmax.f32 %v441_v53, 0.0  ;;  %v454_v2 = vmax.f32 %v438_v56, 0.0  ;;  %v436_v4 = vadd.f32 %v789_v16, %v413_v58 }
  0xe6   : > { %v462_v3 = vmax.f32 %v446_v57, 0.0  ;;  %v444_v5 = vadd.f32 %v789_v16, %v421_v59  ;;  %532 = vst.msk [vmem:[%s804_s6 + $0xc] sm:$0xf] %vm528_vm3, %v651_v60  ;;  %540 = vst.msk [vmem:[%s804_s6 + $0x2c] sm:$0xf] %vm528_vm3, %v659_v61  ;;  %v416_v8 = vmul.f32 %v685_v0, %v784_v14  ;;  %v424_v9 = vmul.f32 %v693_v1, %v784_v14  ;;  %v358_v10 = vpop.f32.mrf.mxu0  ;;  %v390_v11 = vpop.f32.mrf.mxu1 }
  0xe7   : > { %v649_v6 = vpack.c.bf16 %v449_v62, %v449_v62  ;;  %v657_v7 = vpack.c.bf16 %v457_v63, %v457_v63  ;;  %v654_v12 = vpack.c.bf16 %v454_v2, %v454_v2  ;;  %v452_v15 = vmax.f32 %v436_v4, 0.0 }
  0xe8   : > { %v662_v13 = vpack.c.bf16 %v462_v3, %v462_v3  ;;  %v460_v17 = vmax.f32 %v444_v5, 0.0  ;;  %v439_v18 = vadd.f32 %v789_v16, %v416_v8  ;;  %v447_v19 = vadd.f32 %v789_v16, %v424_v9 }
  0xe9   : > { %530 = vst.msk [vmem:[%s804_s6 + $0x4] sm:$0xf] %vm528_vm3, %v649_v6  ;;  %538 = vst.msk [vmem:[%s804_s6 + $0x24] sm:$0xf] %vm528_vm3, %v657_v7  ;;  %v414_v20 = vmul.f32 %v784_v14, %v358_v10  ;;  %v422_v21 = vmul.f32 %v784_v14, %v390_v11  ;;  %v652_v22 = vpack.c.bf16 %v452_v15, %v452_v15 }
  0xea   : > { %535 = vst.msk [vmem:[%s804_s6 + $0x18] sm:$0xf] %vm528_vm3, %v654_v12  ;;  %543 = vst.msk [vmem:[%s804_s6 + $0x38] sm:$0xf] %vm528_vm3, %v662_v13  ;;  %v660_v23 = vpack.c.bf16 %v460_v17, %v460_v17  ;;  %v455_v24 = vmax.f32 %v439_v18, 0.0  ;;  %v463_v25 = vmax.f32 %v447_v19, 0.0 }
  0xeb   : > { %v437_v26 = vadd.f32 %v789_v16, %v414_v20  ;;  %v445_v27 = vadd.f32 %v789_v16, %v422_v21  ;;  %533 = vst.msk [vmem:[%s804_s6 + $0x10] sm:$0xf] %vm528_vm3, %v652_v22 }
  0xec   : > { %541 = vst.msk [vmem:[%s804_s6 + $0x30] sm:$0xf] %vm528_vm3, %v660_v23  ;;  %v655_v14 = vpack.c.bf16 %v455_v24, %v455_v24  ;;  %v663_v28 = vpack.c.bf16 %v463_v25, %v463_v25 }
  0xed   : > { %v453_v29 = vmax.f32 %v437_v26, 0.0  ;;  %v461_v30 = vmax.f32 %v445_v27, 0.0 }
  0xee   : > { %536 = vst.msk [vmem:[%s804_s6 + $0x1c] sm:$0xf] %vm528_vm3, %v655_v14  ;;  %544 = vst.msk [vmem:[%s804_s6 + $0x3c] sm:$0xf] %vm528_vm3, %v663_v28 }
  0xef   : > { %v653_v31 = vpack.c.bf16 %v453_v29, %v453_v29  ;;  %v661_v32 = vpack.c.bf16 %v461_v30, %v461_v30 }
  0xf1   : > { %534 = vst.msk [vmem:[%s804_s6 + $0x14] sm:$0xf] %vm528_vm3, %v653_v31  ;;  %542 = vst.msk [vmem:[%s804_s6 + $0x34] sm:$0xf] %vm528_vm3, %v661_v32 }
  0xf2 PF: > { %s14_s15 = sadd.s32 1, %s723_s15  }
  0xf3   : > { %p11_p4 = scmp.ge.s32.totalorder %s14_s15, 6  }
  0xf5   :  { %13 = sbr.rel (!%p11_p4) target bundleno = 1 (0x1), region = 66 }

// kernel: _lambda_.50
= control target key start
LH: loop header
LB: loop body
LE: loop exit
PB: predicated region body
PF: predicated region fallthrough
CT: control target
= control target key end

     0   :  { %vm24_vm0 = vcmask 1043456   ;;  %v115_v0 = vmov 0.0   ;;  %vm116_vm1 = vmmov 0   ;;  %vm20_vm2 = vcmask 64512   ;;  %s157_s1 = inlined_call_operand.vmem [shape: bf16[8,8], index: 1, kind: input, shape index: {}]   ;;  %s158_s0 = inlined_call_operand.vmem [shape: bf16[2,8], index: 0, kind: input, shape index: {}]   ;;  %s159_s2 = inlined_call_operand.vmem [shape: f32[1,8], index: 2, kind: input, shape index: {}]   ;;  %s160_s3 = inlined_call_operand.vmem [shape: f32[1,8], index: 3, kind: input, shape index: {}]   ;;  %s161_s4 = inlined_call_operand.vmem [shape: bf16[2,8], index: 4, kind: output, shape index: {}]  }
   0x1   :  { %103 = vmatprep.subr.bf16.mxu0 %v115_v0  ;;  %v19_v1 = vld [vmem:[%s157_s1] sm:$0xf]  ;;  %105 = vmatprep.mubr.msk.bf16.mxu0 %vm116_vm1, %v115_v0  ;;  %vm91_vm3 = vcmask 57344  }
   0x2   :  { %v26_v2 = vsel %vm24_vm0, %v19_v1, 0  ;;  %v18_v3 = vld [vmem:[%s158_s0] sm:$0x1] }
   0x3   :  { %104 = vmatpush3.bf16.msra.mxu0 %v26_v2  ;;  %v98_v4 = vld [vmem:[%s159_s2] ss:$0 sm:$0xff] }
   0x4   :  { %v99_v6 = vld [vmem:[%s160_s3] ss:$0 sm:$0xff] }
   0x6   :  { %106 = vmatmul.mubr.msk.bf16.vlgmr.msra.gmra.mxu0 %vm20_vm2, %v18_v3 }
  0xc6   :  { %v62_v5 = vpop.f32.mrf.mxu0 }
  0xc7   :  { %v75_v7 = vmul.f32 %v98_v4, %v62_v5 }
  0xc8   :  { %v107_v8 = vpop.f32.mrf.mxu0 }
  0xc9   :  { %v83_v9 = vadd.f32 %v99_v6, %v75_v7 }
  0xca   :  { %v65_v10 = vpop.f32.mrf.mxu0 }
  0xcb   :  { %v100_v11 = vmul.f32 -1.442695, %v83_v9 }
  0xcc   :  { %v108_v12 = vpop.f32.mrf.mxu0 }
  0xcd   :  { %111 = vpow2.f32 %v100_v11 }
  0xda   :  { %v112_v13 = vpop.eup %111 }
  0xdb   :  { %v87_v14 = vadd.f32 1.0, %v112_v13 }
  0xdd   :  { %113 = vrcp.f32 %v87_v14 }
  0xea   :  { %v114_v15 = vpop.eup %113 }
  0xeb   :  { %v90_v16 = vpack.c.bf16 %v114_v15, %v114_v15 }
  0xed   :  { %92 = vst.msk [vmem:[%s161_s4] sm:$0x1] %vm91_vm3, %v90_v16 }

// kernel: _lambda_.49
= control target key start
LH: loop header
LB: loop body
LE: loop exit
PB: predicated region body
PF: predicated region fallthrough
CT: control target
= control target key end

     0   :  { %vm24_vm0 = vcmask 1043456   ;;  %v105_v0 = vmov 0.0   ;;  %vm106_vm1 = vmmov 0   ;;  %vm20_vm2 = vcmask 64512   ;;  %s147_s1 = inlined_call_operand.vmem [shape: bf16[8,8], index: 1, kind: input, shape index: {}]   ;;  %s148_s0 = inlined_call_operand.vmem [shape: bf16[2,8], index: 0, kind: input, shape index: {}]   ;;  %s149_s2 = inlined_call_operand.vmem [shape: f32[1,8], index: 2, kind: input, shape index: {}]   ;;  %s150_s3 = inlined_call_operand.vmem [shape: f32[1,8], index: 3, kind: input, shape index: {}]   ;;  %s151_s4 = inlined_call_operand.vmem [shape: bf16[2,8], index: 4, kind: output, shape index: {}]  }
   0x1   :  { %97 = vmatprep.subr.bf16.mxu0 %v105_v0  ;;  %v19_v1 = vld [vmem:[%s147_s1] sm:$0xf]  ;;  %99 = vmatprep.mubr.msk.bf16.mxu0 %vm106_vm1, %v105_v0  ;;  %vm86_vm3 = vcmask 57344  }
   0x2   :  { %v26_v2 = vsel %vm24_vm0, %v19_v1, 0  ;;  %v18_v3 = vld [vmem:[%s148_s0] sm:$0x1] }
   0x3   :  { %98 = vmatpush3.bf16.msra.mxu0 %v26_v2  ;;  %v93_v4 = vld [vmem:[%s149_s2] ss:$0 sm:$0xff] }
   0x4   :  { %v94_v6 = vld [vmem:[%s150_s3] ss:$0 sm:$0xff] }
   0x6   :  { %100 = vmatmul.mubr.msk.bf16.vlgmr.msra.gmra.mxu0 %vm20_vm2, %v18_v3 }
  0xc6   :  { %v62_v5 = vpop.f32.mrf.mxu0 }
  0xc7   :  { %v75_v7 = vmul.f32 %v93_v4, %v62_v5 }
  0xc8   :  { %v101_v8 = vpop.f32.mrf.mxu0 }
  0xc9   :  { %v83_v9 = vadd.f32 %v94_v6, %v75_v7 }
  0xca   :  { %v65_v10 = vpop.f32.mrf.mxu0 }
  0xcb   :  { %v84_v11 = vmax.f32 %v83_v9, 0.0 }
  0xcc   :  { %v102_v12 = vpop.f32.mrf.mxu0 }
  0xcd   :  { %v85_v13 = vpack.c.bf16 %v84_v11, %v84_v11 }
  0xcf   :  { %87 = vst.msk [vmem:[%s151_s4] sm:$0x1] %vm86_vm3, %v85_v13 }

// kernel: _lambda_.48
= control target key start
LH: loop header
LB: loop body
LE: loop exit
PB: predicated region body
PF: predicated region fallthrough
CT: control target
= control target key end

     0   :  { %vm135_vm0 = vcmask 1043456   ;;  %vm110_vm1 = vcmask 588800   ;;  %vm362_vm2 = vcmask 60416   ;;  %s680_s1 = inlined_call_operand.vmem [shape: bf16[72,8], index: 1, kind: input, shape index: {}]   ;;  %s681_s0 = inlined_call_operand.vmem [shape: bf16[128,72], index: 0, kind: input, shape index: {}]   ;;  %s682_s2 = inlined_call_operand.vmem [shape: f32[1,8], index: 2, kind: input, shape index: {}]   ;;  %s683_s3 = inlined_call_operand.vmem [shape: f32[1,8], index: 3, kind: input, shape index: {}]   ;;  %s684_s4 = inlined_call_operand.vmem [shape: bf16[128,8], index: 4, kind: output, shape index: {}]  }
   0x1   :  { %v489_v0 = vld [vmem:[%s680_s1 + $0x20] ss:$0 sps:$4 sm:$0xff]   ;;  %v490_v1 = vld [vmem:[%s680_s1 + $0x18] sm:$0xff]   ;;  %v491_v3 = vld [vmem:[%s680_s1 + $0x10] sm:$0xff]  }
   0x2   :  { %487 = vmatprep.subr.msk.bf16.mxu0 %vm135_vm0, %v489_v0  ;;  %488 = vmatprep.subr.msk.bf16.mxu1 %vm135_vm0, %v489_v0  ;;  %v137_v2 = vsel %vm135_vm0, %v489_v0, 0  ;;  %v494_v4 = vld [vmem:[%s681_s0] sm:$0xff]   ;;  %v492_v6 = vld [vmem:[%s680_s1 + $0x8] sm:$0xff]   ;;  %v498_v10 = vld [vmem:[%s681_s0 + $0x10] sm:$0xff]  }
   0x3   :  { %452 = vmatpush3.bf16.msra.mxu0 %v137_v2  ;;  %482 = vmatpush3.bf16.msra.mxu1 %v137_v2  ;;  %v495_v5 = vld [vmem:[%s681_s0 + $0x20] sm:$0xff]   ;;  %v496_v8 = vld [vmem:[%s681_s0 + $0x8] sm:$0xff]   ;;  %v499_v11 = vld [vmem:[%s681_s0 + $0x30] sm:$0xff]  }
   0x4   :  { %453 = vmatprep.subr.bf16.mxu0 %v490_v1  ;;  %478 = vmatprep.subr.bf16.mxu1 %v490_v1  ;;  %v493_v7 = vld [vmem:[%s680_s1] sm:$0xff]   ;;  %v497_v9 = vld [vmem:[%s681_s0 + $0x28] sm:$0xff]   ;;  %v500_v12 = vld [vmem:[%s681_s0 + $0x18] sm:$0xff]  }
   0x5   :  { %461 = vmatprep.mubr.msk.bf16.mxu0 %vm110_vm1, %v494_v4  ;;  %469 = vmatprep.mubr.msk.bf16.mxu1 %vm110_vm1, %v495_v5  ;;  %v501_v13 = vld [vmem:[%s681_s0 + $0x38] sm:$0xff]   ;;  %v577_v14 = vld [vmem:[%s682_s2] ss:$0 sm:$0xff] }
   0x6   :  { %v582_v16 = vld [vmem:[%s683_s3] ss:$0 sm:$0xff] }
   0x7   :  { %454 = vmatpush3.bf16.msra.mxu0 %v490_v1  ;;  %483 = vmatpush3.bf16.msra.mxu1 %v490_v1 }
   0x8   :  { %455 = vmatprep.subr.bf16.mxu0 %v491_v3  ;;  %479 = vmatprep.subr.bf16.mxu1 %v491_v3 }
   0xb   :  { %456 = vmatpush3.bf16.msra.mxu0 %v491_v3  ;;  %484 = vmatpush3.bf16.msra.mxu1 %v491_v3 }
   0xc   :  { %457 = vmatprep.subr.bf16.mxu0 %v492_v6  ;;  %480 = vmatprep.subr.bf16.mxu1 %v492_v6 }
   0xf   :  { %458 = vmatpush3.bf16.msra.mxu0 %v492_v6  ;;  %485 = vmatpush3.bf16.msra.mxu1 %v492_v6 }
  0x10   :  { %459 = vmatprep.subr.bf16.mxu0 %v493_v7  ;;  %481 = vmatprep.subr.bf16.mxu1 %v493_v7 }
  0x13   :  { %460 = vmatpush3.bf16.msra.mxu0 %v493_v7  ;;  %486 = vmatpush3.bf16.msra.mxu1 %v493_v7 }
  0x16   :  { %462 = vmatmul.mubr.msk.bf16.vlgmr.msra.gmra.mxu0 %vm110_vm1, %v496_v8  ;;  %470 = vmatmul.mubr.msk.bf16.vlgmr.msra.gmra.mxu1 %vm110_vm1, %v497_v9 }
  0x17   :  { %465 = vmatprep.mubr.msk.bf16.mxu0 %vm110_vm1, %v498_v10  ;;  %473 = vmatprep.mubr.msk.bf16.mxu1 %vm110_vm1, %v499_v11 }
  0x1e   :  { %466 = vmatmul.mubr.msk.bf16.gmra.mxu0 %vm110_vm1, %v500_v12  ;;  %474 = vmatmul.mubr.msk.bf16.gmra.mxu1 %vm110_vm1, %v501_v13 }
  0xd6   :  { %v463_v15 = vpop.f32.mrf.mxu0  ;;  %v471_v17 = vpop.f32.mrf.mxu1 }
  0xd7   :  { %v245_v18 = vmul.f32 %v463_v15, %v577_v14  ;;  %v253_v19 = vmul.f32 %v471_v17, %v577_v14 }
  0xd8   :  { %v173_v20 = vpop.f32.mrf.mxu0  ;;  %v205_v21 = vpop.f32.mrf.mxu1 }
  0xd9   :  { %v268_v22 = vadd.f32 %v582_v16, %v245_v18  ;;  %v276_v23 = vadd.f32 %v582_v16, %v253_v19  ;;  %v243_v24 = vmul.f32 %v577_v14, %v173_v20  ;;  %v251_v25 = vmul.f32 %v577_v14, %v205_v21 }
  0xda   :  { %v464_v26 = vpop.f32.mrf.mxu0  ;;  %v472_v27 = vpop.f32.mrf.mxu1 }
  0xdb   :  { %v284_v28 = vmax.f32 %v268_v22, 0.0  ;;  %v292_v29 = vmax.f32 %v276_v23, 0.0  ;;  %v266_v30 = vadd.f32 %v582_v16, %v243_v24  ;;  %v274_v31 = vadd.f32 %v582_v16, %v251_v25 }
  0xdc   :  { %v246_v32 = vmul.f32 %v464_v26, %v577_v14  ;;  %v254_v33 = vmul.f32 %v472_v27, %v577_v14  ;;  %v176_v34 = vpop.f32.mrf.mxu0  ;;  %v208_v35 = vpop.f32.mrf.mxu1 }
  0xdd   :  { %v424_v36 = vpack.c.bf16 %v284_v28, %v284_v28  ;;  %v432_v37 = vpack.c.bf16 %v292_v29, %v292_v29  ;;  %v282_v38 = vmax.f32 %v266_v30, 0.0  ;;  %v290_v39 = vmax.f32 %v274_v31, 0.0 }
  0xde   :  { %v269_v40 = vadd.f32 %v582_v16, %v246_v32  ;;  %v277_v41 = vadd.f32 %v582_v16, %v254_v33  ;;  %v244_v42 = vmul.f32 %v577_v14, %v176_v34  ;;  %v252_v43 = vmul.f32 %v577_v14, %v208_v35  ;;  %v467_v44 = vpop.f32.mrf.mxu0  ;;  %v475_v45 = vpop.f32.mrf.mxu1 }
  0xdf   :  { %365 = vst.msk [vmem:[%s684_s4 + $0x8] sm:$0xf] %vm362_vm2, %v424_v36  ;;  %373 = vst.msk [vmem:[%s684_s4 + $0x28] sm:$0xf] %vm362_vm2, %v432_v37  ;;  %v422_v46 = vpack.c.bf16 %v282_v38, %v282_v38  ;;  %v430_v47 = vpack.c.bf16 %v290_v39, %v290_v39  ;;  %v249_v48 = vmul.f32 %v467_v44, %v577_v14 }
  0xe0   :  { %v257_v49 = vmul.f32 %v475_v45, %v577_v14  ;;  %v285_v50 = vmax.f32 %v269_v40, 0.0  ;;  %v293_v51 = vmax.f32 %v277_v41, 0.0  ;;  %v267_v52 = vadd.f32 %v582_v16, %v244_v42  ;;  %v189_v54 = vpop.f32.mrf.mxu0  ;;  %v221_v55 = vpop.f32.mrf.mxu1 }
  0xe1   :  { %v275_v53 = vadd.f32 %v582_v16, %v252_v43  ;;  %363 = vst.msk [vmem:[%s684_s4] sm:$0xf] %vm362_vm2, %v422_v46  ;;  %371 = vst.msk [vmem:[%s684_s4 + $0x20] sm:$0xf] %vm362_vm2, %v430_v47  ;;  %v272_v56 = vadd.f32 %v582_v16, %v249_v48  ;;  %v247_v58 = vmul.f32 %v577_v14, %v189_v54 }
  0xe2   :  { %v280_v57 = vadd.f32 %v582_v16, %v257_v49  ;;  %v255_v59 = vmul.f32 %v577_v14, %v221_v55  ;;  %v425_v60 = vpack.c.bf16 %v285_v50, %v285_v50  ;;  %v433_v61 = vpack.c.bf16 %v293_v51, %v293_v51  ;;  %v468_v0 = vpop.f32.mrf.mxu0  ;;  %v476_v1 = vpop.f32.mrf.mxu1 }
  0xe3   :  { %v283_v62 = vmax.f32 %v267_v52, 0.0  ;;  %v291_v63 = vmax.f32 %v275_v53, 0.0  ;;  %v288_v2 = vmax.f32 %v272_v56, 0.0  ;;  %v270_v4 = vadd.f32 %v582_v16, %v247_v58 }
  0xe4   :  { %v296_v3 = vmax.f32 %v280_v57, 0.0  ;;  %v278_v5 = vadd.f32 %v582_v16, %v255_v59  ;;  %366 = vst.msk [vmem:[%s684_s4 + $0xc] sm:$0xf] %vm362_vm2, %v425_v60  ;;  %374 = vst.msk [vmem:[%s684_s4 + $0x2c] sm:$0xf] %vm362_vm2, %v433_v61  ;;  %v250_v8 = vmul.f32 %v468_v0, %v577_v14  ;;  %v258_v9 = vmul.f32 %v476_v1, %v577_v14  ;;  %v192_v10 = vpop.f32.mrf.mxu0  ;;  %v224_v11 = vpop.f32.mrf.mxu1 }
  0xe5   :  { %v423_v6 = vpack.c.bf16 %v283_v62, %v283_v62  ;;  %v431_v7 = vpack.c.bf16 %v291_v63, %v291_v63  ;;  %v428_v12 = vpack.c.bf16 %v288_v2, %v288_v2  ;;  %v286_v15 = vmax.f32 %v270_v4, 0.0 }
  0xe6   :  { %v436_v13 = vpack.c.bf16 %v296_v3, %v296_v3  ;;  %v294_v17 = vmax.f32 %v278_v5, 0.0  ;;  %v273_v18 = vadd.f32 %v582_v16, %v250_v8  ;;  %v281_v19 = vadd.f32 %v582_v16, %v258_v9 }
  0xe7   :  { %364 = vst.msk [vmem:[%s684_s4 + $0x4] sm:$0xf] %vm362_vm2, %v423_v6  ;;  %372 = vst.msk [vmem:[%s684_s4 + $0x24] sm:$0xf] %vm362_vm2, %v431_v7  ;;  %v248_v20 = vmul.f32 %v577_v14, %v192_v10  ;;  %v256_v21 = vmul.f32 %v577_v14, %v224_v11  ;;  %v426_v22 = vpack.c.bf16 %v286_v15, %v286_v15 }
  0xe8   :  { %369 = vst.msk [vmem:[%s684_s4 + $0x18] sm:$0xf] %vm362_vm2, %v428_v12  ;;  %377 = vst.msk [vmem:[%s684_s4 + $0x38] sm:$0xf] %vm362_vm2, %v436_v13  ;;  %v434_v23 = vpack.c.bf16 %v294_v17, %v294_v17  ;;  %v289_v24 = vmax.f32 %v273_v18, 0.0  ;;  %v297_v25 = vmax.f32 %v281_v19, 0.0 }
  0xe9   :  { %v271_v26 = vadd.f32 %v582_v16, %v248_v20  ;;  %v279_v27 = vadd.f32 %v582_v16, %v256_v21  ;;  %367 = vst.msk [vmem:[%s684_s4 + $0x10] sm:$0xf] %vm362_vm2, %v426_v22 }
  0xea   :  { %375 = vst.msk [vmem:[%s684_s4 + $0x30] sm:$0xf] %vm362_vm2, %v434_v23  ;;  %v429_v14 = vpack.c.bf16 %v289_v24, %v289_v24  ;;  %v437_v28 = vpack.c.bf16 %v297_v25, %v297_v25 }
  0xeb   :  { %v287_v29 = vmax.f32 %v271_v26, 0.0  ;;  %v295_v30 = vmax.f32 %v279_v27, 0.0 }
  0xec   :  { %370 = vst.msk [vmem:[%s684_s4 + $0x1c] sm:$0xf] %vm362_vm2, %v429_v14  ;;  %378 = vst.msk [vmem:[%s684_s4 + $0x3c] sm:$0xf] %vm362_vm2, %v437_v28 }
  0xed   :  { %v427_v16 = vpack.c.bf16 %v287_v29, %v287_v29  ;;  %v435_v31 = vpack.c.bf16 %v295_v30, %v295_v30 }
  0xef   :  { %368 = vst.msk [vmem:[%s684_s4 + $0x14] sm:$0xf] %vm362_vm2, %v427_v16  ;;  %376 = vst.msk [vmem:[%s684_s4 + $0x34] sm:$0xf] %vm362_vm2, %v435_v31 }

// kernel: _lambda_.57
= control target key start
LH: loop header
LB: loop body
LE: loop exit
PB: predicated region body
PF: predicated region fallthrough
CT: control target
= control target key end

     0   :  { %vm40_vm0 = vcmask 1043456   ;;  %vm33_vm1 = vcmask 64512   ;;  %vm131_vm2 = vcmask 125952   ;;  %s218_s1 = inlined_call_operand.vmem [shape: bf16[8,16], index: 1, kind: input, shape index: {}]   ;;  %s219_s0 = inlined_call_operand.vmem [shape: bf16[32,8], index: 0, kind: input, shape index: {}]   ;;  %s220_s2 = inlined_call_operand.vmem [shape: f32[1,16], index: 2, kind: input, shape index: {}]   ;;  %s221_s3 = inlined_call_operand.vmem [shape: f32[1,16], index: 3, kind: input, shape index: {}]   ;;  %s222_s4 = inlined_call_operand.vmem [shape: bf16[32,16], index: 4, kind: output, shape index: {}]  }
   0x1   :  { %v22_v0 = vld [vmem:[%s218_s1] sm:$0xf]  ;;  %v165_v3 = vld [vmem:[%s219_s0 + $0x8] sm:$0xff]  }
   0x2   :  { %163 = vmatprep.subr.msk.bf16.mxu0 %vm40_vm0, %v22_v0  ;;  %v42_v1 = vsel %vm40_vm0, %v22_v0, 0  ;;  %v164_v2 = vld [vmem:[%s219_s0] sm:$0xff]  }
   0x3   :  { %158 = vmatpush3.bf16.msra.mxu0 %v42_v1  ;;  %159 = vmatprep.mubr.msk.bf16.mxu0 %vm33_vm1, %v164_v2  ;;  %v144_v4 = vld [vmem:[%s220_s2] ss:$0 sm:$0xff] }
   0x4   :  { %v145_v6 = vld [vmem:[%s221_s3] ss:$0 sm:$0xff] }
   0x6   :  { %160 = vmatmul.mubr.msk.bf16.vlgmr.msra.gmra.mxu0 %vm33_vm1, %v165_v3 }
  0xc6   :  { %v161_v5 = vpop.f32.mrf.mxu0 }
  0xc7   :  { %v102_v7 = vmul.f32 %v161_v5, %v144_v4 }
  0xc8   :  { %v78_v8 = vpop.f32.mrf.mxu0 }
  0xc9   :  { %v113_v9 = vadd.f32 %v145_v6, %v102_v7  ;;  %v100_v10 = vmul.f32 %v144_v4, %v78_v8 }
  0xca   :  { %v162_v11 = vpop.f32.mrf.mxu0 }
  0xcb   :  { %v152_v12 = vpack.c.bf16 %v113_v9, %v113_v9  ;;  %v111_v13 = vadd.f32 %v145_v6, %v100_v10  ;;  %v103_v14 = vmul.f32 %v162_v11, %v144_v4 }
  0xcc   :  { %v81_v15 = vpop.f32.mrf.mxu0 }
  0xcd   :  { %134 = vst.msk [vmem:[%s222_s4 + $0x8] sm:$0xf] %vm131_vm2, %v152_v12  ;;  %v150_v16 = vpack.c.bf16 %v111_v13, %v111_v13  ;;  %v114_v17 = vadd.f32 %v145_v6, %v103_v14  ;;  %v101_v18 = vmul.f32 %v144_v4, %v81_v15 }
  0xcf   :  { %132 = vst.msk [vmem:[%s222_s4] sm:$0xf] %vm131_vm2, %v150_v16  ;;  %v153_v19 = vpack.c.bf16 %v114_v17, %v114_v17  ;;  %v112_v20 = vadd.f32 %v145_v6, %v101_v18 }
  0xd1   :  { %135 = vst.msk [vmem:[%s222_s4 + $0xc] sm:$0xf] %vm131_vm2, %v153_v19  ;;  %v151_v21 = vpack.c.bf16 %v112_v20, %v112_v20 }
  0xd3   :  { %133 = vst.msk [vmem:[%s222_s4 + $0x4] sm:$0xf] %vm131_vm2, %v151_v21 }

// kernel: _lambda_.52
= control target key start
LH: loop header
LB: loop body
LE: loop exit
PB: predicated region body
PF: predicated region fallthrough
CT: control target
= control target key end

     0   :  { %s854_s21 = smov 0   ;;  %s856_s22 = smov 0   ;;  %s929_s0 = inlined_call_operand.vmem [shape: bf16[2,64,8], index: 0, kind: input, shape index: {}]   ;;  %s930_s1 = inlined_call_operand.vmem [shape: bf16[2,1,8], index: 1, kind: input, shape index: {}]   ;;  %s931_s2 = inlined_call_operand.vmem [shape: bf16[8,8], index: 2, kind: input, shape index: {}]   ;;  %s932_s3 = inlined_call_operand.vmem [shape: f32[1,8], index: 3, kind: input, shape index: {}]   ;;  %s933_s4 = inlined_call_operand.vmem [shape: f32[1,8], index: 4, kind: input, shape index: {}]   ;;  %s934_s5 = inlined_call_operand.vmem [shape: bf16[2,64,8], index: 5, kind: input, shape index: {}]   ;;  %s935_s6 = inlined_call_operand.vmem [shape: bf16[2,64,8], index: 6, kind: output, shape index: {}]  }
   0x1   :  { %s858_s23 = smov 0  }
   0x2 LB: > { %s28_s24 = sadd.s32 1, %s813_s22  ;;  %p680_p0 = scmp.ge.s32.totalorder %s817_s23, 1  ;;  %s817_s23 = sphi %s858_s23, %s16_s23   ;;  %s813_s22 = sphi %s856_s22, %s937_s22   ;;  %s809_s21 = sphi %s854_s21, %s936_s21  }
   0x3   : > { %p30_p1 = scmp.ge.s32.totalorder %s28_s24, 2  ;;  %p258_p2 = scmp.lt.s32.totalorder %s817_s23, 3 }
   0x5   : > { %s939_s24 = smov (%p30_p1, %s28_s24), 0  ;;  %p259_p3 = pnand %p680_p0, %p258_p2 }
   0x6   : > { %p309_p4 = scmp.lt.s32.totalorder (!%p259_p3), %s809_s21, 1 }
   0x7   : > { %262 = sbr.rel (%p259_p3) target bundleno = 236 (0xec), region = 44 }
   0xc   : > { %v376_v0 = vld [vmem:[%s931_s2] sm:$0xf]  ;;  %vm390_vm0 = vcmask 1043456   ;;  %v360_v1 = vlaneseq  ;;  %s941_s21 = smov (!%p309_p4, %s809_s21), 1  ;;  %vm377_vm1 = vcmask 64512   ;;  %vm553_vm2 = vcmask 60416  }
   0xd   : > { %769 = vmatprep.subr.msk.bf16.mxu0 %vm390_vm0, %v376_v0  ;;  %770 = vmatprep.subr.msk.bf16.mxu1 %vm390_vm0, %v376_v0  ;;  %v392_v2 = vsel %vm390_vm0, %v376_v0, 0  ;;  %s875_s27 = sshll.u32 %s941_s21, 5  ;;  %s320_s30 = scalar_lea.vmem %s930_s1, %s941_s21  ;;  %v691_v32 = vld [vmem:[%s932_s3] ss:$0 sm:$0xff] }
   0xe   : > { %758 = vmatpush3.bf16.msra.mxu0 %v392_v2  ;;  %768 = vmatpush3.bf16.msra.mxu1 %v392_v2  ;;  %v361_v3 = vshrl.u32 %v360_v1, 7  ;;  %s316_s9 = scalar_lea.vmem %s929_s0, %s875_s27  ;;  %v358_v5 = vld [vmem:[%s320_s30] sm:$0x1]  ;;  %s329_s12 = scalar_lea.vmem %s934_s5, %s875_s27 }
   0xf   : > { %v715_v6 = vld [vmem:[%s316_s9] sm:$0xff]   ;;  %v359_v7 = vunpack.c.l.bf16 %v358_v5  ;;  %v747_v8 = vld [vmem:[%s316_s9 + $0x10] sm:$0xff]   ;;  %v746_v9 = vld [vmem:[%s316_s9 + $0x8] sm:$0xff]   ;;  %s902_s19 = scalar_lea.vmem %s935_s6, %s875_s27 }
  0x10   : > { %v362_v4 = vsub.s32 0, %v361_v3  ;;  %v716_v10 = vunpack.c.l.bf16 %v715_v6  ;;  %v717_v11 = vunpack.c.h.bf16 %v715_v6  ;;  %v724_v12 = vunpack.c.l.bf16 %v747_v8  ;;  %v748_v14 = vld [vmem:[%s316_s9 + $0x18] sm:$0xff]   ;;  %v749_v33 = vld [vmem:[%s329_s12 + $0x8] sm:$0xff]   ;;  %v731_v35 = vld [vmem:[%s329_s12] sm:$0xff]  }
  0x11   : > { %v725_v13 = vunpack.c.h.bf16 %v747_v8  ;;  %v720_v16 = vunpack.c.l.bf16 %v746_v9  ;;  %v721_v17 = vunpack.c.h.bf16 %v746_v9  ;;  %v728_v18 = vunpack.c.l.bf16 %v748_v14  ;;  %v751_v34 = vld [vmem:[%s329_s12 + $0x18] sm:$0xff]   ;;  %v750_v36 = vld [vmem:[%s329_s12 + $0x10] sm:$0xff]   ;;  %v692_v38 = vld [vmem:[%s933_s4] ss:$0 sm:$0xff] }
  0x12   : > { %v363_v15 = vrot.slane %v359_v7, %v362_v4  ;;  %v729_v19 = vunpack.c.h.bf16 %v748_v14  ;;  %v736_v41 = vunpack.c.l.bf16 %v749_v33  ;;  %v744_v43 = vunpack.c.l.bf16 %v751_v34 }
  0x13   : > { %v732_v45 = vunpack.c.l.bf16 %v731_v35  ;;  %v740_v47 = vunpack.c.l.bf16 %v750_v36  ;;  %v737_v53 = vunpack.c.h.bf16 %v749_v33  ;;  %v745_v55 = vunpack.c.h.bf16 %v751_v34 }
  0x14   : > { %v364_v20 = vmul.f32 %v716_v10, %v363_v15  ;;  %v365_v21 = vmul.f32 %v717_v11, %v363_v15  ;;  %v368_v22 = vmul.f32 %v724_v12, %v363_v15  ;;  %v369_v23 = vmul.f32 %v725_v13, %v363_v15 }
  0x15   : > { %v366_v24 = vmul.f32 %v720_v16, %v363_v15  ;;  %v367_v25 = vmul.f32 %v721_v17, %v363_v15  ;;  %v370_v26 = vmul.f32 %v728_v18, %v363_v15  ;;  %v371_v27 = vmul.f32 %v729_v19, %v363_v15 }
  0x16   : > { %v372_v28 = vpack.c.bf16 %v365_v21, %v364_v20  ;;  %v374_v29 = vpack.c.bf16 %v369_v23, %v368_v22  ;;  %v733_v63 = vunpack.c.h.bf16 %v731_v35  ;;  %v741_v1 = vunpack.c.h.bf16 %v750_v36 }
  0x17   : > { %v373_v30 = vpack.c.bf16 %v367_v25, %v366_v24  ;;  %v375_v31 = vpack.c.bf16 %v371_v27, %v370_v26 }
  0x18   : > { %759 = vmatprep.mubr.msk.bf16.mxu0 %vm377_vm1, %v372_v28  ;;  %763 = vmatprep.mubr.msk.bf16.mxu1 %vm377_vm1, %v374_v29 }
  0x19   : > { %760 = vmatmul.mubr.msk.bf16.vlgmr.msra.gmra.mxu0 %vm377_vm1, %v373_v30  ;;  %764 = vmatmul.mubr.msk.bf16.vlgmr.msra.gmra.mxu1 %vm377_vm1, %v375_v31 }
  0xd9   : > { %v761_v37 = vpop.f32.mrf.mxu0  ;;  %v765_v39 = vpop.f32.mrf.mxu1 }
  0xda   : > { %v468_v40 = vmul.f32 %v761_v37, %v691_v32  ;;  %v472_v42 = vmul.f32 %v765_v39, %v691_v32 }
  0xdb   : > { %v428_v44 = vpop.f32.mrf.mxu0  ;;  %v444_v46 = vpop.f32.mrf.mxu1 }
  0xdc   : > { %v483_v48 = vadd.f32 %v692_v38, %v468_v40  ;;  %v487_v49 = vadd.f32 %v692_v38, %v472_v42  ;;  %v466_v50 = vmul.f32 %v691_v32, %v428_v44  ;;  %v470_v51 = vmul.f32 %v691_v32, %v444_v46 }
  0xdd   : > { %v762_v52 = vpop.f32.mrf.mxu0  ;;  %v766_v54 = vpop.f32.mrf.mxu1 }
  0xde   : > { %v507_v56 = vadd.f32 %v736_v41, %v483_v48  ;;  %v511_v57 = vadd.f32 %v744_v43, %v487_v49  ;;  %v481_v58 = vadd.f32 %v692_v38, %v466_v50  ;;  %v485_v59 = vadd.f32 %v692_v38, %v470_v51 }
  0xdf   : > { %v469_v60 = vmul.f32 %v762_v52, %v691_v32  ;;  %v473_v61 = vmul.f32 %v766_v54, %v691_v32  ;;  %v431_v62 = vpop.f32.mrf.mxu0  ;;  %v447_v0 = vpop.f32.mrf.mxu1 }
  0xe0   : > { %v515_v2 = vmax.f32 %v507_v56, 0.0  ;;  %v519_v3 = vmax.f32 %v511_v57, 0.0  ;;  %v505_v4 = vadd.f32 %v732_v45, %v481_v58  ;;  %v509_v5 = vadd.f32 %v740_v47, %v485_v59 }
  0xe1   : > { %v484_v6 = vadd.f32 %v692_v38, %v469_v60  ;;  %v488_v7 = vadd.f32 %v692_v38, %v473_v61  ;;  %v467_v8 = vmul.f32 %v691_v32, %v431_v62  ;;  %v471_v9 = vmul.f32 %v691_v32, %v447_v0 }
  0xe2   : > { %v708_v10 = vpack.c.bf16 %v515_v2, %v515_v2  ;;  %v712_v11 = vpack.c.bf16 %v519_v3, %v519_v3  ;;  %v513_v12 = vmax.f32 %v505_v4, 0.0  ;;  %v517_v13 = vmax.f32 %v509_v5, 0.0 }
  0xe3   : > { %v508_v14 = vadd.f32 %v737_v53, %v484_v6  ;;  %v512_v15 = vadd.f32 %v745_v55, %v488_v7  ;;  %v482_v16 = vadd.f32 %v692_v38, %v467_v8  ;;  %v486_v17 = vadd.f32 %v692_v38, %v471_v9 }
  0xe4   : > { %556 = vst.msk [vmem:[%s902_s19 + $0x8] sm:$0xf] %vm553_vm2, %v708_v10  ;;  %560 = vst.msk [vmem:[%s902_s19 + $0x18] sm:$0xf] %vm553_vm2, %v712_v11  ;;  %v706_v18 = vpack.c.bf16 %v513_v12, %v513_v12  ;;  %v710_v19 = vpack.c.bf16 %v517_v13, %v517_v13 }
  0xe5   : > { %v516_v20 = vmax.f32 %v508_v14, 0.0  ;;  %v520_v21 = vmax.f32 %v512_v15, 0.0  ;;  %v506_v22 = vadd.f32 %v733_v63, %v482_v16  ;;  %v510_v23 = vadd.f32 %v741_v1, %v486_v17 }
  0xe6   : > { %554 = vst.msk [vmem:[%s902_s19] sm:$0xf] %vm553_vm2, %v706_v18  ;;  %558 = vst.msk [vmem:[%s902_s19 + $0x10] sm:$0xf] %vm553_vm2, %v710_v19 }
  0xe7   : > { %v709_v24 = vpack.c.bf16 %v516_v20, %v516_v20  ;;  %v713_v25 = vpack.c.bf16 %v520_v21, %v520_v21  ;;  %v514_v26 = vmax.f32 %v506_v22, 0.0  ;;  %v518_v27 = vmax.f32 %v510_v23, 0.0 }
  0xe9   : > { %557 = vst.msk [vmem:[%s902_s19 + $0xc] sm:$0xf] %vm553_vm2, %v709_v24  ;;  %561 = vst.msk [vmem:[%s902_s19 + $0x1c] sm:$0xf] %vm553_vm2, %v713_v25  ;;  %v707_v28 = vpack.c.bf16 %v514_v26, %v514_v26  ;;  %v711_v29 = vpack.c.bf16 %v518_v27, %v518_v27 }
  0xeb   : > { %555 = vst.msk [vmem:[%s902_s19 + $0x4] sm:$0xf] %vm553_vm2, %v707_v28  ;;  %559 = vst.msk [vmem:[%s902_s19 + $0x14] sm:$0xf] %vm553_vm2, %v711_v29 }
  0xec PF: > { %s16_s23 = sadd.s32 1, %s817_s23   ;;  %s936_s21 = smov %s813_s22 }
  0xed   : > { %p13_p5 = scmp.ge.s32.totalorder %s16_s23, 4   ;;  %s937_s22 = smov %s939_s24 }
  0xef   :  { %15 = sbr.rel (!%p13_p5) target bundleno = 2 (0x2), region = 80 }

// kernel: _lambda_.53
= control target key start
LH: loop header
LB: loop body
LE: loop exit
PB: predicated region body
PF: predicated region fallthrough
CT: control target
= control target key end

     0   :  { %vm100_vm0 = vcmask 1043456   ;;  %vm75_vm1 = vcmask 64512   ;;  %vm327_vm2 = vcmask 125952   ;;  %s603_s1 = inlined_call_operand.vmem [shape: bf16[8,16], index: 1, kind: input, shape index: {}]   ;;  %s604_s0 = inlined_call_operand.vmem [shape: bf16[128,8], index: 0, kind: input, shape index: {}]   ;;  %s605_s2 = inlined_call_operand.vmem [shape: f32[1,16], index: 2, kind: input, shape index: {}]   ;;  %s606_s3 = inlined_call_operand.vmem [shape: f32[1,16], index: 3, kind: input, shape index: {}]   ;;  %s607_s4 = inlined_call_operand.vmem [shape: bf16[128,16], index: 4, kind: output, shape index: {}]  }
   0x1   :  { %v34_v0 = vld [vmem:[%s603_s1] sm:$0xf]  ;;  %v431_v4 = vld [vmem:[%s604_s0 + $0x8] sm:$0xff]   ;;  %v433_v6 = vld [vmem:[%s604_s0 + $0x10] sm:$0xff]  }
   0x2   :  { %427 = vmatprep.subr.msk.bf16.mxu0 %vm100_vm0, %v34_v0  ;;  %428 = vmatprep.subr.msk.bf16.mxu1 %vm100_vm0, %v34_v0  ;;  %v102_v1 = vsel %vm100_vm0, %v34_v0, 0  ;;  %v429_v2 = vld [vmem:[%s604_s0] sm:$0xff]   ;;  %v432_v5 = vld [vmem:[%s604_s0 + $0x28] sm:$0xff]   ;;  %v434_v7 = vld [vmem:[%s604_s0 + $0x30] sm:$0xff]  }
   0x3   :  { %408 = vmatpush3.bf16.msra.mxu0 %v102_v1  ;;  %426 = vmatpush3.bf16.msra.mxu1 %v102_v1  ;;  %v430_v3 = vld [vmem:[%s604_s0 + $0x20] sm:$0xff]   ;;  %v435_v8 = vld [vmem:[%s604_s0 + $0x18] sm:$0xff]  }
   0x4   :  { %409 = vmatprep.mubr.msk.bf16.mxu0 %vm75_vm1, %v429_v2  ;;  %417 = vmatprep.mubr.msk.bf16.mxu1 %vm75_vm1, %v430_v3  ;;  %v436_v9 = vld [vmem:[%s604_s0 + $0x38] sm:$0xff]   ;;  %v500_v10 = vld [vmem:[%s605_s2] ss:$0 sm:$0xff] }
   0x5   :  { %v505_v12 = vld [vmem:[%s606_s3] ss:$0 sm:$0xff] }
   0x6   :  { %410 = vmatmul.mubr.msk.bf16.vlgmr.msra.gmra.mxu0 %vm75_vm1, %v431_v4  ;;  %418 = vmatmul.mubr.msk.bf16.vlgmr.msra.gmra.mxu1 %vm75_vm1, %v432_v5 }
   0x7   :  { %413 = vmatprep.mubr.msk.bf16.mxu0 %vm75_vm1, %v433_v6  ;;  %421 = vmatprep.mubr.msk.bf16.mxu1 %vm75_vm1, %v434_v7 }
   0xe   :  { %414 = vmatmul.mubr.msk.bf16.gmra.mxu0 %vm75_vm1, %v435_v8  ;;  %422 = vmatmul.mubr.msk.bf16.gmra.mxu1 %vm75_vm1, %v436_v9 }
  0xc6   :  { %v411_v11 = vpop.f32.mrf.mxu0  ;;  %v419_v14 = vpop.f32.mrf.mxu1 }
  0xc7   :  { %v210_v13 = vmul.f32 %v411_v11, %v500_v10  ;;  %v218_v15 = vmul.f32 %v419_v14, %v500_v10 }
  0xc8   :  { %v138_v16 = vpop.f32.mrf.mxu0  ;;  %v170_v19 = vpop.f32.mrf.mxu1 }
  0xc9   :  { %v233_v17 = vadd.f32 %v505_v12, %v210_v13  ;;  %v208_v18 = vmul.f32 %v500_v10, %v138_v16  ;;  %v241_v20 = vadd.f32 %v505_v12, %v218_v15  ;;  %v216_v21 = vmul.f32 %v500_v10, %v170_v19 }
  0xca   :  { %v412_v22 = vpop.f32.mrf.mxu0  ;;  %v420_v26 = vpop.f32.mrf.mxu1 }
  0xcb   :  { %v249_v23 = vmax.f32 %v233_v17, 0.0  ;;  %v231_v24 = vadd.f32 %v505_v12, %v208_v18  ;;  %v211_v25 = vmul.f32 %v412_v22, %v500_v10  ;;  %v257_v27 = vmax.f32 %v241_v20, 0.0 }
  0xcc   :  { %v239_v28 = vadd.f32 %v505_v12, %v216_v21  ;;  %v219_v29 = vmul.f32 %v420_v26, %v500_v10  ;;  %v141_v30 = vpop.f32.mrf.mxu0  ;;  %v173_v35 = vpop.f32.mrf.mxu1 }
  0xcd   :  { %v384_v31 = vpack.c.bf16 %v249_v23, %v249_v23  ;;  %v247_v32 = vmax.f32 %v231_v24, 0.0  ;;  %v234_v33 = vadd.f32 %v505_v12, %v211_v25  ;;  %v209_v34 = vmul.f32 %v500_v10, %v141_v30 }
  0xce   :  { %v392_v36 = vpack.c.bf16 %v257_v27, %v257_v27  ;;  %v255_v37 = vmax.f32 %v239_v28, 0.0  ;;  %v242_v38 = vadd.f32 %v505_v12, %v219_v29  ;;  %v217_v39 = vmul.f32 %v500_v10, %v173_v35  ;;  %v415_v40 = vpop.f32.mrf.mxu0  ;;  %v423_v45 = vpop.f32.mrf.mxu1 }
  0xcf   :  { %330 = vst.msk [vmem:[%s607_s4 + $0x8] sm:$0xf] %vm327_vm2, %v384_v31  ;;  %v382_v41 = vpack.c.bf16 %v247_v32, %v247_v32  ;;  %v250_v42 = vmax.f32 %v234_v33, 0.0  ;;  %v232_v43 = vadd.f32 %v505_v12, %v209_v34  ;;  %v214_v44 = vmul.f32 %v415_v40, %v500_v10 }
  0xd0   :  { %338 = vst.msk [vmem:[%s607_s4 + $0x28] sm:$0xf] %vm327_vm2, %v392_v36  ;;  %v390_v46 = vpack.c.bf16 %v255_v37, %v255_v37  ;;  %v258_v47 = vmax.f32 %v242_v38, 0.0  ;;  %v240_v48 = vadd.f32 %v505_v12, %v217_v39  ;;  %v222_v49 = vmul.f32 %v423_v45, %v500_v10  ;;  %v154_v50 = vpop.f32.mrf.mxu0  ;;  %v186_v55 = vpop.f32.mrf.mxu1 }
  0xd1   :  { %328 = vst.msk [vmem:[%s607_s4] sm:$0xf] %vm327_vm2, %v382_v41  ;;  %v385_v51 = vpack.c.bf16 %v250_v42, %v250_v42  ;;  %v248_v52 = vmax.f32 %v232_v43, 0.0  ;;  %v237_v53 = vadd.f32 %v505_v12, %v214_v44  ;;  %v212_v54 = vmul.f32 %v500_v10, %v154_v50 }
  0xd2   :  { %336 = vst.msk [vmem:[%s607_s4 + $0x20] sm:$0xf] %vm327_vm2, %v390_v46  ;;  %v393_v56 = vpack.c.bf16 %v258_v47, %v258_v47  ;;  %v256_v57 = vmax.f32 %v240_v48, 0.0  ;;  %v245_v58 = vadd.f32 %v505_v12, %v222_v49  ;;  %v220_v59 = vmul.f32 %v500_v10, %v186_v55  ;;  %v416_v60 = vpop.f32.mrf.mxu0  ;;  %v424_v1 = vpop.f32.mrf.mxu1 }
  0xd3   :  { %331 = vst.msk [vmem:[%s607_s4 + $0xc] sm:$0xf] %vm327_vm2, %v385_v51  ;;  %v383_v61 = vpack.c.bf16 %v248_v52, %v248_v52  ;;  %v253_v62 = vmax.f32 %v237_v53, 0.0  ;;  %v235_v63 = vadd.f32 %v505_v12, %v212_v54  ;;  %v215_v0 = vmul.f32 %v416_v60, %v500_v10 }
  0xd4   :  { %339 = vst.msk [vmem:[%s607_s4 + $0x2c] sm:$0xf] %vm327_vm2, %v393_v56  ;;  %v391_v2 = vpack.c.bf16 %v256_v57, %v256_v57  ;;  %v261_v3 = vmax.f32 %v245_v58, 0.0  ;;  %v243_v4 = vadd.f32 %v505_v12, %v220_v59  ;;  %v223_v5 = vmul.f32 %v424_v1, %v500_v10  ;;  %v157_v6 = vpop.f32.mrf.mxu0  ;;  %v189_v13 = vpop.f32.mrf.mxu1 }
  0xd5   :  { %329 = vst.msk [vmem:[%s607_s4 + $0x4] sm:$0xf] %vm327_vm2, %v383_v61  ;;  %v388_v7 = vpack.c.bf16 %v253_v62, %v253_v62  ;;  %v251_v8 = vmax.f32 %v235_v63, 0.0  ;;  %v238_v9 = vadd.f32 %v505_v12, %v215_v0  ;;  %v213_v11 = vmul.f32 %v500_v10, %v157_v6 }
  0xd6   :  { %337 = vst.msk [vmem:[%s607_s4 + $0x24] sm:$0xf] %vm327_vm2, %v391_v2  ;;  %v396_v14 = vpack.c.bf16 %v261_v3, %v261_v3  ;;  %v259_v15 = vmax.f32 %v243_v4, 0.0  ;;  %v246_v16 = vadd.f32 %v505_v12, %v223_v5  ;;  %v221_v17 = vmul.f32 %v500_v10, %v189_v13 }
  0xd7   :  { %334 = vst.msk [vmem:[%s607_s4 + $0x18] sm:$0xf] %vm327_vm2, %v388_v7  ;;  %v386_v18 = vpack.c.bf16 %v251_v8, %v251_v8  ;;  %v254_v19 = vmax.f32 %v238_v9, 0.0  ;;  %v236_v20 = vadd.f32 %v505_v12, %v213_v11 }
  0xd8   :  { %342 = vst.msk [vmem:[%s607_s4 + $0x38] sm:$0xf] %vm327_vm2, %v396_v14  ;;  %v394_v21 = vpack.c.bf16 %v259_v15, %v259_v15  ;;  %v262_v22 = vmax.f32 %v246_v16, 0.0  ;;  %v244_v23 = vadd.f32 %v505_v12, %v221_v17 }
  0xd9   :  { %332 = vst.msk [vmem:[%s607_s4 + $0x10] sm:$0xf] %vm327_vm2, %v386_v18  ;;  %v389_v10 = vpack.c.bf16 %v254_v19, %v254_v19  ;;  %v252_v24 = vmax.f32 %v236_v20, 0.0 }
  0xda   :  { %340 = vst.msk [vmem:[%s607_s4 + $0x30] sm:$0xf] %vm327_vm2, %v394_v21  ;;  %v397_v25 = vpack.c.bf16 %v262_v22, %v262_v22  ;;  %v260_v26 = vmax.f32 %v244_v23, 0.0 }
  0xdb   :  { %335 = vst.msk [vmem:[%s607_s4 + $0x1c] sm:$0xf] %vm327_vm2, %v389_v10  ;;  %v387_v12 = vpack.c.bf16 %v252_v24, %v252_v24 }
  0xdc   :  { %343 = vst.msk [vmem:[%s607_s4 + $0x3c] sm:$0xf] %vm327_vm2, %v397_v25  ;;  %v395_v27 = vpack.c.bf16 %v260_v26, %v260_v26 }
  0xdd   :  { %333 = vst.msk [vmem:[%s607_s4 + $0x14] sm:$0xf] %vm327_vm2, %v387_v12 }
  0xde   :  { %341 = vst.msk [vmem:[%s607_s4 + $0x34] sm:$0xf] %vm327_vm2, %v395_v27 }

// kernel: _lambda_.54
= control target key start
LH: loop header
LB: loop body
LE: loop exit
PB: predicated region body
PF: predicated region fallthrough
CT: control target
= control target key end

     0   :  { %v278_v0 = vmov 0   ;;  %vm112_vm0 = vcmask 130048   ;;  %vm210_vm1 = vcmask 125952   ;;  %s361_s1 = inlined_call_operand.vmem [shape: bf16[144,16], index: 1, kind: input, shape index: {}]   ;;  %s362_s0 = inlined_call_operand.vmem [shape: bf16[32,144], index: 0, kind: input, shape index: {}]   ;;  %s363_s2 = inlined_call_operand.vmem [shape: f32[1,16], index: 2, kind: input, shape index: {}]   ;;  %s364_s3 = inlined_call_operand.vmem [shape: f32[1,16], index: 3, kind: input, shape index: {}]   ;;  %s365_s4 = inlined_call_operand.vmem [shape: bf16[32,16], index: 4, kind: output, shape index: {}]  }
   0x1   :  { %119 = vmatprep.subr.bf16.mxu0 %v278_v0  ;;  %244 = vmatprep.subr.bf16.mxu1 %v278_v0  ;;  %v263_v1 = vld [vmem:[%s361_s1 + $0x38] sm:$0xff]   ;;  %v264_v2 = vld [vmem:[%s361_s1 + $0x30] sm:$0xff]   ;;  %v265_v3 = vld [vmem:[%s361_s1 + $0x28] sm:$0xff]  }
   0x2   :  { %120 = vmatpush1.bf16.msra.mxu0 %v263_v1  ;;  %253 = vmatpush1.bf16.msra.mxu1 %v263_v1  ;;  %v266_v4 = vld [vmem:[%s361_s1 + $0x20] sm:$0xff]   ;;  %v277_v6 = vld [vmem:[%s362_s0 + $0x14] ss:$8 sps:$4 sm:$0xff]   ;;  %v269_v9 = vld [vmem:[%s361_s1 + $0x8] sm:$0xff]  }
   0x3   :  { %121 = vmatprep.subr.bf16.mxu0 %v278_v0  ;;  %245 = vmatprep.subr.bf16.mxu1 %v278_v0  ;;  %v274_v5 = vld [vmem:[%s362_s0 + $0x4] ss:$8 sps:$4 sm:$0xff]   ;;  %v267_v7 = vld [vmem:[%s361_s1 + $0x18] sm:$0xff]   ;;  %v268_v8 = vld [vmem:[%s361_s1 + $0x10] sm:$0xff]  }
   0x4   :  { %232 = vmatprep.mubr.msk.bf16.mxu0 %vm112_vm0, %v274_v5  ;;  %233 = vmatprep.mubr.msk.bf16.mxu1 %vm112_vm0, %v277_v6  ;;  %v270_v10 = vld [vmem:[%s361_s1] sm:$0xff]   ;;  %v275_v13 = vld [vmem:[%s362_s0 + $0x10] ss:$8 sps:$4 sm:$0xff]  }
   0x5   :  { %v271_v11 = vld [vmem:[%s361_s1 + $0x40] sm:$0xff]  }
   0x6   :  { %122 = vmatpush1.bf16.msra.mxu0 %v264_v2  ;;  %254 = vmatpush1.bf16.msra.mxu1 %v264_v2  ;;  %v272_v12 = vld [vmem:[%s362_s0] ss:$8 sps:$4 sm:$0xff]  }
   0x7   :  { %123 = vmatprep.subr.bf16.mxu0 %v278_v0  ;;  %246 = vmatprep.subr.bf16.mxu1 %v278_v0  ;;  %v234_v14 = vld [vmem:[%s363_s2] ss:$0 sm:$0xff] }
   0x8   :  { %v235_v16 = vld [vmem:[%s364_s3] ss:$0 sm:$0xff] }
   0xa   :  { %124 = vmatpush1.bf16.msra.mxu0 %v265_v3  ;;  %255 = vmatpush1.bf16.msra.mxu1 %v265_v3 }
   0xb   :  { %125 = vmatprep.subr.bf16.mxu0 %v278_v0  ;;  %247 = vmatprep.subr.bf16.mxu1 %v278_v0 }
   0xe   :  { %126 = vmatpush1.bf16.msra.mxu0 %v266_v4  ;;  %256 = vmatpush1.bf16.msra.mxu1 %v266_v4 }
   0xf   :  { %127 = vmatprep.subr.bf16.mxu0 %v278_v0  ;;  %248 = vmatprep.subr.bf16.mxu1 %v278_v0 }
  0x12   :  { %128 = vmatpush1.bf16.msra.mxu0 %v267_v7  ;;  %257 = vmatpush1.bf16.msra.mxu1 %v267_v7 }
  0x13   :  { %129 = vmatprep.subr.bf16.mxu0 %v278_v0  ;;  %249 = vmatprep.subr.bf16.mxu1 %v278_v0 }
  0x16   :  { %130 = vmatpush1.bf16.msra.mxu0 %v268_v8  ;;  %258 = vmatpush1.bf16.msra.mxu1 %v268_v8 }
  0x17   :  { %131 = vmatprep.subr.bf16.mxu0 %v278_v0  ;;  %250 = vmatprep.subr.bf16.mxu1 %v278_v0 }
  0x1a   :  { %132 = vmatpush1.bf16.msra.mxu0 %v269_v9  ;;  %259 = vmatpush1.bf16.msra.mxu1 %v269_v9 }
  0x1b   :  { %133 = vmatprep.subr.bf16.mxu0 %v278_v0  ;;  %251 = vmatprep.subr.bf16.mxu1 %v278_v0 }
  0x1e   :  { %134 = vmatpush1.bf16.msra.mxu0 %v270_v10  ;;  %260 = vmatpush1.bf16.msra.mxu1 %v270_v10 }
  0x1f   :  { %149 = vmatprep.subr.bf16.mxu0 %v278_v0  ;;  %252 = vmatprep.subr.bf16.mxu1 %v278_v0 }
  0x22   :  { %150 = vmatpush2.bf16.msra.mxu0 %v271_v11  ;;  %261 = vmatpush2.bf16.msra.mxu1 %v271_v11 }
  0x25   :  { %152 = vmatmul.mubr.bf16.vlgmr.msra.gmra.mxu0 %v272_v12  ;;  %160 = vmatmul.mubr.bf16.vlgmr.msra.gmra.mxu1 %v275_v13 }
  0xe5   :  { %v153_v15 = vpop.f32.mrf.mxu0  ;;  %v161_v17 = vpop.f32.mrf.mxu1 }
  0xe6   :  { %v175_v18 = vmul.f32 %v234_v14, %v153_v15  ;;  %v177_v19 = vmul.f32 %v234_v14, %v161_v17 }
  0xe7   :  { %v155_v20 = vpop.f32.mrf.mxu0  ;;  %v163_v21 = vpop.f32.mrf.mxu1 }
  0xe8   :  { %v186_v22 = vadd.f32 %v235_v16, %v175_v18  ;;  %v188_v23 = vadd.f32 %v235_v16, %v177_v19 }
  0xe9   :  { %v156_v24 = vpop.f32.mrf.mxu0  ;;  %v164_v25 = vpop.f32.mrf.mxu1 }
  0xea   :  { %v190_v26 = vmax.f32 %v186_v22, 0.0  ;;  %v192_v27 = vmax.f32 %v188_v23, 0.0  ;;  %v176_v28 = vmul.f32 %v234_v14, %v156_v24  ;;  %v178_v29 = vmul.f32 %v234_v14, %v164_v25 }
  0xeb   :  { %v158_v30 = vpop.f32.mrf.mxu0  ;;  %v166_v31 = vpop.f32.mrf.mxu1 }
  0xec   :  { %v240_v32 = vpack.c.bf16 %v190_v26, %v190_v26  ;;  %v242_v33 = vpack.c.bf16 %v192_v27, %v192_v27  ;;  %v187_v34 = vadd.f32 %v235_v16, %v176_v28  ;;  %v189_v35 = vadd.f32 %v235_v16, %v178_v29 }
  0xee   :  { %211 = vst.msk [vmem:[%s365_s4] sm:$0xf] %vm210_vm1, %v240_v32  ;;  %213 = vst.msk [vmem:[%s365_s4 + $0x8] sm:$0xf] %vm210_vm1, %v242_v33  ;;  %v191_v36 = vmax.f32 %v187_v34, 0.0  ;;  %v193_v37 = vmax.f32 %v189_v35, 0.0 }
  0xf0   :  { %v241_v38 = vpack.c.bf16 %v191_v36, %v191_v36  ;;  %v243_v39 = vpack.c.bf16 %v193_v37, %v193_v37 }
  0xf2   :  { %212 = vst.msk [vmem:[%s365_s4 + $0x4] sm:$0xf] %vm210_vm1, %v241_v38  ;;  %214 = vst.msk [vmem:[%s365_s4 + $0xc] sm:$0xf] %vm210_vm1, %v243_v39 }

// kernel: _lambda_.55
= control target key start
LH: loop header
LB: loop body
LE: loop exit
PB: predicated region body
PF: predicated region fallthrough
CT: control target
= control target key end

     0   :  { %v110_v0 = vmov 0.0   ;;  %vm111_vm0 = vmmov 0   ;;  %vm27_vm1 = vcmask 130048   ;;  %vm89_vm2 = vcmask 57344   ;;  %s152_s1 = inlined_call_operand.vmem [shape: bf16[16,8], index: 1, kind: input, shape index: {}]   ;;  %s153_s0 = inlined_call_operand.vmem [shape: bf16[2,16], index: 0, kind: input, shape index: {}]   ;;  %s154_s2 = inlined_call_operand.vmem [shape: f32[1,8], index: 2, kind: input, shape index: {}]   ;;  %s155_s3 = inlined_call_operand.vmem [shape: f32[1,8], index: 3, kind: input, shape index: {}]   ;;  %s156_s4 = inlined_call_operand.vmem [shape: bf16[2,8], index: 4, kind: output, shape index: {}]  }
   0x1   :  { %101 = vmatprep.subr.bf16.mxu0 %v110_v0  ;;  %v109_v1 = vld [vmem:[%s152_s1] sm:$0xff]   ;;  %103 = vmatprep.mubr.msk.bf16.mxu0 %vm111_vm0, %v110_v0 }
   0x2   :  { %102 = vmatpush3.bf16.msra.mxu0 %v109_v1  ;;  %v18_v2 = vld [vmem:[%s153_s0] sm:$0x1] }
   0x3   :  { %v97_v3 = vld [vmem:[%s154_s2] ss:$0 sm:$0xff] }
   0x4   :  { %v98_v5 = vld [vmem:[%s155_s3] ss:$0 sm:$0xff] }
   0x5   :  { %104 = vmatmul.mubr.msk.bf16.vlgmr.msra.gmra.mxu0 %vm27_vm1, %v18_v2 }
  0xc5   :  { %v65_v4 = vpop.f32.mrf.mxu0 }
  0xc6   :  { %v78_v6 = vmul.f32 %v97_v3, %v65_v4 }
  0xc7   :  { %v105_v7 = vpop.f32.mrf.mxu0 }
  0xc8   :  { %v86_v8 = vadd.f32 %v98_v5, %v78_v6 }
  0xc9   :  { %v68_v9 = vpop.f32.mrf.mxu0 }
  0xca   :  { %v87_v10 = vmax.f32 %v86_v8, 0.0 }
  0xcb   :  { %v106_v11 = vpop.f32.mrf.mxu0 }
  0xcc   :  { %v88_v12 = vpack.c.bf16 %v87_v10, %v87_v10 }
  0xce   :  { %90 = vst.msk [vmem:[%s156_s4] sm:$0x1] %vm89_vm2, %v88_v12 }

// kernel: _lambda_.56
= control target key start
LH: loop header
LB: loop body
LE: loop exit
PB: predicated region body
PF: predicated region fallthrough
CT: control target
= control target key end

     0   :  { %vm24_vm0 = vcmask 1043456   ;;  %v115_v0 = vmov 0.0   ;;  %vm116_vm1 = vmmov 0   ;;  %vm20_vm2 = vcmask 64512   ;;  %s157_s1 = inlined_call_operand.vmem [shape: bf16[8,16], index: 1, kind: input, shape index: {}]   ;;  %s158_s0 = inlined_call_operand.vmem [shape: bf16[2,8], index: 0, kind: input, shape index: {}]   ;;  %s159_s2 = inlined_call_operand.vmem [shape: f32[1,16], index: 2, kind: input, shape index: {}]   ;;  %s160_s3 = inlined_call_operand.vmem [shape: f32[1,16], index: 3, kind: input, shape index: {}]   ;;  %s161_s4 = inlined_call_operand.vmem [shape: bf16[2,16], index: 4, kind: output, shape index: {}]  }
   0x1   :  { %103 = vmatprep.subr.bf16.mxu0 %v115_v0  ;;  %v19_v1 = vld [vmem:[%s157_s1] sm:$0xf]  ;;  %105 = vmatprep.mubr.msk.bf16.mxu0 %vm116_vm1, %v115_v0  ;;  %vm91_vm3 = vcmask 122880  }
   0x2   :  { %v26_v2 = vsel %vm24_vm0, %v19_v1, 0  ;;  %v18_v3 = vld [vmem:[%s158_s0] sm:$0x1] }
   0x3   :  { %104 = vmatpush3.bf16.msra.mxu0 %v26_v2  ;;  %v98_v4 = vld [vmem:[%s159_s2] ss:$0 sm:$0xff] }
   0x4   :  { %v99_v6 = vld [vmem:[%s160_s3] ss:$0 sm:$0xff] }
   0x6   :  { %106 = vmatmul.mubr.msk.bf16.vlgmr.msra.gmra.mxu0 %vm20_vm2, %v18_v3 }
  0xc6   :  { %v62_v5 = vpop.f32.mrf.mxu0 }
  0xc7   :  { %v75_v7 = vmul.f32 %v98_v4, %v62_v5 }
  0xc8   :  { %v107_v8 = vpop.f32.mrf.mxu0 }
  0xc9   :  { %v83_v9 = vadd.f32 %v99_v6, %v75_v7 }
  0xca   :  { %v65_v10 = vpop.f32.mrf.mxu0 }
  0xcb   :  { %v100_v11 = vmul.f32 -1.442695, %v83_v9 }
  0xcc   :  { %v108_v12 = vpop.f32.mrf.mxu0 }
  0xcd   :  { %111 = vpow2.f32 %v100_v11 }
  0xda   :  { %v112_v13 = vpop.eup %111 }
  0xdb   :  { %v87_v14 = vadd.f32 1.0, %v112_v13 }
  0xdd   :  { %113 = vrcp.f32 %v87_v14 }
  0xea   :  { %v114_v15 = vpop.eup %113 }
  0xeb   :  { %v90_v16 = vpack.c.bf16 %v114_v15, %v114_v15 }
  0xed   :  { %92 = vst.msk [vmem:[%s161_s4] sm:$0x1] %vm91_vm3, %v90_v16 }

// kernel: _lambda_.58
= control target key start
LH: loop header
LB: loop body
LE: loop exit
PB: predicated region body
PF: predicated region fallthrough
CT: control target
= control target key end

     0   :  { %s687_s21 = smov 0   ;;  %s689_s22 = smov 0   ;;  %s740_s0 = inlined_call_operand.vmem [shape: bf16[2,16,16], index: 0, kind: input, shape index: {}]   ;;  %s741_s1 = inlined_call_operand.vmem [shape: bf16[2,1,16], index: 1, kind: input, shape index: {}]   ;;  %s742_s2 = inlined_call_operand.vmem [shape: bf16[16,16], index: 2, kind: input, shape index: {}]   ;;  %s743_s3 = inlined_call_operand.vmem [shape: f32[1,16], index: 3, kind: input, shape index: {}]   ;;  %s744_s4 = inlined_call_operand.vmem [shape: f32[1,16], index: 4, kind: input, shape index: {}]   ;;  %s745_s5 = inlined_call_operand.vmem [shape: bf16[2,16,16], index: 5, kind: input, shape index: {}]   ;;  %s746_s6 = inlined_call_operand.vmem [shape: bf16[2,16,16], index: 6, kind: output, shape index: {}]  }
   0x1   :  { %s691_s23 = smov 0  }
   0x2 LB: > { %s28_s24 = sadd.s32 1, %s644_s22  ;;  %p563_p0 = scmp.ge.s32.totalorder %s648_s23, 1  ;;  %s648_s23 = sphi %s691_s23, %s16_s23   ;;  %s644_s22 = sphi %s689_s22, %s748_s22   ;;  %s640_s21 = sphi %s687_s21, %s747_s21  }
   0x3   : > { %p30_p1 = scmp.ge.s32.totalorder %s28_s24, 2  ;;  %p258_p2 = scmp.lt.s32.totalorder %s648_s23, 3 }
   0x5   : > { %s750_s24 = smov (%p30_p1, %s28_s24), 0  ;;  %p259_p3 = pnand %p563_p0, %p258_p2 }
   0x6   : > { %p309_p4 = scmp.lt.s32.totalorder (!%p259_p3), %s640_s21, 1 }
   0x7   : > { %262 = sbr.rel (%p259_p3) target bundleno = 232 (0xe8), region = 44 }
   0xc   : > { %v625_v0 = vld [vmem:[%s742_s2] sm:$0xff]   ;;  %v348_v1 = vlaneseq  ;;  %v650_v2 = vmov 0.0   ;;  %vm651_vm0 = vmmov 0   ;;  %s752_s21 = smov (!%p309_p4, %s640_s21), 1  ;;  %vm363_vm1 = vcmask 130048  }
   0xd   : > { %593 = vmatprep.subr.bf16.mxu0 %v650_v2  ;;  %595 = vmatprep.mubr.msk.bf16.mxu0 %vm651_vm0, %v650_v2  ;;  %s708_s27 = sshll.u32 %s752_s21, 3  ;;  %s320_s30 = scalar_lea.vmem %s741_s1, %s752_s21  ;;  %v572_v14 = vld [vmem:[%s743_s3] ss:$0 sm:$0xff]  ;;  %vm442_vm2 = vcmask 125952  }
   0xe   : > { %594 = vmatpush3.bf16.msra.mxu0 %v625_v0  ;;  %v349_v3 = vshrl.u32 %v348_v1, 7  ;;  %s316_s9 = scalar_lea.vmem %s740_s0, %s708_s27  ;;  %v346_v5 = vld [vmem:[%s320_s30] sm:$0x1]  ;;  %s329_s12 = scalar_lea.vmem %s745_s5, %s708_s27 }
   0xf   : > { %v584_v6 = vld [vmem:[%s316_s9] sm:$0xff]   ;;  %v347_v7 = vunpack.c.l.bf16 %v346_v5  ;;  %s339_s19 = scalar_lea.vmem %s746_s6, %s708_s27 }
  0x10   : > { %v350_v4 = vsub.s32 0, %v349_v3  ;;  %v585_v8 = vunpack.c.l.bf16 %v584_v6  ;;  %v586_v9 = vunpack.c.h.bf16 %v584_v6  ;;  %v588_v15 = vld [vmem:[%s329_s12] sm:$0xff]  }
  0x11   : > { %v573_v17 = vld [vmem:[%s744_s4] ss:$0 sm:$0xff]  ;;  %v589_v19 = vunpack.c.l.bf16 %v588_v15  ;;  %v590_v25 = vunpack.c.h.bf16 %v588_v15 }
  0x12   : > { %v351_v10 = vrot.slane %v347_v7, %v350_v4 }
  0x14   : > { %v352_v11 = vmul.f32 %v585_v8, %v351_v10  ;;  %v353_v12 = vmul.f32 %v586_v9, %v351_v10 }
  0x16   : > { %v354_v13 = vpack.c.bf16 %v353_v12, %v352_v11 }
  0x18   : > { %596 = vmatmul.mubr.msk.bf16.vlgmr.msra.gmra.mxu0 %vm363_vm1, %v354_v13 }
  0xd8   : > { %v401_v16 = vpop.f32.mrf.mxu0 }
  0xd9   : > { %v415_v18 = vmul.f32 %v572_v14, %v401_v16 }
  0xda   : > { %v597_v20 = vpop.f32.mrf.mxu0 }
  0xdb   : > { %v424_v21 = vadd.f32 %v573_v17, %v415_v18 }
  0xdc   : > { %v404_v22 = vpop.f32.mrf.mxu0 }
  0xdd   : > { %v430_v23 = vadd.f32 %v589_v19, %v424_v21  ;;  %v416_v24 = vmul.f32 %v572_v14, %v404_v22 }
  0xde   : > { %v598_v26 = vpop.f32.mrf.mxu0 }
  0xdf   : > { %v432_v27 = vmax.f32 %v430_v23, 0.0  ;;  %v425_v28 = vadd.f32 %v573_v17, %v416_v24 }
  0xe1   : > { %v581_v29 = vpack.c.bf16 %v432_v27, %v432_v27  ;;  %v431_v30 = vadd.f32 %v590_v25, %v425_v28 }
  0xe3   : > { %443 = vst.msk [vmem:[%s339_s19] sm:$0xf] %vm442_vm2, %v581_v29  ;;  %v433_v31 = vmax.f32 %v431_v30, 0.0 }
  0xe5   : > { %v582_v32 = vpack.c.bf16 %v433_v31, %v433_v31 }
  0xe7   : > { %444 = vst.msk [vmem:[%s339_s19 + $0x4] sm:$0xf] %vm442_vm2, %v582_v32 }
  0xe8 PF: > { %s16_s23 = sadd.s32 1, %s648_s23   ;;  %s747_s21 = smov %s644_s22 }
  0xe9   : > { %p13_p5 = scmp.ge.s32.totalorder %s16_s23, 4   ;;  %s748_s22 = smov %s750_s24 }
  0xeb   :  { %15 = sbr.rel (!%p13_p5) target bundleno = 2 (0x2), region = 80 }

// kernel: _lambda_.59
= control target key start
LH: loop header
LB: loop body
LE: loop exit
PB: predicated region body
PF: predicated region fallthrough
CT: control target
= control target key end

     0   :  { %vm40_vm0 = vcmask 130048   ;;  %vm138_vm1 = vcmask 257024   ;;  %s226_s1 = inlined_call_operand.vmem [shape: bf16[16,32], index: 1, kind: input, shape index: {}]   ;;  %s227_s0 = inlined_call_operand.vmem [shape: bf16[32,16], index: 0, kind: input, shape index: {}]   ;;  %s228_s2 = inlined_call_operand.vmem [shape: f32[1,32], index: 2, kind: input, shape index: {}]   ;;  %s229_s3 = inlined_call_operand.vmem [shape: f32[1,32], index: 3, kind: input, shape index: {}]   ;;  %s230_s4 = inlined_call_operand.vmem [shape: bf16[32,32], index: 4, kind: output, shape index: {}]  }
   0x1   :  { %v171_v0 = vld [vmem:[%s226_s1] sm:$0xff]   ;;  %v173_v2 = vld [vmem:[%s227_s0 + $0x8] sm:$0xff]  }
   0x2   :  { %v172_v1 = vld [vmem:[%s227_s0] sm:$0xff]   ;;  %165 = vmatprep.subr.bf16.mxu0 %v171_v0 }
   0x3   :  { %166 = vmatpush3.bf16.msra.mxu0 %v171_v0  ;;  %167 = vmatprep.mubr.msk.bf16.mxu0 %vm40_vm0, %v172_v1  ;;  %v152_v3 = vld [vmem:[%s228_s2] ss:$0 sm:$0xff] }
   0x4   :  { %v153_v5 = vld [vmem:[%s229_s3] ss:$0 sm:$0xff] }
   0x6   :  { %168 = vmatmul.mubr.msk.bf16.vlgmr.msra.gmra.mxu0 %vm40_vm0, %v173_v2 }
  0xc6   :  { %v169_v4 = vpop.f32.mrf.mxu0 }
  0xc7   :  { %v105_v6 = vmul.f32 %v169_v4, %v152_v3 }
  0xc8   :  { %v81_v7 = vpop.f32.mrf.mxu0 }
  0xc9   :  { %v116_v8 = vadd.f32 %v153_v5, %v105_v6  ;;  %v103_v9 = vmul.f32 %v152_v3, %v81_v7 }
  0xca   :  { %v170_v10 = vpop.f32.mrf.mxu0 }
  0xcb   :  { %v120_v11 = vmax.f32 %v116_v8, 0.0  ;;  %v114_v12 = vadd.f32 %v153_v5, %v103_v9  ;;  %v106_v13 = vmul.f32 %v170_v10, %v152_v3 }
  0xcc   :  { %v84_v14 = vpop.f32.mrf.mxu0 }
  0xcd   :  { %v160_v15 = vpack.c.bf16 %v120_v11, %v120_v11  ;;  %v118_v16 = vmax.f32 %v114_v12, 0.0  ;;  %v117_v17 = vadd.f32 %v153_v5, %v106_v13  ;;  %v104_v18 = vmul.f32 %v152_v3, %v84_v14 }
  0xcf   :  { %141 = vst.msk [vmem:[%s230_s4 + $0x8] sm:$0xf] %vm138_vm1, %v160_v15  ;;  %v158_v19 = vpack.c.bf16 %v118_v16, %v118_v16  ;;  %v121_v20 = vmax.f32 %v117_v17, 0.0  ;;  %v115_v21 = vadd.f32 %v153_v5, %v104_v18 }
  0xd1   :  { %139 = vst.msk [vmem:[%s230_s4] sm:$0xf] %vm138_vm1, %v158_v19  ;;  %v161_v22 = vpack.c.bf16 %v121_v20, %v121_v20  ;;  %v119_v23 = vmax.f32 %v115_v21, 0.0 }
  0xd3   :  { %142 = vst.msk [vmem:[%s230_s4 + $0xc] sm:$0xf] %vm138_vm1, %v161_v22  ;;  %v159_v24 = vpack.c.bf16 %v119_v23, %v119_v23 }
  0xd5   :  { %140 = vst.msk [vmem:[%s230_s4 + $0x4] sm:$0xf] %vm138_vm1, %v159_v24 }

// kernel: _lambda_.63
= control target key start
LH: loop header
LB: loop body
LE: loop exit
PB: predicated region body
PF: predicated region fallthrough
CT: control target
= control target key end

     0   :  { %v109_v0 = vmov 0.0   ;;  %vm110_vm0 = vmmov 0   ;;  %vm27_vm1 = vcmask 130048   ;;  %vm88_vm2 = vcmask 257024   ;;  %s151_s1 = inlined_call_operand.vmem [shape: bf16[16,32], index: 1, kind: input, shape index: {}]   ;;  %s152_s0 = inlined_call_operand.vmem [shape: bf16[8,16], index: 0, kind: input, shape index: {}]   ;;  %s153_s2 = inlined_call_operand.vmem [shape: f32[1,32], index: 2, kind: input, shape index: {}]   ;;  %s154_s3 = inlined_call_operand.vmem [shape: f32[1,32], index: 3, kind: input, shape index: {}]   ;;  %s155_s4 = inlined_call_operand.vmem [shape: bf16[8,32], index: 4, kind: output, shape index: {}]  }
   0x1   :  { %100 = vmatprep.subr.bf16.mxu0 %v109_v0  ;;  %v108_v1 = vld [vmem:[%s151_s1] sm:$0xff]   ;;  %102 = vmatprep.mubr.msk.bf16.mxu0 %vm110_vm0, %v109_v0 }
   0x2   :  { %101 = vmatpush3.bf16.msra.mxu0 %v108_v1  ;;  %v18_v2 = vld [vmem:[%s152_s0] sm:$0xf] }
   0x3   :  { %v96_v3 = vld [vmem:[%s153_s2] ss:$0 sm:$0xff] }
   0x4   :  { %v97_v5 = vld [vmem:[%s154_s3] ss:$0 sm:$0xff] }
   0x5   :  { %103 = vmatmul.mubr.msk.bf16.vlgmr.msra.gmra.mxu0 %vm27_vm1, %v18_v2 }
  0xc5   :  { %v65_v4 = vpop.f32.mrf.mxu0 }
  0xc6   :  { %v78_v6 = vmul.f32 %v96_v3, %v65_v4 }
  0xc7   :  { %v104_v7 = vpop.f32.mrf.mxu0 }
  0xc8   :  { %v86_v8 = vadd.f32 %v97_v5, %v78_v6 }
  0xc9   :  { %v68_v9 = vpop.f32.mrf.mxu0 }
  0xca   :  { %v87_v10 = vpack.c.bf16 %v86_v8, %v86_v8 }
  0xcb   :  { %v105_v11 = vpop.f32.mrf.mxu0 }
  0xcc   :  { %89 = vst.msk [vmem:[%s155_s4] sm:$0xf] %vm88_vm2, %v87_v10 }

// kernel: _lambda_.64
= control target key start
LH: loop header
LB: loop body
LE: loop exit
PB: predicated region body
PF: predicated region fallthrough
CT: control target
= control target key end

     0   :  { %s627_s21 = smov 0   ;;  %s629_s22 = smov 0   ;;  %s683_s0 = inlined_call_operand.vmem [shape: bf16[2,4,32], index: 0, kind: input, shape index: {}]   ;;  %s684_s1 = inlined_call_operand.vmem [shape: bf16[2,1,32], index: 1, kind: input, shape index: {}]   ;;  %s685_s2 = inlined_call_operand.vmem [shape: bf16[32,32], index: 2, kind: input, shape index: {}]   ;;  %s686_s3 = inlined_call_operand.vmem [shape: f32[1,32], index: 3, kind: input, shape index: {}]   ;;  %s687_s4 = inlined_call_operand.vmem [shape: f32[1,32], index: 4, kind: input, shape index: {}]   ;;  %s688_s5 = inlined_call_operand.vmem [shape: bf16[2,4,32], index: 5, kind: input, shape index: {}]   ;;  %s689_s6 = inlined_call_operand.vmem [shape: bf16[2,4,32], index: 6, kind: output, shape index: {}]  }
   0x1   :  { %s631_s23 = smov 0  }
   0x2 LB: > { %s28_s24 = sadd.s32 1, %s584_s22  ;;  %p516_p0 = scmp.ge.s32.totalorder %s588_s23, 1  ;;  %s588_s23 = sphi %s631_s23, %s16_s23   ;;  %s584_s22 = sphi %s629_s22, %s691_s22   ;;  %s580_s21 = sphi %s627_s21, %s690_s21  }
   0x3   : > { %p30_p1 = scmp.ge.s32.totalorder %s28_s24, 2  ;;  %p252_p2 = scmp.lt.s32.totalorder %s588_s23, 3 }
   0x5   : > { %s693_s24 = smov (%p30_p1, %s28_s24), 0  ;;  %p253_p3 = pnand %p516_p0, %p252_p2 }
   0x6   : > { %p296_p4 = scmp.lt.s32.totalorder (!%p253_p3), %s580_s21, 1 }
   0x7   : > { %256 = sbr.rel (%p253_p3) target bundleno = 228 (0xe4), region = 44 }
   0xc   : > { %v564_v0 = vld [vmem:[%s685_s2 + $0x8] sm:$0xff]   ;;  %v325_v1 = vlaneseq  ;;  %v590_v2 = vmov 0.0   ;;  %v565_v3 = vld [vmem:[%s685_s2] sm:$0xff]   ;;  %vm591_vm0 = vmmov 0   ;;  %s695_s21 = smov (!%p296_p4, %s580_s21), 1  ;;  %vm347_vm1 = vcmask 261120  }
   0xd   : > { %530 = vmatprep.subr.bf16.mxu0 %v590_v2  ;;  %534 = vmatprep.mubr.msk.bf16.mxu0 %vm591_vm0, %v590_v2  ;;  %s651_s29 = sshll.u32 %s695_s21, 1  ;;  %s305_s8 = scalar_lea.vmem %s684_s1, %s695_s21  ;;  %v523_v13 = vld [vmem:[%s686_s3] ss:$0 sm:$0xff]  ;;  %vm412_vm2 = vcmask 254976  }
   0xe   : > { %531 = vmatpush3.bf16.msra.mxu0 %v564_v0  ;;  %v326_v4 = vshrl.u32 %v325_v1, 7  ;;  %s302_s11 = scalar_lea.vmem %s683_s0, %s651_s29  ;;  %v323_v6 = vld [vmem:[%s305_s8] sm:$0x1]  ;;  %s312_s14 = scalar_lea.vmem %s688_s5, %s651_s29 }
   0xf   : > { %532 = vmatprep.subr.bf16.mxu0 %v590_v2  ;;  %v321_v7 = vld [vmem:[%s302_s11] sm:$0x3]  ;;  %v324_v8 = vunpack.c.l.bf16 %v323_v6  ;;  %s319_s21 = scalar_lea.vmem %s689_s6, %s651_s29 }
  0x10   : > { %v327_v5 = vsub.s32 0, %v326_v4  ;;  %v322_v9 = vunpack.c.l.bf16 %v321_v7  ;;  %v407_v14 = vld [vmem:[%s312_s14] sm:$0x3] }
  0x11   : > { %v524_v16 = vld [vmem:[%s687_s4] ss:$0 sm:$0xff]  ;;  %v408_v18 = vunpack.c.l.bf16 %v407_v14 }
  0x12   : > { %533 = vmatpush3.bf16.msra.mxu0 %v565_v3  ;;  %v328_v10 = vrot.slane %v324_v8, %v327_v5 }
  0x14   : > { %v329_v11 = vmul.f32 %v328_v10, %v322_v9 }
  0x16   : > { %v330_v12 = vpack.c.bf16 %v329_v11, %v329_v11 }
  0x18   : > { %535 = vmatmul.mubr.msk.bf16.vlgmr.msra.gmra.mxu0 %vm347_vm1, %v330_v12 }
  0xd8   : > { %v385_v15 = vpop.f32.mrf.mxu0 }
  0xd9   : > { %v398_v17 = vmul.f32 %v523_v13, %v385_v15 }
  0xda   : > { %v536_v19 = vpop.f32.mrf.mxu0 }
  0xdb   : > { %v406_v20 = vadd.f32 %v524_v16, %v398_v17 }
  0xdc   : > { %v388_v21 = vpop.f32.mrf.mxu0 }
  0xdd   : > { %v409_v22 = vadd.f32 %v408_v18, %v406_v20 }
  0xde   : > { %v537_v23 = vpop.f32.mrf.mxu0 }
  0xdf   : > { %v410_v24 = vmax.f32 %v409_v22, 0.0 }
  0xe1   : > { %v411_v25 = vpack.c.bf16 %v410_v24, %v410_v24 }
  0xe3   : > { %413 = vst.msk [vmem:[%s319_s21] sm:$0x3] %vm412_vm2, %v411_v25 }
  0xe4 PF: > { %s16_s23 = sadd.s32 1, %s588_s23   ;;  %s690_s21 = smov %s584_s22 }
  0xe5   : > { %p13_p5 = scmp.ge.s32.totalorder %s16_s23, 4   ;;  %s691_s22 = smov %s693_s24 }
  0xe7   :  { %15 = sbr.rel (!%p13_p5) target bundleno = 2 (0x2), region = 80 }

// kernel: _lambda_.62
= control target key start
LH: loop header
LB: loop body
LE: loop exit
PB: predicated region body
PF: predicated region fallthrough
CT: control target
= control target key end

     0   :  { %vm24_vm0 = vcmask 1043456   ;;  %v115_v0 = vmov 0.0   ;;  %vm116_vm1 = vmmov 0   ;;  %vm20_vm2 = vcmask 64512   ;;  %s157_s1 = inlined_call_operand.vmem [shape: bf16[8,32], index: 1, kind: input, shape index: {}]   ;;  %s158_s0 = inlined_call_operand.vmem [shape: bf16[2,8], index: 0, kind: input, shape index: {}]   ;;  %s159_s2 = inlined_call_operand.vmem [shape: f32[1,32], index: 2, kind: input, shape index: {}]   ;;  %s160_s3 = inlined_call_operand.vmem [shape: f32[1,32], index: 3, kind: input, shape index: {}]   ;;  %s161_s4 = inlined_call_operand.vmem [shape: bf16[2,32], index: 4, kind: output, shape index: {}]  }
   0x1   :  { %103 = vmatprep.subr.bf16.mxu0 %v115_v0  ;;  %v19_v1 = vld [vmem:[%s157_s1] sm:$0xf]  ;;  %105 = vmatprep.mubr.msk.bf16.mxu0 %vm116_vm1, %v115_v0  ;;  %vm91_vm3 = vcmask 253952  }
   0x2   :  { %v26_v2 = vsel %vm24_vm0, %v19_v1, 0  ;;  %v18_v3 = vld [vmem:[%s158_s0] sm:$0x1] }
   0x3   :  { %104 = vmatpush3.bf16.msra.mxu0 %v26_v2  ;;  %v98_v4 = vld [vmem:[%s159_s2] ss:$0 sm:$0xff] }
   0x4   :  { %v99_v6 = vld [vmem:[%s160_s3] ss:$0 sm:$0xff] }
   0x6   :  { %106 = vmatmul.mubr.msk.bf16.vlgmr.msra.gmra.mxu0 %vm20_vm2, %v18_v3 }
  0xc6   :  { %v62_v5 = vpop.f32.mrf.mxu0 }
  0xc7   :  { %v75_v7 = vmul.f32 %v98_v4, %v62_v5 }
  0xc8   :  { %v107_v8 = vpop.f32.mrf.mxu0 }
  0xc9   :  { %v83_v9 = vadd.f32 %v99_v6, %v75_v7 }
  0xca   :  { %v65_v10 = vpop.f32.mrf.mxu0 }
  0xcb   :  { %v100_v11 = vmul.f32 -1.442695, %v83_v9 }
  0xcc   :  { %v108_v12 = vpop.f32.mrf.mxu0 }
  0xcd   :  { %111 = vpow2.f32 %v100_v11 }
  0xda   :  { %v112_v13 = vpop.eup %111 }
  0xdb   :  { %v87_v14 = vadd.f32 1.0, %v112_v13 }
  0xdd   :  { %113 = vrcp.f32 %v87_v14 }
  0xea   :  { %v114_v15 = vpop.eup %113 }
  0xeb   :  { %v90_v16 = vpack.c.bf16 %v114_v15, %v114_v15 }
  0xed   :  { %92 = vst.msk [vmem:[%s161_s4] sm:$0x1] %vm91_vm3, %v90_v16 }

// kernel: _lambda_.61
= control target key start
LH: loop header
LB: loop body
LE: loop exit
PB: predicated region body
PF: predicated region fallthrough
CT: control target
= control target key end

     0   :  { %v123_v0 = vmov 0.0   ;;  %vm124_vm0 = vmmov 0   ;;  %vm35_vm1 = vcmask 261120   ;;  %vm97_vm2 = vcmask 57344   ;;  %s168_s1 = inlined_call_operand.vmem [shape: bf16[32,8], index: 1, kind: input, shape index: {}]   ;;  %s169_s0 = inlined_call_operand.vmem [shape: bf16[2,32], index: 0, kind: input, shape index: {}]   ;;  %s170_s2 = inlined_call_operand.vmem [shape: f32[1,8], index: 2, kind: input, shape index: {}]   ;;  %s171_s3 = inlined_call_operand.vmem [shape: f32[1,8], index: 3, kind: input, shape index: {}]   ;;  %s172_s4 = inlined_call_operand.vmem [shape: bf16[2,8], index: 4, kind: output, shape index: {}]  }
   0x1   :  { %111 = vmatprep.subr.bf16.mxu0 %v123_v0  ;;  %v121_v1 = vld [vmem:[%s168_s1 + $0x8] sm:$0xff]   ;;  %115 = vmatprep.mubr.msk.bf16.mxu0 %vm124_vm0, %v123_v0  ;;  %v122_v2 = vld [vmem:[%s168_s1] sm:$0xff]  }
   0x2   :  { %112 = vmatpush3.bf16.msra.mxu0 %v121_v1  ;;  %v18_v3 = vld [vmem:[%s169_s0] sm:$0x1] }
   0x3   :  { %113 = vmatprep.subr.bf16.mxu0 %v123_v0  ;;  %v106_v4 = vld [vmem:[%s170_s2] ss:$0 sm:$0xff] }
   0x4   :  { %v107_v6 = vld [vmem:[%s171_s3] ss:$0 sm:$0xff] }
   0x6   :  { %114 = vmatpush3.bf16.msra.mxu0 %v122_v2 }
   0x9   :  { %116 = vmatmul.mubr.msk.bf16.vlgmr.msra.gmra.mxu0 %vm35_vm1, %v18_v3 }
  0xc9   :  { %v73_v5 = vpop.f32.mrf.mxu0 }
  0xca   :  { %v86_v7 = vmul.f32 %v106_v4, %v73_v5 }
  0xcb   :  { %v117_v8 = vpop.f32.mrf.mxu0 }
  0xcc   :  { %v94_v9 = vadd.f32 %v107_v6, %v86_v7 }
  0xcd   :  { %v76_v10 = vpop.f32.mrf.mxu0 }
  0xce   :  { %v95_v11 = vmax.f32 %v94_v9, 0.0 }
  0xcf   :  { %v118_v12 = vpop.f32.mrf.mxu0 }
  0xd0   :  { %v96_v13 = vpack.c.bf16 %v95_v11, %v95_v11 }
  0xd2   :  { %98 = vst.msk [vmem:[%s172_s4] sm:$0x1] %vm97_vm2, %v96_v13 }

// kernel: _lambda_.60
= control target key start
LH: loop header
LB: loop body
LE: loop exit
PB: predicated region body
PF: predicated region fallthrough
CT: control target
= control target key end

     0   :  { %v362_v1 = vmov 0.0   ;;  %vm363_vm0 = vmmov 0   ;;  %vm174_vm1 = vcmask 261120   ;;  %vm276_vm2 = vcmask 257024   ;;  %s458_s1 = inlined_call_operand.vmem [shape: bf16[288,32], index: 1, kind: input, shape index: {}]   ;;  %s459_s0 = inlined_call_operand.vmem [shape: bf16[8,288], index: 0, kind: input, shape index: {}]   ;;  %s460_s2 = inlined_call_operand.vmem [shape: f32[1,32], index: 2, kind: input, shape index: {}]   ;;  %s461_s3 = inlined_call_operand.vmem [shape: f32[1,32], index: 3, kind: input, shape index: {}]   ;;  %s462_s4 = inlined_call_operand.vmem [shape: bf16[8,32], index: 4, kind: output, shape index: {}]  }
   0x1   :  { %v341_v0 = vld [vmem:[%s458_s1 + $0x78] sm:$0xff]   ;;  %331 = vmatprep.subr.bf16.mxu1 %v362_v1  ;;  %335 = vmatprep.mubr.msk.bf16.mxu1 %vm363_vm0, %v362_v1  ;;  %v343_v3 = vld [vmem:[%s458_s1 + $0x70] sm:$0xff]   ;;  %v345_v5 = vld [vmem:[%s458_s1 + $0x68] sm:$0xff]  }
   0x2   :  { %v342_v2 = vld [vmem:[%s458_s1 + $0x38] sm:$0xff]   ;;  %306 = vmatprep.subr.bf16.mxu0 %v341_v0  ;;  %v344_v4 = vld [vmem:[%s458_s1 + $0x30] sm:$0xff]   ;;  %v346_v6 = vld [vmem:[%s458_s1 + $0x28] sm:$0xff]  }
   0x3   :  { %307 = vmatpush3.bf16.msra.mxu0 %v342_v2  ;;  %v347_v7 = vld [vmem:[%s458_s1 + $0x60] sm:$0xff]   ;;  %v349_v9 = vld [vmem:[%s458_s1 + $0x58] sm:$0xff]   ;;  %v353_v10 = vld [vmem:[%s458_s1 + $0x88] sm:$0xff]  }
   0x4   :  { %308 = vmatprep.subr.bf16.mxu0 %v343_v3  ;;  %v348_v8 = vld [vmem:[%s458_s1 + $0x20] sm:$0xff]   ;;  %v350_v11 = vld [vmem:[%s458_s1 + $0x18] sm:$0xff]   ;;  %332 = vmatpush3.bf16.msra.mxu1 %v353_v10  ;;  %v351_v13 = vld [vmem:[%s458_s1 + $0x50] sm:$0xff]  }
   0x5   :  { %333 = vmatprep.subr.bf16.mxu1 %v362_v1  ;;  %v356_v12 = vld [vmem:[%s458_s1 + $0x80] sm:$0xff]   ;;  %v359_v14 = vld [vmem:[%s459_s0 + $0x8] ss:$0 sps:$4 sm:$0xff]   ;;  %v352_v16 = vld [vmem:[%s458_s1 + $0x10] sm:$0xff]  }
   0x6   :  { %v18_v15 = vld [vmem:[%s459_s0] sm:$0xff]  ;;  %v354_v18 = vld [vmem:[%s458_s1 + $0x48] sm:$0xff]  }
   0x7   :  { %309 = vmatpush3.bf16.msra.mxu0 %v344_v4  ;;  %v283_v17 = vcombine.high %v18_v15, %v18_v15  ;;  %v355_v19 = vld [vmem:[%s458_s1 + $0x8] sm:$0xff]   ;;  %v357_v20 = vld [vmem:[%s458_s1 + $0x40] sm:$0xff]   ;;  %v282_v22 = vcombine.low %v18_v15, %v18_v15 }
   0x8   :  { %310 = vmatprep.subr.bf16.mxu0 %v345_v5  ;;  %334 = vmatpush3.bf16.msra.mxu1 %v356_v12  ;;  %v358_v21 = vld [vmem:[%s458_s1] sm:$0xff]  }
   0x9   :  { %210 = vmatprep.mubr.bf16.mxu0 %v283_v17  ;;  %v304_v30 = vld [vmem:[%s460_s2] ss:$0 sm:$0xff] }
   0xa   :  { %v305_v33 = vld [vmem:[%s461_s3] ss:$0 sm:$0xff] }
   0xb   :  { %311 = vmatpush3.bf16.msra.mxu0 %v346_v6  ;;  %336 = vmatmul.mubr.msk.bf16.vlgmr.msra.gmra.mxu1 %vm174_vm1, %v359_v14 }
   0xc   :  { %312 = vmatprep.subr.bf16.mxu0 %v347_v7 }
   0xf   :  { %313 = vmatpush3.bf16.msra.mxu0 %v348_v8 }
  0x10   :  { %314 = vmatprep.subr.bf16.mxu0 %v349_v9 }
  0x13   :  { %315 = vmatpush3.bf16.msra.mxu0 %v350_v11 }
  0x14   :  { %316 = vmatprep.subr.bf16.mxu0 %v351_v13 }
  0x17   :  { %317 = vmatpush3.bf16.msra.mxu0 %v352_v16 }
  0x18   :  { %318 = vmatprep.subr.bf16.mxu0 %v354_v18 }
  0x1b   :  { %319 = vmatpush3.bf16.msra.mxu0 %v355_v19 }
  0x1c   :  { %320 = vmatprep.subr.bf16.mxu0 %v357_v20 }
  0x1f   :  { %321 = vmatpush3.bf16.msra.mxu0 %v358_v21 }
  0x22   :  { %211 = vmatmul.mubr.bf16.vlgmr.msra.gmra.mxu0 %v282_v22 }
  0xcb   :  { %v252_v23 = vpop.f32.mrf.mxu1 }
  0xcd   :  { %v337_v24 = vpop.f32.mrf.mxu1 }
  0xcf   :  { %v255_v25 = vpop.f32.mrf.mxu1 }
  0xd1   :  { %v338_v26 = vpop.f32.mrf.mxu1 }
  0xe2   :  { %v322_v27 = vpop.f32.mrf.mxu0 }
  0xe4   :  { %v323_v28 = vpop.f32.mrf.mxu0 }
  0xe5   :  { %v324_v29 = vadd.f32 %v323_v28, %v322_v27 }
  0xe6   :  { %v325_v31 = vpop.f32.mrf.mxu0 }
  0xe7   :  { %v253_v32 = vadd.f32 %v324_v29, %v252_v23 }
  0xe8   :  { %v326_v34 = vpop.f32.mrf.mxu0 }
  0xe9   :  { %v265_v35 = vmul.f32 %v304_v30, %v253_v32 }
  0xeb   :  { %v273_v36 = vadd.f32 %v305_v33, %v265_v35 }
  0xed   :  { %v274_v37 = vmax.f32 %v273_v36, 0.0 }
  0xef   :  { %v275_v38 = vpack.c.bf16 %v274_v37, %v274_v37 }
  0xf1   :  { %277 = vst.msk [vmem:[%s462_s4] sm:$0xf] %vm276_vm2, %v275_v38 }

// kernel: _lambda_.65
= control target key start
LH: loop header
LB: loop body
LE: loop exit
PB: predicated region body
PF: predicated region fallthrough
CT: control target
= control target key end

     0   :  { %v123_v0 = vmov 0.0   ;;  %vm124_vm0 = vmmov 0   ;;  %vm35_vm1 = vcmask 261120   ;;  %vm97_vm2 = vcmask 257024   ;;  %s168_s1 = inlined_call_operand.vmem [shape: bf16[32,32], index: 1, kind: input, shape index: {}]   ;;  %s169_s0 = inlined_call_operand.vmem [shape: bf16[8,32], index: 0, kind: input, shape index: {}]   ;;  %s170_s2 = inlined_call_operand.vmem [shape: f32[1,32], index: 2, kind: input, shape index: {}]   ;;  %s171_s3 = inlined_call_operand.vmem [shape: f32[1,32], index: 3, kind: input, shape index: {}]   ;;  %s172_s4 = inlined_call_operand.vmem [shape: bf16[8,32], index: 4, kind: output, shape index: {}]  }
   0x1   :  { %111 = vmatprep.subr.bf16.mxu0 %v123_v0  ;;  %v121_v1 = vld [vmem:[%s168_s1 + $0x8] sm:$0xff]   ;;  %115 = vmatprep.mubr.msk.bf16.mxu0 %vm124_vm0, %v123_v0  ;;  %v122_v2 = vld [vmem:[%s168_s1] sm:$0xff]  }
   0x2   :  { %112 = vmatpush3.bf16.msra.mxu0 %v121_v1  ;;  %v18_v3 = vld [vmem:[%s169_s0] sm:$0xf] }
   0x3   :  { %113 = vmatprep.subr.bf16.mxu0 %v123_v0  ;;  %v106_v4 = vld [vmem:[%s170_s2] ss:$0 sm:$0xff] }
   0x4   :  { %v107_v6 = vld [vmem:[%s171_s3] ss:$0 sm:$0xff] }
   0x6   :  { %114 = vmatpush3.bf16.msra.mxu0 %v122_v2 }
   0x9   :  { %116 = vmatmul.mubr.msk.bf16.vlgmr.msra.gmra.mxu0 %vm35_vm1, %v18_v3 }
  0xc9   :  { %v73_v5 = vpop.f32.mrf.mxu0 }
  0xca   :  { %v86_v7 = vmul.f32 %v106_v4, %v73_v5 }
  0xcb   :  { %v117_v8 = vpop.f32.mrf.mxu0 }
  0xcc   :  { %v94_v9 = vadd.f32 %v107_v6, %v86_v7 }
  0xcd   :  { %v76_v10 = vpop.f32.mrf.mxu0 }
  0xce   :  { %v95_v11 = vmax.f32 %v94_v9, 0.0 }
  0xcf   :  { %v118_v12 = vpop.f32.mrf.mxu0 }
  0xd0   :  { %v96_v13 = vpack.c.bf16 %v95_v11, %v95_v11 }
  0xd2   :  { %98 = vst.msk [vmem:[%s172_s4] sm:$0xf] %vm97_vm2, %v96_v13 }

// kernel: _lambda_.79
= control target key start
LH: loop header
LB: loop body
LE: loop exit
PB: predicated region body
PF: predicated region fallthrough
CT: control target
= control target key end

     0   :  { %v122_v0 = vmov 0.0   ;;  %vm123_vm0 = vmmov 0   ;;  %vm35_vm1 = vcmask 261120   ;;  %vm96_vm2 = vcmask 516096   ;;  %s167_s1 = inlined_call_operand.vmem [shape: bf16[32,64], index: 1, kind: input, shape index: {}]   ;;  %s168_s0 = inlined_call_operand.vmem [shape: bf16[2,32], index: 0, kind: input, shape index: {}]   ;;  %s169_s2 = inlined_call_operand.vmem [shape: f32[1,64], index: 2, kind: input, shape index: {}]   ;;  %s170_s3 = inlined_call_operand.vmem [shape: f32[1,64], index: 3, kind: input, shape index: {}]   ;;  %s171_s4 = inlined_call_operand.vmem [shape: bf16[2,64], index: 4, kind: output, shape index: {}]  }
   0x1   :  { %110 = vmatprep.subr.bf16.mxu0 %v122_v0  ;;  %v120_v1 = vld [vmem:[%s167_s1 + $0x8] sm:$0xff]   ;;  %114 = vmatprep.mubr.msk.bf16.mxu0 %vm123_vm0, %v122_v0  ;;  %v121_v2 = vld [vmem:[%s167_s1] sm:$0xff]  }
   0x2   :  { %111 = vmatpush3.bf16.msra.mxu0 %v120_v1  ;;  %v18_v3 = vld [vmem:[%s168_s0] sm:$0x1] }
   0x3   :  { %112 = vmatprep.subr.bf16.mxu0 %v122_v0  ;;  %v105_v4 = vld [vmem:[%s169_s2] ss:$0 sm:$0xff] }
   0x4   :  { %v106_v6 = vld [vmem:[%s170_s3] ss:$0 sm:$0xff] }
   0x6   :  { %113 = vmatpush3.bf16.msra.mxu0 %v121_v2 }
   0x9   :  { %115 = vmatmul.mubr.msk.bf16.vlgmr.msra.gmra.mxu0 %vm35_vm1, %v18_v3 }
  0xc9   :  { %v73_v5 = vpop.f32.mrf.mxu0 }
  0xca   :  { %v86_v7 = vmul.f32 %v105_v4, %v73_v5 }
  0xcb   :  { %v116_v8 = vpop.f32.mrf.mxu0 }
  0xcc   :  { %v94_v9 = vadd.f32 %v106_v6, %v86_v7 }
  0xcd   :  { %v76_v10 = vpop.f32.mrf.mxu0 }
  0xce   :  { %v95_v11 = vpack.c.bf16 %v94_v9, %v94_v9 }
  0xcf   :  { %v117_v12 = vpop.f32.mrf.mxu0 }
  0xd0   :  { %97 = vst.msk [vmem:[%s171_s4] sm:$0x1] %vm96_vm2, %v95_v11 }

// kernel: _lambda_.75
= control target key start
LH: loop header
LB: loop body
LE: loop exit
PB: predicated region body
PF: predicated region fallthrough
CT: control target
= control target key end

     0   :  { %v123_v0 = vmov 0.0   ;;  %vm124_vm0 = vmmov 0   ;;  %vm35_vm1 = vcmask 261120   ;;  %vm97_vm2 = vcmask 519168   ;;  %s168_s1 = inlined_call_operand.vmem [shape: bf16[32,64], index: 1, kind: input, shape index: {}]   ;;  %s169_s0 = inlined_call_operand.vmem [shape: bf16[8,32], index: 0, kind: input, shape index: {}]   ;;  %s170_s2 = inlined_call_operand.vmem [shape: f32[1,64], index: 2, kind: input, shape index: {}]   ;;  %s171_s3 = inlined_call_operand.vmem [shape: f32[1,64], index: 3, kind: input, shape index: {}]   ;;  %s172_s4 = inlined_call_operand.vmem [shape: bf16[8,64], index: 4, kind: output, shape index: {}]  }
   0x1   :  { %111 = vmatprep.subr.bf16.mxu0 %v123_v0  ;;  %v121_v1 = vld [vmem:[%s168_s1 + $0x8] sm:$0xff]   ;;  %115 = vmatprep.mubr.msk.bf16.mxu0 %vm124_vm0, %v123_v0  ;;  %v122_v2 = vld [vmem:[%s168_s1] sm:$0xff]  }
   0x2   :  { %112 = vmatpush3.bf16.msra.mxu0 %v121_v1  ;;  %v18_v3 = vld [vmem:[%s169_s0] sm:$0xf] }
   0x3   :  { %113 = vmatprep.subr.bf16.mxu0 %v123_v0  ;;  %v106_v4 = vld [vmem:[%s170_s2] ss:$0 sm:$0xff] }
   0x4   :  { %v107_v6 = vld [vmem:[%s171_s3] ss:$0 sm:$0xff] }
   0x6   :  { %114 = vmatpush3.bf16.msra.mxu0 %v122_v2 }
   0x9   :  { %116 = vmatmul.mubr.msk.bf16.vlgmr.msra.gmra.mxu0 %vm35_vm1, %v18_v3 }
  0xc9   :  { %v73_v5 = vpop.f32.mrf.mxu0 }
  0xca   :  { %v86_v7 = vmul.f32 %v106_v4, %v73_v5 }
  0xcb   :  { %v117_v8 = vpop.f32.mrf.mxu0 }
  0xcc   :  { %v94_v9 = vadd.f32 %v107_v6, %v86_v7 }
  0xcd   :  { %v76_v10 = vpop.f32.mrf.mxu0 }
  0xce   :  { %v95_v11 = vmax.f32 %v94_v9, 0.0 }
  0xcf   :  { %v118_v12 = vpop.f32.mrf.mxu0 }
  0xd0   :  { %v96_v13 = vpack.c.bf16 %v95_v11, %v95_v11 }
  0xd2   :  { %98 = vst.msk [vmem:[%s172_s4] sm:$0xf] %vm97_vm2, %v96_v13 }

// kernel: _lambda_.76
= control target key start
LH: loop header
LB: loop body
LE: loop exit
PB: predicated region body
PF: predicated region fallthrough
CT: control target
= control target key end

     0   :  { %v639_v22 = vmov 1966171168   ;;  %v96_v24 = vlaneseq  ;;  %v640_v40 = vmov 0.0   ;;  %vm641_vm0 = vmmov 0   ;;  %s787_s1 = inlined_call_operand.vmem [shape: bf16[576,64], index: 1, kind: input, shape index: {}]   ;;  %s788_s0 = inlined_call_operand.vmem [shape: bf16[2,576], index: 0, kind: input, shape index: {}]   ;;  %s789_s2 = inlined_call_operand.vmem [shape: f32[1,64], index: 2, kind: input, shape index: {}]   ;;  %s790_s3 = inlined_call_operand.vmem [shape: f32[1,64], index: 3, kind: input, shape index: {}]   ;;  %s791_s4 = inlined_call_operand.vmem [shape: bf16[2,64], index: 4, kind: output, shape index: {}]  }
   0x1   :  { %v602_v0 = vld [vmem:[%s787_s1 + $0x78] sm:$0xff]   ;;  %v606_v4 = vld [vmem:[%s787_s1 + $0x70] sm:$0xff]   ;;  %v610_v8 = vld [vmem:[%s787_s1 + $0x68] sm:$0xff]   ;;  %v94_v23 = vunpack.c.l.s4 %v639_v22  ;;  %vm351_vm1 = vcmask 523264   ;;  %vm493_vm2 = vcmask 516096  }
   0x2   :  { %v603_v1 = vld [vmem:[%s787_s1 + $0xf8] sm:$0xff]   ;;  %538 = vmatprep.subr.bf16.mxu0 %v602_v0  ;;  %v607_v5 = vld [vmem:[%s787_s1 + $0xf0] sm:$0xff]   ;;  %v611_v9 = vld [vmem:[%s787_s1 + $0xe8] sm:$0xff]   ;;  %v97_v30 = vshrl.u32 %v96_v24, 7 }
   0x3   :  { %v604_v2 = vld [vmem:[%s787_s1 + $0x38] sm:$0xff]   ;;  %560 = vmatprep.subr.bf16.mxu1 %v603_v1  ;;  %v608_v6 = vld [vmem:[%s787_s1 + $0x30] sm:$0xff]   ;;  %v612_v10 = vld [vmem:[%s787_s1 + $0x28] sm:$0xff]   ;;  %v95_v29 = vunpack.c.0.s8 %v94_v23 }
   0x4   :  { %v605_v3 = vld [vmem:[%s787_s1 + $0xb8] sm:$0xff]   ;;  %539 = vmatpush3.bf16.msra.mxu0 %v604_v2  ;;  %v609_v7 = vld [vmem:[%s787_s1 + $0xb0] sm:$0xff]   ;;  %v613_v11 = vld [vmem:[%s787_s1 + $0xa8] sm:$0xff]  }
   0x5   :  { %561 = vmatpush3.bf16.msra.mxu1 %v605_v3  ;;  %540 = vmatprep.subr.bf16.mxu0 %v606_v4  ;;  %v614_v12 = vld [vmem:[%s787_s1 + $0x60] sm:$0xff]   ;;  %v618_v16 = vld [vmem:[%s787_s1 + $0x58] sm:$0xff]   ;;  %v622_v20 = vld [vmem:[%s787_s1 + $0x50] sm:$0xff]   ;;  %v98_v35 = vsub.s32 %v95_v29, %v97_v30 }
   0x6   :  { %562 = vmatprep.subr.bf16.mxu1 %v607_v5  ;;  %v615_v13 = vld [vmem:[%s787_s1 + $0xe0] sm:$0xff]   ;;  %v619_v17 = vld [vmem:[%s787_s1 + $0xd8] sm:$0xff]   ;;  %v623_v21 = vld [vmem:[%s787_s1 + $0xd0] sm:$0xff]  }
   0x7   :  { %v616_v14 = vld [vmem:[%s787_s1 + $0x20] sm:$0xff]   ;;  %v620_v18 = vld [vmem:[%s787_s1 + $0x18] sm:$0xff]   ;;  %v624_v25 = vld [vmem:[%s787_s1 + $0x10] sm:$0xff]  }
   0x8   :  { %541 = vmatpush3.bf16.msra.mxu0 %v608_v6  ;;  %v617_v15 = vld [vmem:[%s787_s1 + $0xa0] sm:$0xff]   ;;  %v621_v19 = vld [vmem:[%s787_s1 + $0x98] sm:$0xff]   ;;  %v625_v26 = vld [vmem:[%s787_s1 + $0x90] sm:$0xff]  }
   0x9   :  { %563 = vmatpush3.bf16.msra.mxu1 %v609_v7  ;;  %542 = vmatprep.subr.bf16.mxu0 %v610_v8  ;;  %v626_v27 = vld [vmem:[%s787_s1 + $0x48] sm:$0xff]   ;;  %v630_v33 = vld [vmem:[%s787_s1 + $0x40] sm:$0xff]   ;;  %v635_v44 = vld [vmem:[%s787_s1 + $0x118] sm:$0xff]  }
   0xa   :  { %564 = vmatprep.subr.bf16.mxu1 %v611_v9  ;;  %v627_v28 = vld [vmem:[%s787_s1 + $0xc8] sm:$0xff]   ;;  %v631_v34 = vld [vmem:[%s787_s1 + $0xc0] sm:$0xff]   ;;  %v636_v47 = vld [vmem:[%s787_s1 + $0x110] sm:$0xff]  }
   0xb   :  { %v628_v31 = vld [vmem:[%s787_s1 + $0x8] sm:$0xff]   ;;  %v632_v36 = vld [vmem:[%s787_s1] sm:$0xff]  }
   0xc   :  { %543 = vmatpush3.bf16.msra.mxu0 %v612_v10  ;;  %v629_v32 = vld [vmem:[%s787_s1 + $0x88] sm:$0xff]   ;;  %v633_v37 = vld [vmem:[%s787_s1 + $0x80] sm:$0xff]  }
   0xd   :  { %565 = vmatpush3.bf16.msra.mxu1 %v613_v11  ;;  %544 = vmatprep.subr.bf16.mxu0 %v614_v12  ;;  %v18_v38 = vld [vmem:[%s788_s0] sm:$0x1f]  ;;  %v637_v49 = vld [vmem:[%s787_s1 + $0x108] sm:$0xff]  }
   0xe   :  { %566 = vmatprep.subr.bf16.mxu1 %v615_v13  ;;  %v99_v39 = vrot.slane %v18_v38, %v98_v35  ;;  %v92_v48 = vcombine.high %v18_v38, %v18_v38  ;;  %v638_v51 = vld [vmem:[%s787_s1 + $0x100] sm:$0xff]  }
   0xf   :  { %v536_v1 = vld [vmem:[%s789_s2] ss:$0 sm:$0xff] }
  0x10   :  { %545 = vmatpush3.bf16.msra.mxu0 %v616_v14  ;;  %v107_v41 = vcombine.high %v99_v39, %v99_v39  ;;  %v114_v42 = vrot.slane %v99_v39, %v98_v35  ;;  %v106_v50 = vrot.slane %v92_v48, %v98_v35  ;;  %v537_v3 = vld [vmem:[%s790_s3] ss:$0 sm:$0xff] }
  0x11   :  { %567 = vmatpush3.bf16.msra.mxu1 %v617_v15  ;;  %546 = vmatprep.subr.bf16.mxu0 %v618_v16 }
  0x12   :  { %568 = vmatprep.subr.bf16.mxu1 %v619_v17  ;;  %v128_v43 = vrot.slane %v107_v41, %v98_v35  ;;  %v129_v45 = vcombine.high %v114_v42, %v114_v42  ;;  %v121_v52 = vrot.slane %v106_v50, %v98_v35 }
  0x14   :  { %547 = vmatpush3.bf16.msra.mxu0 %v620_v18  ;;  %387 = vmatprep.mubr.bf16.mxu0 %v128_v43  ;;  %v130_v46 = vcombine.high %v128_v43, %v128_v43 }
  0x15   :  { %569 = vmatpush3.bf16.msra.mxu1 %v621_v19  ;;  %548 = vmatprep.subr.bf16.mxu0 %v622_v20 }
  0x16   :  { %570 = vmatprep.subr.bf16.mxu1 %v623_v21  ;;  %427 = vmatprep.mubr.bf16.mxu1 %v130_v46 }
  0x18   :  { %549 = vmatpush3.bf16.msra.mxu0 %v624_v25 }
  0x19   :  { %571 = vmatpush3.bf16.msra.mxu1 %v625_v26  ;;  %550 = vmatprep.subr.bf16.mxu0 %v626_v27 }
  0x1a   :  { %572 = vmatprep.subr.bf16.mxu1 %v627_v28 }
  0x1c   :  { %551 = vmatpush3.bf16.msra.mxu0 %v628_v31 }
  0x1d   :  { %573 = vmatpush3.bf16.msra.mxu1 %v629_v32  ;;  %552 = vmatprep.subr.bf16.mxu0 %v630_v33 }
  0x1e   :  { %574 = vmatprep.subr.bf16.mxu1 %v631_v34 }
  0x20   :  { %553 = vmatpush3.bf16.msra.mxu0 %v632_v36 }
  0x21   :  { %575 = vmatpush3.bf16.msra.mxu1 %v633_v37  ;;  %587 = vmatprep.subr.bf16.mxu0 %v640_v40 }
  0x23   :  { %388 = vmatmul.mubr.bf16.vlgmr.msra.gmra.mxu0 %v114_v42 }
  0x24   :  { %588 = vmatpush3.bf16.msra.mxu0 %v635_v44  ;;  %428 = vmatmul.mubr.bf16.vlgmr.msra.gmra.mxu1 %v129_v45 }
  0x25   :  { %589 = vmatprep.subr.bf16.mxu0 %v640_v40  ;;  %595 = vmatprep.mubr.msk.bf16.mxu0 %vm641_vm0, %v640_v40 }
  0x28   :  { %590 = vmatpush3.bf16.msra.mxu0 %v636_v47 }
  0x29   :  { %591 = vmatprep.subr.bf16.mxu0 %v640_v40 }
  0x2c   :  { %592 = vmatpush3.bf16.msra.mxu0 %v637_v49 }
  0x2d   :  { %593 = vmatprep.subr.bf16.mxu0 %v640_v40 }
  0x30   :  { %594 = vmatpush3.bf16.msra.mxu0 %v638_v51 }
  0x33   :  { %596 = vmatmul.mubr.msk.bf16.vlgmr.msra.gmra.mxu0 %vm351_vm1, %v121_v52 }
  0xe3   :  { %v554_v53 = vpop.f32.mrf.mxu0 }
  0xe4   :  { %v576_v54 = vpop.f32.mrf.mxu1 }
  0xe5   :  { %v555_v55 = vpop.f32.mrf.mxu0 }
  0xe6   :  { %v577_v56 = vpop.f32.mrf.mxu1  ;;  %v556_v61 = vadd.f32 %v555_v55, %v554_v53 }
  0xe7   :  { %v557_v57 = vpop.f32.mrf.mxu0  ;;  %v578_v62 = vadd.f32 %v577_v56, %v576_v54 }
  0xe8   :  { %v579_v59 = vpop.f32.mrf.mxu1 }
  0xe9   :  { %v558_v58 = vpop.f32.mrf.mxu0  ;;  %v430_v63 = vadd.f32 %v578_v62, %v556_v61 }
  0xea   :  { %v580_v60 = vpop.f32.mrf.mxu1 }
  0xf3   :  { %v469_v0 = vpop.f32.mrf.mxu0 }
  0xf4   :  { %v470_v2 = vadd.f32 %v469_v0, %v430_v63 }
  0xf5   :  { %v597_v4 = vpop.f32.mrf.mxu0 }
  0xf6   :  { %v482_v5 = vmul.f32 %v536_v1, %v470_v2 }
  0xf7   :  { %v472_v6 = vpop.f32.mrf.mxu0 }
  0xf8   :  { %v490_v7 = vadd.f32 %v537_v3, %v482_v5 }
  0xf9   :  { %v598_v8 = vpop.f32.mrf.mxu0 }
  0xfa   :  { %v491_v9 = vmax.f32 %v490_v7, 0.0 }
  0xfc   :  { %v492_v10 = vpack.c.bf16 %v491_v9, %v491_v9 }
  0xfe   :  { %494 = vst.msk [vmem:[%s791_s4] sm:$0x1] %vm493_vm2, %v492_v10 }

// kernel: _lambda_.78
= control target key start
LH: loop header
LB: loop body
LE: loop exit
PB: predicated region body
PF: predicated region fallthrough
CT: control target
= control target key end

     0   :  { %vm24_vm0 = vcmask 1043456   ;;  %v115_v0 = vmov 0.0   ;;  %vm116_vm1 = vmmov 0   ;;  %vm20_vm2 = vcmask 64512   ;;  %s157_s1 = inlined_call_operand.vmem [shape: bf16[8,64], index: 1, kind: input, shape index: {}]   ;;  %s158_s0 = inlined_call_operand.vmem [shape: bf16[2,8], index: 0, kind: input, shape index: {}]   ;;  %s159_s2 = inlined_call_operand.vmem [shape: f32[1,64], index: 2, kind: input, shape index: {}]   ;;  %s160_s3 = inlined_call_operand.vmem [shape: f32[1,64], index: 3, kind: input, shape index: {}]   ;;  %s161_s4 = inlined_call_operand.vmem [shape: bf16[2,64], index: 4, kind: output, shape index: {}]  }
   0x1   :  { %103 = vmatprep.subr.bf16.mxu0 %v115_v0  ;;  %v19_v1 = vld [vmem:[%s157_s1] sm:$0xf]  ;;  %105 = vmatprep.mubr.msk.bf16.mxu0 %vm116_vm1, %v115_v0  ;;  %vm91_vm3 = vcmask 516096  }
   0x2   :  { %v26_v2 = vsel %vm24_vm0, %v19_v1, 0  ;;  %v18_v3 = vld [vmem:[%s158_s0] sm:$0x1] }
   0x3   :  { %104 = vmatpush3.bf16.msra.mxu0 %v26_v2  ;;  %v98_v4 = vld [vmem:[%s159_s2] ss:$0 sm:$0xff] }
   0x4   :  { %v99_v6 = vld [vmem:[%s160_s3] ss:$0 sm:$0xff] }
   0x6   :  { %106 = vmatmul.mubr.msk.bf16.vlgmr.msra.gmra.mxu0 %vm20_vm2, %v18_v3 }
  0xc6   :  { %v62_v5 = vpop.f32.mrf.mxu0 }
  0xc7   :  { %v75_v7 = vmul.f32 %v98_v4, %v62_v5 }
  0xc8   :  { %v107_v8 = vpop.f32.mrf.mxu0 }
  0xc9   :  { %v83_v9 = vadd.f32 %v99_v6, %v75_v7 }
  0xca   :  { %v65_v10 = vpop.f32.mrf.mxu0 }
  0xcb   :  { %v100_v11 = vmul.f32 -1.442695, %v83_v9 }
  0xcc   :  { %v108_v12 = vpop.f32.mrf.mxu0 }
  0xcd   :  { %111 = vpow2.f32 %v100_v11 }
  0xda   :  { %v112_v13 = vpop.eup %111 }
  0xdb   :  { %v87_v14 = vadd.f32 1.0, %v112_v13 }
  0xdd   :  { %113 = vrcp.f32 %v87_v14 }
  0xea   :  { %v114_v15 = vpop.eup %113 }
  0xeb   :  { %v90_v16 = vpack.c.bf16 %v114_v15, %v114_v15 }
  0xed   :  { %92 = vst.msk [vmem:[%s161_s4] sm:$0x1] %vm91_vm3, %v90_v16 }

// kernel: _lambda_.77
= control target key start
LH: loop header
LB: loop body
LE: loop exit
PB: predicated region body
PF: predicated region fallthrough
CT: control target
= control target key end

     0   :  { %v149_v0 = vmov 0.0   ;;  %vm150_vm0 = vmmov 0   ;;  %vm51_vm1 = vcmask 523264   ;;  %vm113_vm2 = vcmask 57344   ;;  %s200_s1 = inlined_call_operand.vmem [shape: bf16[64,8], index: 1, kind: input, shape index: {}]   ;;  %s201_s0 = inlined_call_operand.vmem [shape: bf16[2,64], index: 0, kind: input, shape index: {}]   ;;  %s202_s2 = inlined_call_operand.vmem [shape: f32[1,8], index: 2, kind: input, shape index: {}]   ;;  %s203_s3 = inlined_call_operand.vmem [shape: f32[1,8], index: 3, kind: input, shape index: {}]   ;;  %s204_s4 = inlined_call_operand.vmem [shape: bf16[2,8], index: 4, kind: output, shape index: {}]  }
   0x1   :  { %131 = vmatprep.subr.bf16.mxu0 %v149_v0  ;;  %v145_v1 = vld [vmem:[%s200_s1 + $0x18] sm:$0xff]   ;;  %139 = vmatprep.mubr.msk.bf16.mxu0 %vm150_vm0, %v149_v0  ;;  %v146_v2 = vld [vmem:[%s200_s1 + $0x10] sm:$0xff]   ;;  %v147_v3 = vld [vmem:[%s200_s1 + $0x8] sm:$0xff]  }
   0x2   :  { %132 = vmatpush3.bf16.msra.mxu0 %v145_v1  ;;  %v148_v4 = vld [vmem:[%s200_s1] sm:$0xff]  }
   0x3   :  { %133 = vmatprep.subr.bf16.mxu0 %v149_v0  ;;  %v18_v5 = vld [vmem:[%s201_s0] sm:$0x1] }
   0x4   :  { %v124_v6 = vld [vmem:[%s202_s2] ss:$0 sm:$0xff] }
   0x5   :  { %v125_v8 = vld [vmem:[%s203_s3] ss:$0 sm:$0xff] }
   0x6   :  { %134 = vmatpush3.bf16.msra.mxu0 %v146_v2 }
   0x7   :  { %135 = vmatprep.subr.bf16.mxu0 %v149_v0 }
   0xa   :  { %136 = vmatpush3.bf16.msra.mxu0 %v147_v3 }
   0xb   :  { %137 = vmatprep.subr.bf16.mxu0 %v149_v0 }
   0xe   :  { %138 = vmatpush3.bf16.msra.mxu0 %v148_v4 }
  0x11   :  { %140 = vmatmul.mubr.msk.bf16.vlgmr.msra.gmra.mxu0 %vm51_vm1, %v18_v5 }
  0xd1   :  { %v89_v7 = vpop.f32.mrf.mxu0 }
  0xd2   :  { %v102_v9 = vmul.f32 %v124_v6, %v89_v7 }
  0xd3   :  { %v141_v10 = vpop.f32.mrf.mxu0 }
  0xd4   :  { %v110_v11 = vadd.f32 %v125_v8, %v102_v9 }
  0xd5   :  { %v92_v12 = vpop.f32.mrf.mxu0 }
  0xd6   :  { %v111_v13 = vmax.f32 %v110_v11, 0.0 }
  0xd7   :  { %v142_v14 = vpop.f32.mrf.mxu0 }
  0xd8   :  { %v112_v15 = vpack.c.bf16 %v111_v13, %v111_v13 }
  0xda   :  { %114 = vst.msk [vmem:[%s204_s4] sm:$0x1] %vm113_vm2, %v112_v15 }

// kernel: _lambda_.80
= control target key start
LH: loop header
LB: loop body
LE: loop exit
PB: predicated region body
PF: predicated region fallthrough
CT: control target
= control target key end

     0   :  { %s616_s21 = smov 0   ;;  %s618_s22 = smov 0   ;;  %s673_s0 = inlined_call_operand.vmem [shape: bf16[2,1,64], index: 0, kind: input, shape index: {}]   ;;  %s674_s1 = inlined_call_operand.vmem [shape: bf16[2,1,64], index: 1, kind: input, shape index: {}]   ;;  %s675_s2 = inlined_call_operand.vmem [shape: bf16[64,64], index: 2, kind: input, shape index: {}]   ;;  %s676_s3 = inlined_call_operand.vmem [shape: f32[1,64], index: 3, kind: input, shape index: {}]   ;;  %s677_s4 = inlined_call_operand.vmem [shape: f32[1,64], index: 4, kind: input, shape index: {}]   ;;  %s678_s5 = inlined_call_operand.vmem [shape: bf16[2,1,64], index: 5, kind: input, shape index: {}]   ;;  %s679_s6 = inlined_call_operand.vmem [shape: bf16[2,1,64], index: 6, kind: output, shape index: {}]  }
   0x1   :  { %s620_s23 = smov 0  }
   0x2 LB: > { %s28_s24 = sadd.s32 1, %s573_s22  ;;  %p500_p0 = scmp.ge.s32.totalorder %s577_s23, 1  ;;  %s577_s23 = sphi %s620_s23, %s16_s23   ;;  %s573_s22 = sphi %s618_s22, %s681_s22   ;;  %s569_s21 = sphi %s616_s21, %s680_s21  }
   0x3   : > { %p30_p1 = scmp.ge.s32.totalorder %s28_s24, 2  ;;  %p250_p2 = scmp.lt.s32.totalorder %s577_s23, 3 }
   0x5   : > { %s683_s24 = smov (%p30_p1, %s28_s24), 0  ;;  %p251_p3 = pnand %p500_p0, %p250_p2 }
   0x6   : > { %p291_p4 = scmp.lt.s32.totalorder (!%p251_p3), %s569_s21, 1 }
   0x7   : > { %254 = sbr.rel (%p251_p3) target bundleno = 234 (0xea), region = 44 }
   0xc   : > { %v551_v0 = vld [vmem:[%s675_s2 + $0x18] sm:$0xff]   ;;  %v579_v1 = vmov 0.0   ;;  %v552_v2 = vld [vmem:[%s675_s2 + $0x10] sm:$0xff]   ;;  %vm580_vm0 = vmmov 0   ;;  %s685_s21 = smov (!%p291_p4, %s569_s21), 1  ;;  %v553_v3 = vld [vmem:[%s675_s2 + $0x8] sm:$0xff]  }
   0xd   : > { %513 = vmatprep.subr.bf16.mxu0 %v579_v1  ;;  %521 = vmatprep.mubr.msk.bf16.mxu0 %vm580_vm0, %v579_v1  ;;  %s296_s9 = scalar_lea.vmem %s673_s0, %s685_s21  ;;  %s299_s12 = scalar_lea.vmem %s674_s1, %s685_s21  ;;  %v554_v8 = vld [vmem:[%s675_s2] sm:$0xff]   ;;  %vm351_vm1 = vcmask 523264   ;;  %vm404_vm2 = vcmask 516096   ;;  %vm405_vm3 = vsmask.f32 256 }
   0xe   : > { %514 = vmatpush3.bf16.msra.mxu0 %v551_v0  ;;  %v313_v4 = vld [vmem:[%s296_s9] sm:$0x1]  ;;  %s305_s17 = scalar_lea.vmem %s678_s5, %s685_s21  ;;  %s311_s28 = scalar_lea.vmem %s679_s6, %s685_s21  ;;  %vm406_vm4 = vmand %vm404_vm2, %vm405_vm3 }
   0xf   : > { %515 = vmatprep.subr.bf16.mxu0 %v579_v1  ;;  %v315_v5 = vld [vmem:[%s299_s12] sm:$0x1]  ;;  %v314_v6 = vunpack.c.l.bf16 %v313_v4 }
  0x10   : > { %v316_v7 = vunpack.c.l.bf16 %v315_v5  ;;  %v395_v11 = vld [vmem:[%s676_s3] sm:$0x1] }
  0x11   : > { %v399_v12 = vld [vmem:[%s305_s17] sm:$0x1] }
  0x12   : > { %516 = vmatpush3.bf16.msra.mxu0 %v552_v2  ;;  %v317_v9 = vmul.f32 %v316_v7, %v314_v6  ;;  %v397_v14 = vld [vmem:[%s677_s4] sm:$0x1]  ;;  %v400_v16 = vunpack.c.l.bf16 %v399_v12 }
  0x13   : > { %517 = vmatprep.subr.bf16.mxu0 %v579_v1  ;;  %v407_v23 = vld [vmem:[%s311_s28] sm:$0x1] }
  0x14   : > { %v318_v10 = vpack.c.bf16 %v317_v9, %v317_v9 }
  0x16   : > { %518 = vmatpush3.bf16.msra.mxu0 %v553_v3 }
  0x17   : > { %519 = vmatprep.subr.bf16.mxu0 %v579_v1 }
  0x1a   : > { %520 = vmatpush3.bf16.msra.mxu0 %v554_v8 }
  0x1d   : > { %522 = vmatmul.mubr.msk.bf16.vlgmr.msra.gmra.mxu0 %vm351_vm1, %v318_v10 }
  0xdd   : > { %v389_v13 = vpop.f32.mrf.mxu0 }
  0xde   : > { %v396_v15 = vmul.f32 %v395_v11, %v389_v13 }
  0xdf   : > { %v523_v17 = vpop.f32.mrf.mxu0 }
  0xe0   : > { %v398_v18 = vadd.f32 %v397_v14, %v396_v15 }
  0xe1   : > { %v392_v19 = vpop.f32.mrf.mxu0 }
  0xe2   : > { %v401_v20 = vadd.f32 %v400_v16, %v398_v18 }
  0xe3   : > { %v524_v21 = vpop.f32.mrf.mxu0 }
  0xe4   : > { %v402_v22 = vmax.f32 %v401_v20, 0.0 }
  0xe6   : > { %v403_v24 = vpack.c.bf16 %v402_v22, %v402_v22 }
  0xe8   : > { %v408_v25 = vsel %vm406_vm4, %v403_v24, %v407_v23 }
  0xe9   : > { %409 = vst [vmem:[%s311_s28] sm:$0x1] %v408_v25 }
  0xea PF: > { %s16_s23 = sadd.s32 1, %s577_s23   ;;  %s680_s21 = smov %s573_s22 }
  0xeb   : > { %p13_p5 = scmp.ge.s32.totalorder %s16_s23, 4   ;;  %s681_s22 = smov %s683_s24 }
  0xed   :  { %15 = sbr.rel (!%p13_p5) target bundleno = 2 (0x2), region = 80 }

// kernel: _lambda_.83
= control target key start
LH: loop header
LB: loop body
LE: loop exit
PB: predicated region body
PF: predicated region fallthrough
CT: control target
= control target key end

     0   :  { %v149_v0 = vmov 0.0   ;;  %vm150_vm0 = vmmov 0   ;;  %vm51_vm1 = vcmask 523264   ;;  %vm113_vm2 = vcmask 122880   ;;  %s200_s1 = inlined_call_operand.vmem [shape: bf16[64,16], index: 1, kind: input, shape index: {}]   ;;  %s201_s0 = inlined_call_operand.vmem [shape: bf16[2,64], index: 0, kind: input, shape index: {}]   ;;  %s202_s2 = inlined_call_operand.vmem [shape: f32[1,16], index: 2, kind: input, shape index: {}]   ;;  %s203_s3 = inlined_call_operand.vmem [shape: f32[1,16], index: 3, kind: input, shape index: {}]   ;;  %s204_s4 = inlined_call_operand.vmem [shape: bf16[2,16], index: 4, kind: output, shape index: {}]  }
   0x1   :  { %131 = vmatprep.subr.bf16.mxu0 %v149_v0  ;;  %v145_v1 = vld [vmem:[%s200_s1 + $0x18] sm:$0xff]   ;;  %139 = vmatprep.mubr.msk.bf16.mxu0 %vm150_vm0, %v149_v0  ;;  %v146_v2 = vld [vmem:[%s200_s1 + $0x10] sm:$0xff]   ;;  %v147_v3 = vld [vmem:[%s200_s1 + $0x8] sm:$0xff]  }
   0x2   :  { %132 = vmatpush3.bf16.msra.mxu0 %v145_v1  ;;  %v148_v4 = vld [vmem:[%s200_s1] sm:$0xff]  }
   0x3   :  { %133 = vmatprep.subr.bf16.mxu0 %v149_v0  ;;  %v18_v5 = vld [vmem:[%s201_s0] sm:$0x1] }
   0x4   :  { %v124_v6 = vld [vmem:[%s202_s2] ss:$0 sm:$0xff] }
   0x5   :  { %v125_v8 = vld [vmem:[%s203_s3] ss:$0 sm:$0xff] }
   0x6   :  { %134 = vmatpush3.bf16.msra.mxu0 %v146_v2 }
   0x7   :  { %135 = vmatprep.subr.bf16.mxu0 %v149_v0 }
   0xa   :  { %136 = vmatpush3.bf16.msra.mxu0 %v147_v3 }
   0xb   :  { %137 = vmatprep.subr.bf16.mxu0 %v149_v0 }
   0xe   :  { %138 = vmatpush3.bf16.msra.mxu0 %v148_v4 }
  0x11   :  { %140 = vmatmul.mubr.msk.bf16.vlgmr.msra.gmra.mxu0 %vm51_vm1, %v18_v5 }
  0xd1   :  { %v89_v7 = vpop.f32.mrf.mxu0 }
  0xd2   :  { %v102_v9 = vmul.f32 %v124_v6, %v89_v7 }
  0xd3   :  { %v141_v10 = vpop.f32.mrf.mxu0 }
  0xd4   :  { %v110_v11 = vadd.f32 %v125_v8, %v102_v9 }
  0xd5   :  { %v92_v12 = vpop.f32.mrf.mxu0 }
  0xd6   :  { %v111_v13 = vmax.f32 %v110_v11, 0.0 }
  0xd7   :  { %v142_v14 = vpop.f32.mrf.mxu0 }
  0xd8   :  { %v112_v15 = vpack.c.bf16 %v111_v13, %v111_v13 }
  0xda   :  { %114 = vst.msk [vmem:[%s204_s4] sm:$0x1] %vm113_vm2, %v112_v15 }

// kernel: _lambda_.81
= control target key start
LH: loop header
LB: loop body
LE: loop exit
PB: predicated region body
PF: predicated region fallthrough
CT: control target
= control target key end

     0   :  { %v149_v0 = vmov 0.0   ;;  %vm150_vm0 = vmmov 0   ;;  %vm51_vm1 = vcmask 523264   ;;  %vm113_vm2 = vcmask 516096   ;;  %s200_s1 = inlined_call_operand.vmem [shape: bf16[64,64], index: 1, kind: input, shape index: {}]   ;;  %s201_s0 = inlined_call_operand.vmem [shape: bf16[2,64], index: 0, kind: input, shape index: {}]   ;;  %s202_s2 = inlined_call_operand.vmem [shape: f32[1,64], index: 2, kind: input, shape index: {}]   ;;  %s203_s3 = inlined_call_operand.vmem [shape: f32[1,64], index: 3, kind: input, shape index: {}]   ;;  %s204_s4 = inlined_call_operand.vmem [shape: bf16[2,64], index: 4, kind: output, shape index: {}]  }
   0x1   :  { %131 = vmatprep.subr.bf16.mxu0 %v149_v0  ;;  %v145_v1 = vld [vmem:[%s200_s1 + $0x18] sm:$0xff]   ;;  %139 = vmatprep.mubr.msk.bf16.mxu0 %vm150_vm0, %v149_v0  ;;  %v146_v2 = vld [vmem:[%s200_s1 + $0x10] sm:$0xff]   ;;  %v147_v3 = vld [vmem:[%s200_s1 + $0x8] sm:$0xff]  }
   0x2   :  { %132 = vmatpush3.bf16.msra.mxu0 %v145_v1  ;;  %v148_v4 = vld [vmem:[%s200_s1] sm:$0xff]  }
   0x3   :  { %133 = vmatprep.subr.bf16.mxu0 %v149_v0  ;;  %v18_v5 = vld [vmem:[%s201_s0] sm:$0x1] }
   0x4   :  { %v124_v6 = vld [vmem:[%s202_s2] ss:$0 sm:$0xff] }
   0x5   :  { %v125_v8 = vld [vmem:[%s203_s3] ss:$0 sm:$0xff] }
   0x6   :  { %134 = vmatpush3.bf16.msra.mxu0 %v146_v2 }
   0x7   :  { %135 = vmatprep.subr.bf16.mxu0 %v149_v0 }
   0xa   :  { %136 = vmatpush3.bf16.msra.mxu0 %v147_v3 }
   0xb   :  { %137 = vmatprep.subr.bf16.mxu0 %v149_v0 }
   0xe   :  { %138 = vmatpush3.bf16.msra.mxu0 %v148_v4 }
  0x11   :  { %140 = vmatmul.mubr.msk.bf16.vlgmr.msra.gmra.mxu0 %vm51_vm1, %v18_v5 }
  0xd1   :  { %v89_v7 = vpop.f32.mrf.mxu0 }
  0xd2   :  { %v102_v9 = vmul.f32 %v124_v6, %v89_v7 }
  0xd3   :  { %v141_v10 = vpop.f32.mrf.mxu0 }
  0xd4   :  { %v110_v11 = vadd.f32 %v125_v8, %v102_v9 }
  0xd5   :  { %v92_v12 = vpop.f32.mrf.mxu0 }
  0xd6   :  { %v111_v13 = vmax.f32 %v110_v11, 0.0 }
  0xd7   :  { %v142_v14 = vpop.f32.mrf.mxu0 }
  0xd8   :  { %v112_v15 = vpack.c.bf16 %v111_v13, %v111_v13 }
  0xda   :  { %114 = vst.msk [vmem:[%s204_s4] sm:$0x1] %vm113_vm2, %v112_v15 }

// kernel: _lambda_.84
= control target key start
LH: loop header
LB: loop body
LE: loop exit
PB: predicated region body
PF: predicated region fallthrough
CT: control target
= control target key end

     0   :  { %v120_v0 = vmov 0.0   ;;  %vm121_vm0 = vmmov 0   ;;  %vm27_vm1 = vcmask 130048   ;;  %vm94_vm2 = vcmask 516096   ;;  %s162_s1 = inlined_call_operand.vmem [shape: bf16[16,64], index: 1, kind: input, shape index: {}]   ;;  %s163_s0 = inlined_call_operand.vmem [shape: bf16[2,16], index: 0, kind: input, shape index: {}]   ;;  %s164_s2 = inlined_call_operand.vmem [shape: f32[1,64], index: 2, kind: input, shape index: {}]   ;;  %s165_s3 = inlined_call_operand.vmem [shape: f32[1,64], index: 3, kind: input, shape index: {}]   ;;  %s166_s4 = inlined_call_operand.vmem [shape: bf16[2,64], index: 4, kind: output, shape index: {}]  }
   0x1   :  { %107 = vmatprep.subr.bf16.mxu0 %v120_v0  ;;  %v115_v1 = vld [vmem:[%s162_s1] sm:$0xff]   ;;  %109 = vmatprep.mubr.msk.bf16.mxu0 %vm121_vm0, %v120_v0 }
   0x2   :  { %108 = vmatpush3.bf16.msra.mxu0 %v115_v1  ;;  %v18_v2 = vld [vmem:[%s163_s0] sm:$0x1] }
   0x3   :  { %v102_v3 = vld [vmem:[%s164_s2] ss:$0 sm:$0xff] }
   0x4   :  { %v103_v5 = vld [vmem:[%s165_s3] ss:$0 sm:$0xff] }
   0x5   :  { %110 = vmatmul.mubr.msk.bf16.vlgmr.msra.gmra.mxu0 %vm27_vm1, %v18_v2 }
  0xc5   :  { %v65_v4 = vpop.f32.mrf.mxu0 }
  0xc6   :  { %v78_v6 = vmul.f32 %v102_v3, %v65_v4 }
  0xc7   :  { %v111_v7 = vpop.f32.mrf.mxu0 }
  0xc8   :  { %v86_v8 = vadd.f32 %v103_v5, %v78_v6 }
  0xc9   :  { %v68_v9 = vpop.f32.mrf.mxu0 }
  0xca   :  { %v104_v10 = vmul.f32 -1.442695, %v86_v8 }
  0xcb   :  { %v112_v11 = vpop.f32.mrf.mxu0 }
  0xcc   :  { %116 = vpow2.f32 %v104_v10 }
  0xd9   :  { %v117_v12 = vpop.eup %116 }
  0xda   :  { %v90_v13 = vadd.f32 1.0, %v117_v12 }
  0xdc   :  { %118 = vrcp.f32 %v90_v13 }
  0xe9   :  { %v119_v14 = vpop.eup %118 }
  0xea   :  { %v93_v15 = vpack.c.bf16 %v119_v14, %v119_v14 }
  0xec   :  { %95 = vst.msk [vmem:[%s166_s4] sm:$0x1] %vm94_vm2, %v93_v15 }

// kernel: _lambda_.91
= control target key start
LH: loop header
LB: loop body
LE: loop exit
PB: predicated region body
PF: predicated region fallthrough
CT: control target
= control target key end

     0   :  { %v181_v1 = vmov 0.0   ;;  %vm182_vm0 = vmmov 0   ;;  %s233_s0 = inlined_call_operand.vmem [shape: bf16[2,64], index: 0, kind: input, shape index: {}]   ;;  %s234_s1 = inlined_call_operand.vmem [shape: bf16[64,10], index: 1, kind: input, shape index: {}]   ;;  %s235_s2 = inlined_call_operand.vmem [shape: f32[1,10], index: 2, kind: input, shape index: {}]   ;;  %s236_s3 = inlined_call_operand.vmem [shape: f32[1,10], index: 3, kind: input, shape index: {}]   ;;  %s237_s4 = inlined_call_operand.hbm [shape: f32[2,10], index: 4, kind: output, shape index: {}]  }
   0x1   :  { %v155_v0 = vld [vmem:[%s234_s1 + $0x18] sm:$0xff]   ;;  %140 = vmatprep.subr.bf16.mxu0 %v181_v1  ;;  %v156_v2 = vld [vmem:[%s234_s1 + $0x10] sm:$0xff]   ;;  %148 = vmatprep.mubr.msk.bf16.mxu0 %vm182_vm0, %v181_v1 }
   0x2   :  { %141 = vmatpush3.bf16.msra.mxu0 %v155_v0 }
   0x3   :  { %142 = vmatprep.subr.bf16.mxu0 %v181_v1 }
   0x4   :  { %9 = vsyncpa [#allocation3], 0  ;;  %v157_v3 = vld [vmem:[%s234_s1 + $0x8] sm:$0xff]   ;;  %v158_v4 = vld [vmem:[%s234_s1] sm:$0xff]   ;;  %vm52_vm1 = vcmask 523264   ;;  %s183_s29 = smov [#allocation2]  }
   0x5   :  { %v19_v5 = vld [vmem:[%s233_s0] sm:$0x1]  ;;  %s120_s30 = sshll.u32 %s183_s29, 4  ;;  %vm112_vm2 = vcmask 74752   ;;  %s121_s30 = int_to_ptr.vmem [resolvable:$true] %s120_s30 }
   0x6   :  { %143 = vmatpush3.bf16.msra.mxu0 %v156_v2  ;;  %v133_v6 = vld [vmem:[%s235_s2] ss:$0 sm:$0xff]  ;;  %s159_s0 = scalar_lea.vmem %s121_s30, 32  ;;  %p164_p1 = scmp.lt.s32.totalorder %s121_s30, %s121_s30 }
   0x7   :  { %144 = vmatprep.subr.bf16.mxu0 %v181_v1  ;;  %v134_v8 = vld [vmem:[%s236_s3] ss:$0 sm:$0xff]  ;;  %p160_p0 = scmp.ne.s32.totalorder %s121_s30, %s159_s0  ;;  %p165_p2 = scmp.lt.s32.totalorder %s159_s0, %s159_s0 }
   0x9   :  { %p166_p3 = por %p165_p2, %p164_p1 }
   0xa   :  { %145 = vmatpush3.bf16.msra.mxu0 %v157_v3 }
   0xb   :  { %146 = vmatprep.subr.bf16.mxu0 %v181_v1  ;;  %p167_p4 = pnand %p166_p3, %p160_p0 }
   0xe   :  { %147 = vmatpush3.bf16.msra.mxu0 %v158_v4 }
  0x11   :  { %149 = vmatmul.mubr.msk.bf16.vlgmr.msra.gmra.mxu0 %vm52_vm1, %v19_v5 }
  0xd1   :  { %v90_v7 = vpop.f32.mrf.mxu0 }
  0xd2   :  { %v103_v9 = vmul.f32 %v133_v6, %v90_v7 }
  0xd3   :  { %v150_v10 = vpop.f32.mrf.mxu0 }
  0xd4   :  { %v111_v11 = vadd.f32 %v134_v8, %v103_v9 }
  0xd5   :  { %v93_v12 = vpop.f32.mrf.mxu0 }
  0xd6   :  { %113 = vst.msk [vmem:[#allocation2] sm:$0x3] %vm112_vm2, %v111_v11 }
  0xd7   :  { %v151_v13 = vpop.f32.mrf.mxu0 }
  0xd8   :  { %170 = shalt.err (!%p167_p4)
}
  0xd9   :  { %123 = dma.vmem_to_hbm [thread:$0]  %s121_s30, 32, %s237_s4, [#allocation3]  }
  0xda   :  { %179 = dma.done.wait [#allocation3], 32  }
  0xdb   :  { %180 = vsyncadd [#allocation3], 4294967264 }
  0xdc   :  { %127 = vsyncpa [#allocation3], 1 }

</bundles_post_ra>
